<compile_context>
chip_gen: v7x
topology: tpu7x:2x2x1
jax: 0.10.0
libtpu: 0.0.40
codegen_flags: <defaults>
</compile_context>

<pallas_src>
import jax
import jax.numpy as jnp
from jax.experimental import pallas as pl
from jax.experimental.pallas import tpu as pltpu

NUM_CLASSES = 10
CPAD = 128  # lane-dense channel padding for all conv/FC outputs


# ----------------------------------------------------------------------------
# Pallas kernels
# ----------------------------------------------------------------------------

def _conv_kernel(relu):
    """y = taps @ W + b  [+ relu].  W has alpha and BN-scale folded in."""
    def kernel(t_ref, w_ref, b_ref, o_ref):
        y = jnp.dot(t_ref[...], w_ref[...], preferred_element_type=jnp.float32)
        y = y + b_ref[...]
        if relu:
            y = jnp.maximum(y, 0.0)
        o_ref[...] = y.astype(o_ref.dtype)
    return kernel


def _conv_res_kernel(has_ds):
    """conv2 + bn2 + residual (+ 1x1 downsample + ds_bn) + add + relu."""
    if has_ds:
        def kernel(t_ref, w_ref, b_ref, id_ref, dw_ref, db_ref, o_ref):
            y = jnp.dot(t_ref[...], w_ref[...],
                        preferred_element_type=jnp.float32) + b_ref[...]
            r = jnp.dot(id_ref[...], dw_ref[...],
                        preferred_element_type=jnp.float32) + db_ref[...]
            o_ref[...] = jnp.maximum(y + r, 0.0).astype(o_ref.dtype)
    else:
        def kernel(t_ref, w_ref, b_ref, id_ref, o_ref):
            y = jnp.dot(t_ref[...], w_ref[...],
                        preferred_element_type=jnp.float32) + b_ref[...]
            o_ref[...] = jnp.maximum(y + id_ref[...], 0.0).astype(o_ref.dtype)
    return kernel


def _gap_fc_kernel(p_ref, x_ref, w_ref, b_ref, o_ref):
    """Pooling as a tiny MXU matmul, immediately followed by the FC matmul."""
    feat = jnp.dot(p_ref[...], x_ref[...], preferred_element_type=jnp.float32)
    y = jnp.dot(feat, w_ref[...], preferred_element_type=jnp.float32) + b_ref[...]
    o_ref[...] = y.astype(o_ref.dtype)


# ----------------------------------------------------------------------------
# Pallas wrappers
# ----------------------------------------------------------------------------

def _row_blocks(M):
    # 2-way parallel row split for the larger convs (keeps v7x's 2nd TC busy);
    # a single grid step for the tiny late-stage tiles (avoids per-step overhead
    # on the single-TC v5e/v6e).
    return 2 if (M >= 128 and M % 16 == 0) else 1


def _im2col_3x3(x, cin, stride):
    """Glue (data movement only): pad=1 and extract the 9 strided taps.

    x: (N, H, W, C>=cin)  ->  taps: (N*Ho*Wo, 9*cin), tap k occupies columns
    [k*cin, (k+1)*cin), matching the (9, cin, CPAD) weight layout.  Tap 4
    (kh=kw=1) samples x at (oh*stride, ow*stride) which is exactly where the
    residual 1x1 adapter samples -> alpha can be folded into w[4].
    """
    N, H, W, _ = x.shape
    xr = x[..., :cin]
    Ho = (H - 1) // stride + 1
    Wo = (W - 1) // stride + 1
    xp = jnp.pad(xr, ((0, 0), (1, 1), (1, 1), (0, 0)))
    taps = []
    for kh in range(3):
        for kw in range(3):
            t = jax.lax.slice(
                xp, (0, kh, kw, 0),
                (N, kh + (Ho - 1) * stride + 1, kw + (Wo - 1) * stride + 1, cin),
                (1, stride, stride, 1))
            taps.append(t.reshape(N, Ho * Wo, cin))
    taps = jnp.concatenate(taps, axis=-1)             # (N, P, 9*cin)
    return taps.reshape(N * Ho * Wo, 9 * cin), Ho, Wo


def _center_stride(x, cin, stride, Ho, Wo):
    """Strided center slice of x (= 1x1-conv sampling positions), flattened."""
    N = x.shape[0]
    xs = jax.lax.slice(
        x[..., :cin], (0, 0, 0, 0),
        (N, (Ho - 1) * stride + 1, (Wo - 1) * stride + 1, cin),
        (1, stride, stride, 1))
    return xs.reshape(N * Ho * Wo, cin)


def conv_bn_act(taps, w, b, M, relu):
    """Fused conv(3x3, alpha folded) + BN + optional ReLU.  One matmul."""
    K = taps.shape[-1]
    nb = _row_blocks(M)
    bm = M // nb
    return pl.pallas_call(
        _conv_kernel(relu),
        out_shape=jax.ShapeDtypeStruct((M, CPAD), jnp.float32),
        grid=(nb,),
        in_specs=[
            pl.BlockSpec((bm, K), lambda i: (i, 0)),
            pl.BlockSpec((K, CPAD), lambda i: (0, 0)),
            pl.BlockSpec((1, CPAD), lambda i: (0, 0)),
        ],
        out_specs=pl.BlockSpec((bm, CPAD), lambda i: (i, 0)),
        compiler_params=pltpu.CompilerParams(dimension_semantics=("parallel",)),
    )(taps, w, b)


def conv_bn_res_act(taps, w, b, idr, ds_w, ds_b, M):
    """Fused conv2 + BN + (downsample 1x1 + BN | identity) + add + ReLU."""
    K = taps.shape[-1]
    Kid = idr.shape[-1]
    nb = _row_blocks(M)
    bm = M // nb
    has_ds = ds_w is not None
    in_specs = [
        pl.BlockSpec((bm, K), lambda i: (i, 0)),
        pl.BlockSpec((K, CPAD), lambda i: (0, 0)),
        pl.BlockSpec((1, CPAD), lambda i: (0, 0)),
        pl.BlockSpec((bm, Kid), lambda i: (i, 0)),
    ]
    args = [taps, w, b, idr]
    if has_ds:
        in_specs += [
            pl.BlockSpec((Kid, CPAD), lambda i: (0, 0)),
            pl.BlockSpec((1, CPAD), lambda i: (0, 0)),
        ]
        args += [ds_w, ds_b]
    return pl.pallas_call(
        _conv_res_kernel(has_ds),
        out_shape=jax.ShapeDtypeStruct((M, CPAD), jnp.float32),
        grid=(nb,),
        in_specs=in_specs,
        out_specs=pl.BlockSpec((bm, CPAD), lambda i: (i, 0)),
        compiler_params=pltpu.CompilerParams(dimension_semantics=("parallel",)),
    )(*args)


def gap_fc(x, fc_w, fc_b):
    """Fused global-average-pool + linear head (one pallas_call)."""
    N, H, W, _ = x.shape
    HW = H * W
    xflat = x.reshape(N * HW, CPAD)
    # Block-diagonal pooling matrix: pooled = pool @ xflat  (runs on the MXU).
    pool = jnp.kron(jnp.eye(N, dtype=jnp.float32),
                    jnp.full((1, HW), 1.0 / HW, jnp.float32))      # (N, N*HW)
    return pl.pallas_call(
        _gap_fc_kernel,
        out_shape=jax.ShapeDtypeStruct((N, CPAD), jnp.float32),
        grid=(1,),
        in_specs=[
            pl.BlockSpec((N, N * HW), lambda i: (0, 0)),
            pl.BlockSpec((N * HW, CPAD), lambda i: (0, 0)),
            pl.BlockSpec((CPAD, CPAD), lambda i: (0, 0)),
            pl.BlockSpec((1, CPAD), lambda i: (0, 0)),
        ],
        out_specs=pl.BlockSpec((N, CPAD), lambda i: (0, 0)),
    )(pool, xflat, fc_w, fc_b)


# ----------------------------------------------------------------------------
# Deterministic parameter construction (synthetic backbone) + folding
# ----------------------------------------------------------------------------

def _conv_w(key, cin, cout):
    # stored as (9, cin, cout) == (kh*3+kw, Cin, Cout)
    return jax.random.normal(key, (9, cin, cout), jnp.float32) * ((9 * cin) ** -0.5)


def _alpha(cin, cout):
    # conv_tsa residual matrix adapter after reset(tsa_init='eye'): eye * 1e-4,
    # stored as (Cin, Cout) for the matmul form.
    return jnp.eye(cin, cout, dtype=jnp.float32) * 1e-4


def _bn(key, c):
    k1, k2 = jax.random.split(key)
    scale = 1.0 + 0.05 * jax.random.normal(k1, (c,), jnp.float32)
    bias = 0.05 * jax.random.normal(k2, (c,), jnp.float32)
    return scale, bias


def _block_params(key, cin, cout, stride):
    ks = jax.random.split(key, 6)
    p = {"stride": stride, "cin": cin, "cout": cout,
         "has_ds": (stride != 1 or cin != cout),
         "w1": _conv_w(ks[0], cin, cout), "alpha1": _alpha(cin, cout),
         "w2": _conv_w(ks[1], cout, cout), "alpha2": _alpha(cout, cout)}
    p["bn1_scale"], p["bn1_bias"] = _bn(ks[2], cout)
    p["bn2_scale"], p["bn2_bias"] = _bn(ks[3], cout)
    if p["has_ds"]:
        p["ds_w"] = jax.random.normal(ks[4], (cin, cout), jnp.float32) * (cin ** -0.5)
        p["ds_scale"], p["ds_bias"] = _bn(ks[5], cout)
    return p


def make_resnet_tsa_params(key, in_ch=4):
    ks = jax.random.split(key, 8)
    params = {"in_ch": in_ch, "stem_w": _conv_w(ks[0], in_ch, 8)}
    params["stem_scale"], params["stem_bias"] = _bn(ks[1], 8)
    params["layer1"] = _block_params(ks[2], 8, 8, 1)
    params["layer2"] = _block_params(ks[3], 8, 16, 2)
    params["layer3"] = _block_params(ks[4], 16, 32, 2)
    params["layer4"] = _block_params(ks[5], 32, 64, 2)
    feat_dim = 64
    params["fc_w"] = jax.random.normal(ks[6], (feat_dim, NUM_CLASSES),
                                       jnp.float32) * (feat_dim ** -0.5)
    params["fc_b"] = 0.01 * jax.random.normal(ks[7], (NUM_CLASSES,), jnp.float32)
    return params


def _fold_conv(w9, alpha, scale, bias, use_alpha=True):
    """Fold alpha into w9[4], BN scale into weight columns; pad Cout -> 128."""
    w = w9
    if use_alpha:
        w = w.at[4].add(alpha)
    w = w * scale[None, None, :]
    cin, cout = w.shape[1], w.shape[2]
    wp = jnp.zeros((9, cin, CPAD), jnp.float32).at[:, :, :cout].set(w)
    bp = jnp.zeros((1, CPAD), jnp.float32).at[0, :cout].set(bias)
    return wp.reshape(9 * cin, CPAD), bp


def _fold_1x1(w, scale, bias):
    cin, cout = w.shape
    wp = jnp.zeros((cin, CPAD), jnp.float32).at[:, :cout].set(w * scale[None, :])
    bp = jnp.zeros((1, CPAD), jnp.float32).at[0, :cout].set(bias)
    return wp, bp


def _fold_fc(w, b):
    f, k = w.shape
    wp = jnp.zeros((CPAD, CPAD), jnp.float32).at[:f, :k].set(w)
    bp = jnp.zeros((1, CPAD), jnp.float32).at[0, :k].set(b)
    return wp, bp


def fold_params(raw):
    fp = {"stem_cin": raw["in_ch"]}
    fp["stem_w"], fp["stem_b"] = _fold_conv(
        raw["stem_w"], None, raw["stem_scale"], raw["stem_bias"], use_alpha=False)
    for name in ("layer1", "layer2", "layer3", "layer4"):
        rp = raw[name]
        bp = {"stride": rp["stride"], "cin": rp["cin"], "cout": rp["cout"],
              "has_ds": rp["has_ds"]}
        bp["w1"], bp["b1"] = _fold_conv(rp["w1"], rp["alpha1"],
                                        rp["bn1_scale"], rp["bn1_bias"])
        bp["w2"], bp["b2"] = _fold_conv(rp["w2"], rp["alpha2"],
                                        rp["bn2_scale"], rp["bn2_bias"])
        if rp["has_ds"]:
            bp["ds_w"], bp["ds_b"] = _fold_1x1(rp["ds_w"], rp["ds_scale"],
                                               rp["ds_bias"])
        fp[name] = bp
    fp["fc_w"], fp["fc_b"] = _fold_fc(raw["fc_w"], raw["fc_b"])
    return fp


# ----------------------------------------------------------------------------
# Forward pass (Pallas)
# ----------------------------------------------------------------------------

def basic_block_fused(x, p):
    """Two pallas_calls per BasicBlock (all BN/ReLU/adapter/residual fused)."""
    N = x.shape[0]
    s, cin, cout = p["stride"], p["cin"], p["cout"]
    # conv1 (alpha+bn1 folded) + relu
    taps1, Ho, Wo = _im2col_3x3(x, cin, s)
    M = N * Ho * Wo
    y1 = conv_bn_act(taps1, p["w1"], p["b1"], M, relu=True)
    # conv2 (alpha+bn2 folded) + residual path + relu, in one call
    taps2, _, _ = _im2col_3x3(y1.reshape(N, Ho, Wo, CPAD), cout, 1)
    if p["has_ds"]:
        idr = _center_stride(x, cin, s, Ho, Wo)            # (M, cin)
        y = conv_bn_res_act(taps2, p["w2"], p["b2"], idr, p["ds_w"], p["ds_b"], M)
    else:
        idr = x.reshape(M, CPAD)                           # identity (already padded)
        y = conv_bn_res_act(taps2, p["w2"], p["b2"], idr, None, None, M)
    return y.reshape(N, Ho, Wo, CPAD)


def resnet_tsa_forward(fp, x_nchw):
    # layout: convert PyTorch NCHW -> NHWC once at the boundary.
    x = jnp.transpose(x_nchw, (0, 2, 3, 1)).astype(jnp.float32)
    N = x.shape[0]
    # stem: conv3x3 (no adapter) + bn + relu, one call
    taps, Ho, Wo = _im2col_3x3(x, fp["stem_cin"], 1)
    x = conv_bn_act(taps, fp["stem_w"], fp["stem_b"], N * Ho * Wo,
                    relu=True).reshape(N, Ho, Wo, CPAD)
    for name in ("layer1", "layer2", "layer3", "layer4"):
        x = basic_block_fused(x, fp[name])
    logits = gap_fc(x, fp["fc_w"], fp["fc_b"])
    # slice off the lane padding only at the very end
    # TODO(synk): the `pa` / `beta` head (HypLinear) is not called by
    # resnet_tsa.forward and HypLinear is undefined in the source, so it is
    # intentionally not implemented.
    return logits[:, :NUM_CLASSES]


# ----------------------------------------------------------------------------
# Plain-JAX reference (unfolded parameters) for correctness checking
# ----------------------------------------------------------------------------

_DN = ("NHWC", "HWIO", "NHWC")


def _conv3x3_ref(x, w9, stride):
    w = w9.reshape(3, 3, w9.shape[1], w9.shape[2])
    return jax.lax.conv_general_dilated(x, w, (stride, stride), ((1, 1), (1, 1)),
                                        dimension_numbers=_DN,
                                        precision=jax.lax.Precision.HIGHEST)


def _conv1x1_ref(x, w, stride):
    return jax.lax.conv_general_dilated(x, w.reshape(1, 1, *w.shape),
                                        (stride, stride), ((0, 0), (0, 0)),
                                        dimension_numbers=_DN,
                                        precision=jax.lax.Precision.HIGHEST)


def reference_forward(raw, x_nchw):
    x = jnp.transpose(x_nchw, (0, 2, 3, 1)).astype(jnp.float32)
    x = jnp.maximum(_conv3x3_ref(x, raw["stem_w"], 1) * raw["stem_scale"]
                    + raw["stem_bias"], 0.0)
    for name in ("layer1", "layer2", "layer3", "layer4"):
        p = raw[name]
        s = p["stride"]
        out = _conv3x3_ref(x, p["w1"], s) + _conv1x1_ref(x, p["alpha1"], s)
        out = jnp.maximum(out * p["bn1_scale"] + p["bn1_bias"], 0.0)
        out2 = _conv3x3_ref(out, p["w2"], 1) + _conv1x1_ref(out, p["alpha2"], 1)
        out2 = out2 * p["bn2_scale"] + p["bn2_bias"]
        if p["has_ds"]:
            idn = _conv1x1_ref(x, p["ds_w"], s) * p["ds_scale"] + p["ds_bias"]
        else:
            idn = x
        x = jnp.maximum(out2 + idn, 0.0)
    feat = jnp.mean(x, axis=(1, 2))
    return feat @ raw["fc_w"] + raw["fc_b"]


# ----------------------------------------------------------------------------

if __name__ == "__main__":
    root = jax.random.PRNGKey(0)
    pkey, xkey = jax.random.split(root)

    raw = make_resnet_tsa_params(pkey, in_ch=4)
    folded = fold_params(raw)
    x = jax.random.normal(xkey, (2, 4, 16, 16), jnp.float32)   # NCHW, like PyTorch

    fwd = jax.jit(lambda xin: resnet_tsa_forward(folded, xin))
    logits = jax.block_until_ready(fwd(x))
    assert logits.shape == (2, NUM_CLASSES)
    assert bool(jnp.all(jnp.isfinite(logits)))

    # correctness vs. plain-JAX reference with unfolded parameters
    ref = jax.block_until_ready(reference_forward(raw, x))
    err = float(jnp.max(jnp.abs(logits - ref)))
    rel = err / (float(jnp.max(jnp.abs(ref))) + 1e-6)
    assert rel < 5e-3, f"mismatch vs reference: abs={err}, rel={rel}"

    print("KERNEL_OK")
</pallas_src>

<mosaic_0001>
module attributes {stable_mosaic.version = 11 : i64} {
  func.func @kernel(%arg0: i32, %arg1: memref<256x36xf32, #tpu.memory_space<vmem>>, %arg2: memref<36x128xf32, #tpu.memory_space<vmem>>, %arg3: memref<1x128xf32, #tpu.memory_space<vmem>>, %arg4: memref<256x128xf32, #tpu.memory_space<vmem>>) attributes {dimension_semantics = [#tpu.dimension_semantics<parallel>], iteration_bounds = array<i64: 2>, scalar_prefetch = 0 : i64, scratch_operands = 0 : i64, tpu.core_type = #tpu.core_type<tc>, window_params = [{transform_indices = @transform_0, window_bounds = array<i64: 256, 36>}, {pipeline_mode = #tpu.pipeline_mode<synchronous>, transform_indices = @transform_1, window_bounds = array<i64: 36, 128>}, {pipeline_mode = #tpu.pipeline_mode<synchronous>, transform_indices = @transform_2, window_bounds = array<i64: 1, 128>}, {transform_indices = @transform_3, window_bounds = array<i64: 256, 128>}]} {
    %c0 = arith.constant 0 : index
    %c0_0 = arith.constant 0 : index
    %0 = vector.load %arg1[%c0, %c0_0] : memref<256x36xf32, #tpu.memory_space<vmem>>, vector<256x36xf32>
    %c0_1 = arith.constant 0 : index
    %c0_2 = arith.constant 0 : index
    %1 = vector.load %arg2[%c0_1, %c0_2] : memref<36x128xf32, #tpu.memory_space<vmem>>, vector<36x128xf32>
    %cst = arith.constant dense<0.000000e+00> : vector<256x128xf32>
    %2 = tpu.matmul %0, %1, %cst {dimension_numbers = #tpu.dot_dimension_numbers<[1], [0], [0], [1], [0, 0, 1, 1], [], []>} : vector<256x36xf32>, vector<36x128xf32>, vector<256x128xf32> -> vector<256x128xf32>
    %c0_3 = arith.constant 0 : index
    %c0_4 = arith.constant 0 : index
    %3 = vector.load %arg3[%c0_3, %c0_4] : memref<1x128xf32, #tpu.memory_space<vmem>>, vector<1x128xf32>
    %4 = vector.broadcast %3 : vector<1x128xf32> to vector<256x128xf32>
    %5 = arith.addf %2, %4 : vector<256x128xf32>
    %cst_5 = arith.constant 0.000000e+00 : f32
    %6 = vector.broadcast %cst_5 : f32 to vector<256x128xf32>
    %7 = arith.maximumf %5, %6 : vector<256x128xf32>
    %c0_6 = arith.constant 0 : index
    %c0_7 = arith.constant 0 : index
    %8 = vector.load %arg4[%c0_6, %c0_7] : memref<256x128xf32, #tpu.memory_space<vmem>>, vector<256x128xf32>
    tpu.vector_store %arg4[%c0_6, %c0_7], %7 {strides = array<i32>} : memref<256x128xf32, #tpu.memory_space<vmem>>, vector<256x128xf32>,
    return
  }
  func.func @transform_0(%arg0: i32) -> (i32, i32) {
    %c0_i32 = arith.constant 0 : i32
    %c0_i32_0 = arith.constant 0 : i32
    return %arg0, %c0_i32 : i32, i32
  }
  func.func @transform_1(%arg0: i32) -> (i32, i32) {
    %c0_i32 = arith.constant 0 : i32
    %c0_i32_0 = arith.constant 0 : i32
    %c0_i32_1 = arith.constant 0 : i32
    return %c0_i32, %c0_i32_0 : i32, i32
  }
  func.func @transform_2(%arg0: i32) -> (i32, i32) {
    %c0_i32 = arith.constant 0 : i32
    %c0_i32_0 = arith.constant 0 : i32
    %c0_i32_1 = arith.constant 0 : i32
    return %c0_i32, %c0_i32_0 : i32, i32
  }
  func.func @transform_3(%arg0: i32) -> (i32, i32) {
    %c0_i32 = arith.constant 0 : i32
    %c0_i32_0 = arith.constant 0 : i32
    return %arg0, %c0_i32 : i32, i32
  }
}

module attributes {stable_mosaic.version = 11 : i64} {
  func.func @kernel(%arg0: i32, %arg1: memref<256x72xf32, #tpu.memory_space<vmem>>, %arg2: memref<72x128xf32, #tpu.memory_space<vmem>>, %arg3: memref<1x128xf32, #tpu.memory_space<vmem>>, %arg4: memref<256x128xf32, #tpu.memory_space<vmem>>) attributes {dimension_semantics = [#tpu.dimension_semantics<parallel>], iteration_bounds = array<i64: 2>, scalar_prefetch = 0 : i64, scratch_operands = 0 : i64, tpu.core_type = #tpu.core_type<tc>, window_params = [{transform_indices = @transform_0, window_bounds = array<i64: 256, 72>}, {pipeline_mode = #tpu.pipeline_mode<synchronous>, transform_indices = @transform_1, window_bounds = array<i64: 72, 128>}, {pipeline_mode = #tpu.pipeline_mode<synchronous>, transform_indices = @transform_2, window_bounds = array<i64: 1, 128>}, {transform_indices = @transform_3, window_bounds = array<i64: 256, 128>}]} {
    %c0 = arith.constant 0 : index
    %c0_0 = arith.constant 0 : index
    %0 = vector.load %arg1[%c0, %c0_0] : memref<256x72xf32, #tpu.memory_space<vmem>>, vector<256x72xf32>
    %c0_1 = arith.constant 0 : index
    %c0_2 = arith.constant 0 : index
    %1 = vector.load %arg2[%c0_1, %c0_2] : memref<72x128xf32, #tpu.memory_space<vmem>>, vector<72x128xf32>
    %cst = arith.constant dense<0.000000e+00> : vector<256x128xf32>
    %2 = tpu.matmul %0, %1, %cst {dimension_numbers = #tpu.dot_dimension_numbers<[1], [0], [0], [1], [0, 0, 1, 1], [], []>} : vector<256x72xf32>, vector<72x128xf32>, vector<256x128xf32> -> vector<256x128xf32>
    %c0_3 = arith.constant 0 : index
    %c0_4 = arith.constant 0 : index
    %3 = vector.load %arg3[%c0_3, %c0_4] : memref<1x128xf32, #tpu.memory_space<vmem>>, vector<1x128xf32>
    %4 = vector.broadcast %3 : vector<1x128xf32> to vector<256x128xf32>
    %5 = arith.addf %2, %4 : vector<256x128xf32>
    %cst_5 = arith.constant 0.000000e+00 : f32
    %6 = vector.broadcast %cst_5 : f32 to vector<256x128xf32>
    %7 = arith.maximumf %5, %6 : vector<256x128xf32>
    %c0_6 = arith.constant 0 : index
    %c0_7 = arith.constant 0 : index
    %8 = vector.load %arg4[%c0_6, %c0_7] : memref<256x128xf32, #tpu.memory_space<vmem>>, vector<256x128xf32>
    tpu.vector_store %arg4[%c0_6, %c0_7], %7 {strides = array<i32>} : memref<256x128xf32, #tpu.memory_space<vmem>>, vector<256x128xf32>,
    return
  }
  func.func @transform_0(%arg0: i32) -> (i32, i32) {
    %c0_i32 = arith.constant 0 : i32
    %c0_i32_0 = arith.constant 0 : i32
    return %arg0, %c0_i32 : i32, i32
  }
  func.func @transform_1(%arg0: i32) -> (i32, i32) {
    %c0_i32 = arith.constant 0 : i32
    %c0_i32_0 = arith.constant 0 : i32
    %c0_i32_1 = arith.constant 0 : i32
    return %c0_i32, %c0_i32_0 : i32, i32
  }
  func.func @transform_2(%arg0: i32) -> (i32, i32) {
    %c0_i32 = arith.constant 0 : i32
    %c0_i32_0 = arith.constant 0 : i32
    %c0_i32_1 = arith.constant 0 : i32
    return %c0_i32, %c0_i32_0 : i32, i32
  }
  func.func @transform_3(%arg0: i32) -> (i32, i32) {
    %c0_i32 = arith.constant 0 : i32
    %c0_i32_0 = arith.constant 0 : i32
    return %arg0, %c0_i32 : i32, i32
  }
}

module attributes {stable_mosaic.version = 11 : i64} {
  func.func @kernel(%arg0: i32, %arg1: memref<256x72xf32, #tpu.memory_space<vmem>>, %arg2: memref<72x128xf32, #tpu.memory_space<vmem>>, %arg3: memref<1x128xf32, #tpu.memory_space<vmem>>, %arg4: memref<256x128xf32, #tpu.memory_space<vmem>>, %arg5: memref<256x128xf32, #tpu.memory_space<vmem>>) attributes {dimension_semantics = [#tpu.dimension_semantics<parallel>], iteration_bounds = array<i64: 2>, scalar_prefetch = 0 : i64, scratch_operands = 0 : i64, tpu.core_type = #tpu.core_type<tc>, window_params = [{transform_indices = @transform_0, window_bounds = array<i64: 256, 72>}, {pipeline_mode = #tpu.pipeline_mode<synchronous>, transform_indices = @transform_1, window_bounds = array<i64: 72, 128>}, {pipeline_mode = #tpu.pipeline_mode<synchronous>, transform_indices = @transform_2, window_bounds = array<i64: 1, 128>}, {transform_indices = @transform_3, window_bounds = array<i64: 256, 128>}, {transform_indices = @transform_4, window_bounds = array<i64: 256, 128>}]} {
    %c0 = arith.constant 0 : index
    %c0_0 = arith.constant 0 : index
    %0 = vector.load %arg1[%c0, %c0_0] : memref<256x72xf32, #tpu.memory_space<vmem>>, vector<256x72xf32>
    %c0_1 = arith.constant 0 : index
    %c0_2 = arith.constant 0 : index
    %1 = vector.load %arg2[%c0_1, %c0_2] : memref<72x128xf32, #tpu.memory_space<vmem>>, vector<72x128xf32>
    %cst = arith.constant dense<0.000000e+00> : vector<256x128xf32>
    %2 = tpu.matmul %0, %1, %cst {dimension_numbers = #tpu.dot_dimension_numbers<[1], [0], [0], [1], [0, 0, 1, 1], [], []>} : vector<256x72xf32>, vector<72x128xf32>, vector<256x128xf32> -> vector<256x128xf32>
    %c0_3 = arith.constant 0 : index
    %c0_4 = arith.constant 0 : index
    %3 = vector.load %arg3[%c0_3, %c0_4] : memref<1x128xf32, #tpu.memory_space<vmem>>, vector<1x128xf32>
    %4 = vector.broadcast %3 : vector<1x128xf32> to vector<256x128xf32>
    %5 = arith.addf %2, %4 : vector<256x128xf32>
    %c0_5 = arith.constant 0 : index
    %c0_6 = arith.constant 0 : index
    %6 = vector.load %arg4[%c0_5, %c0_6] : memref<256x128xf32, #tpu.memory_space<vmem>>, vector<256x128xf32>
    %7 = arith.addf %5, %6 : vector<256x128xf32>
    %cst_7 = arith.constant 0.000000e+00 : f32
    %8 = vector.broadcast %cst_7 : f32 to vector<256x128xf32>
    %9 = arith.maximumf %7, %8 : vector<256x128xf32>
    %c0_8 = arith.constant 0 : index
    %c0_9 = arith.constant 0 : index
    %10 = vector.load %arg5[%c0_8, %c0_9] : memref<256x128xf32, #tpu.memory_space<vmem>>, vector<256x128xf32>
    tpu.vector_store %arg5[%c0_8, %c0_9], %9 {strides = array<i32>} : memref<256x128xf32, #tpu.memory_space<vmem>>, vector<256x128xf32>,
    return
  }
  func.func @transform_0(%arg0: i32) -> (i32, i32) {
    %c0_i32 = arith.constant 0 : i32
    %c0_i32_0 = arith.constant 0 : i32
    return %arg0, %c0_i32 : i32, i32
  }
  func.func @transform_1(%arg0: i32) -> (i32, i32) {
    %c0_i32 = arith.constant 0 : i32
    %c0_i32_0 = arith.constant 0 : i32
    %c0_i32_1 = arith.constant 0 : i32
    return %c0_i32, %c0_i32_0 : i32, i32
  }
  func.func @transform_2(%arg0: i32) -> (i32, i32) {
    %c0_i32 = arith.constant 0 : i32
    %c0_i32_0 = arith.constant 0 : i32
    %c0_i32_1 = arith.constant 0 : i32
    return %c0_i32, %c0_i32_0 : i32, i32
  }
  func.func @transform_3(%arg0: i32) -> (i32, i32) {
    %c0_i32 = arith.constant 0 : i32
    %c0_i32_0 = arith.constant 0 : i32
    return %arg0, %c0_i32 : i32, i32
  }
  func.func @transform_4(%arg0: i32) -> (i32, i32) {
    %c0_i32 = arith.constant 0 : i32
    %c0_i32_0 = arith.constant 0 : i32
    return %arg0, %c0_i32 : i32, i32
  }
}

module attributes {stable_mosaic.version = 11 : i64} {
  func.func @kernel(%arg0: i32, %arg1: memref<64x72xf32, #tpu.memory_space<vmem>>, %arg2: memref<72x128xf32, #tpu.memory_space<vmem>>, %arg3: memref<1x128xf32, #tpu.memory_space<vmem>>, %arg4: memref<64x128xf32, #tpu.memory_space<vmem>>) attributes {dimension_semantics = [#tpu.dimension_semantics<parallel>], iteration_bounds = array<i64: 2>, scalar_prefetch = 0 : i64, scratch_operands = 0 : i64, tpu.core_type = #tpu.core_type<tc>, window_params = [{transform_indices = @transform_0, window_bounds = array<i64: 64, 72>}, {pipeline_mode = #tpu.pipeline_mode<synchronous>, transform_indices = @transform_1, window_bounds = array<i64: 72, 128>}, {pipeline_mode = #tpu.pipeline_mode<synchronous>, transform_indices = @transform_2, window_bounds = array<i64: 1, 128>}, {transform_indices = @transform_3, window_bounds = array<i64: 64, 128>}]} {
    %c0 = arith.constant 0 : index
    %c0_0 = arith.constant 0 : index
    %0 = vector.load %arg1[%c0, %c0_0] : memref<64x72xf32, #tpu.memory_space<vmem>>, vector<64x72xf32>
    %c0_1 = arith.constant 0 : index
    %c0_2 = arith.constant 0 : index
    %1 = vector.load %arg2[%c0_1, %c0_2] : memref<72x128xf32, #tpu.memory_space<vmem>>, vector<72x128xf32>
    %cst = arith.constant dense<0.000000e+00> : vector<64x128xf32>
    %2 = tpu.matmul %0, %1, %cst {dimension_numbers = #tpu.dot_dimension_numbers<[1], [0], [0], [1], [0, 0, 1, 1], [], []>} : vector<64x72xf32>, vector<72x128xf32>, vector<64x128xf32> -> vector<64x128xf32>
    %c0_3 = arith.constant 0 : index
    %c0_4 = arith.constant 0 : index
    %3 = vector.load %arg3[%c0_3, %c0_4] : memref<1x128xf32, #tpu.memory_space<vmem>>, vector<1x128xf32>
    %4 = vector.broadcast %3 : vector<1x128xf32> to vector<64x128xf32>
    %5 = arith.addf %2, %4 : vector<64x128xf32>
    %cst_5 = arith.constant 0.000000e+00 : f32
    %6 = vector.broadcast %cst_5 : f32 to vector<64x128xf32>
    %7 = arith.maximumf %5, %6 : vector<64x128xf32>
    %c0_6 = arith.constant 0 : index
    %c0_7 = arith.constant 0 : index
    %8 = vector.load %arg4[%c0_6, %c0_7] : memref<64x128xf32, #tpu.memory_space<vmem>>, vector<64x128xf32>
    tpu.vector_store %arg4[%c0_6, %c0_7], %7 {strides = array<i32>} : memref<64x128xf32, #tpu.memory_space<vmem>>, vector<64x128xf32>,
    return
  }
  func.func @transform_0(%arg0: i32) -> (i32, i32) {
    %c0_i32 = arith.constant 0 : i32
    %c0_i32_0 = arith.constant 0 : i32
    return %arg0, %c0_i32 : i32, i32
  }
  func.func @transform_1(%arg0: i32) -> (i32, i32) {
    %c0_i32 = arith.constant 0 : i32
    %c0_i32_0 = arith.constant 0 : i32
    %c0_i32_1 = arith.constant 0 : i32
    return %c0_i32, %c0_i32_0 : i32, i32
  }
  func.func @transform_2(%arg0: i32) -> (i32, i32) {
    %c0_i32 = arith.constant 0 : i32
    %c0_i32_0 = arith.constant 0 : i32
    %c0_i32_1 = arith.constant 0 : i32
    return %c0_i32, %c0_i32_0 : i32, i32
  }
  func.func @transform_3(%arg0: i32) -> (i32, i32) {
    %c0_i32 = arith.constant 0 : i32
    %c0_i32_0 = arith.constant 0 : i32
    return %arg0, %c0_i32 : i32, i32
  }
}

module attributes {stable_mosaic.version = 11 : i64} {
  func.func @kernel(%arg0: i32, %arg1: memref<64x144xf32, #tpu.memory_space<vmem>>, %arg2: memref<144x128xf32, #tpu.memory_space<vmem>>, %arg3: memref<1x128xf32, #tpu.memory_space<vmem>>, %arg4: memref<64x8xf32, #tpu.memory_space<vmem>>, %arg5: memref<8x128xf32, #tpu.memory_space<vmem>>, %arg6: memref<1x128xf32, #tpu.memory_space<vmem>>, %arg7: memref<64x128xf32, #tpu.memory_space<vmem>>) attributes {dimension_semantics = [#tpu.dimension_semantics<parallel>], iteration_bounds = array<i64: 2>, scalar_prefetch = 0 : i64, scratch_operands = 0 : i64, tpu.core_type = #tpu.core_type<tc>, window_params = [{transform_indices = @transform_0, window_bounds = array<i64: 64, 144>}, {pipeline_mode = #tpu.pipeline_mode<synchronous>, transform_indices = @transform_1, window_bounds = array<i64: 144, 128>}, {pipeline_mode = #tpu.pipeline_mode<synchronous>, transform_indices = @transform_2, window_bounds = array<i64: 1, 128>}, {transform_indices = @transform_3, window_bounds = array<i64: 64, 8>}, {pipeline_mode = #tpu.pipeline_mode<synchronous>, transform_indices = @transform_4, window_bounds = array<i64: 8, 128>}, {pipeline_mode = #tpu.pipeline_mode<synchronous>, transform_indices = @transform_5, window_bounds = array<i64: 1, 128>}, {transform_indices = @transform_6, window_bounds = array<i64: 64, 128>}]} {
    %c0 = arith.constant 0 : index
    %c0_0 = arith.constant 0 : index
    %0 = vector.load %arg1[%c0, %c0_0] : memref<64x144xf32, #tpu.memory_space<vmem>>, vector<64x144xf32>
    %c0_1 = arith.constant 0 : index
    %c0_2 = arith.constant 0 : index
    %1 = vector.load %arg2[%c0_1, %c0_2] : memref<144x128xf32, #tpu.memory_space<vmem>>, vector<144x128xf32>
    %cst = arith.constant dense<0.000000e+00> : vector<64x128xf32>
    %2 = tpu.matmul %0, %1, %cst {dimension_numbers = #tpu.dot_dimension_numbers<[1], [0], [0], [1], [0, 0, 1, 1], [], []>} : vector<64x144xf32>, vector<144x128xf32>, vector<64x128xf32> -> vector<64x128xf32>
    %c0_3 = arith.constant 0 : index
    %c0_4 = arith.constant 0 : index
    %3 = vector.load %arg3[%c0_3, %c0_4] : memref<1x128xf32, #tpu.memory_space<vmem>>, vector<1x128xf32>
    %4 = vector.broadcast %3 : vector<1x128xf32> to vector<64x128xf32>
    %5 = arith.addf %2, %4 : vector<64x128xf32>
    %c0_5 = arith.constant 0 : index
    %c0_6 = arith.constant 0 : index
    %6 = vector.load %arg4[%c0_5, %c0_6] : memref<64x8xf32, #tpu.memory_space<vmem>>, vector<64x8xf32>
    %c0_7 = arith.constant 0 : index
    %c0_8 = arith.constant 0 : index
    %7 = vector.load %arg5[%c0_7, %c0_8] : memref<8x128xf32, #tpu.memory_space<vmem>>, vector<8x128xf32>
    %cst_9 = arith.constant dense<0.000000e+00> : vector<64x128xf32>
    %8 = tpu.matmul %6, %7, %cst_9 {dimension_numbers = #tpu.dot_dimension_numbers<[1], [0], [0], [1], [0, 0, 1, 1], [], []>} : vector<64x8xf32>, vector<8x128xf32>, vector<64x128xf32> -> vector<64x128xf32>
    %c0_10 = arith.constant 0 : index
    %c0_11 = arith.constant 0 : index
    %9 = vector.load %arg6[%c0_10, %c0_11] : memref<1x128xf32, #tpu.memory_space<vmem>>, vector<1x128xf32>
    %10 = vector.broadcast %9 : vector<1x128xf32> to vector<64x128xf32>
    %11 = arith.addf %8, %10 : vector<64x128xf32>
    %12 = arith.addf %5, %11 : vector<64x128xf32>
    %cst_12 = arith.constant 0.000000e+00 : f32
    %13 = vector.broadcast %cst_12 : f32 to vector<64x128xf32>
    %14 = arith.maximumf %12, %13 : vector<64x128xf32>
    %c0_13 = arith.constant 0 : index
    %c0_14 = arith.constant 0 : index
    %15 = vector.load %arg7[%c0_13, %c0_14] : memref<64x128xf32, #tpu.memory_space<vmem>>, vector<64x128xf32>
    tpu.vector_store %arg7[%c0_13, %c0_14], %14 {strides = array<i32>} : memref<64x128xf32, #tpu.memory_space<vmem>>, vector<64x128xf32>,
    return
  }
  func.func @transform_0(%arg0: i32) -> (i32, i32) {
    %c0_i32 = arith.constant 0 : i32
    %c0_i32_0 = arith.constant 0 : i32
    return %arg0, %c0_i32 : i32, i32
  }
  func.func @transform_1(%arg0: i32) -> (i32, i32) {
    %c0_i32 = arith.constant 0 : i32
    %c0_i32_0 = arith.constant 0 : i32
    %c0_i32_1 = arith.constant 0 : i32
    return %c0_i32, %c0_i32_0 : i32, i32
  }
  func.func @transform_2(%arg0: i32) -> (i32, i32) {
    %c0_i32 = arith.constant 0 : i32
    %c0_i32_0 = arith.constant 0 : i32
    %c0_i32_1 = arith.constant 0 : i32
    return %c0_i32, %c0_i32_0 : i32, i32
  }
  func.func @transform_3(%arg0: i32) -> (i32, i32) {
    %c0_i32 = arith.constant 0 : i32
    %c0_i32_0 = arith.constant 0 : i32
    return %arg0, %c0_i32 : i32, i32
  }
  func.func @transform_4(%arg0: i32) -> (i32, i32) {
    %c0_i32 = arith.constant 0 : i32
    %c0_i32_0 = arith.constant 0 : i32
    %c0_i32_1 = arith.constant 0 : i32
    return %c0_i32, %c0_i32_0 : i32, i32
  }
  func.func @transform_5(%arg0: i32) -> (i32, i32) {
    %c0_i32 = arith.constant 0 : i32
    %c0_i32_0 = arith.constant 0 : i32
    %c0_i32_1 = arith.constant 0 : i32
    return %c0_i32, %c0_i32_0 : i32, i32
  }
  func.func @transform_6(%arg0: i32) -> (i32, i32) {
    %c0_i32 = arith.constant 0 : i32
    %c0_i32_0 = arith.constant 0 : i32
    return %arg0, %c0_i32 : i32, i32
  }
}

module attributes {stable_mosaic.version = 11 : i64} {
  func.func @kernel(%arg0: i32, %arg1: memref<32x144xf32, #tpu.memory_space<vmem>>, %arg2: memref<144x128xf32, #tpu.memory_space<vmem>>, %arg3: memref<1x128xf32, #tpu.memory_space<vmem>>, %arg4: memref<32x128xf32, #tpu.memory_space<vmem>>) attributes {dimension_semantics = [#tpu.dimension_semantics<parallel>], iteration_bounds = array<i64: 1>, scalar_prefetch = 0 : i64, scratch_operands = 0 : i64, tpu.core_type = #tpu.core_type<tc>, window_params = [{transform_indices = @transform_0, window_bounds = array<i64: 32, 144>}, {pipeline_mode = #tpu.pipeline_mode<synchronous>, transform_indices = @transform_1, window_bounds = array<i64: 144, 128>}, {pipeline_mode = #tpu.pipeline_mode<synchronous>, transform_indices = @transform_2, window_bounds = array<i64: 1, 128>}, {transform_indices = @transform_3, window_bounds = array<i64: 32, 128>}]} {
    %c0 = arith.constant 0 : index
    %c0_0 = arith.constant 0 : index
    %0 = vector.load %arg1[%c0, %c0_0] : memref<32x144xf32, #tpu.memory_space<vmem>>, vector<32x144xf32>
    %c0_1 = arith.constant 0 : index
    %c0_2 = arith.constant 0 : index
    %1 = vector.load %arg2[%c0_1, %c0_2] : memref<144x128xf32, #tpu.memory_space<vmem>>, vector<144x128xf32>
    %cst = arith.constant dense<0.000000e+00> : vector<32x128xf32>
    %2 = tpu.matmul %0, %1, %cst {dimension_numbers = #tpu.dot_dimension_numbers<[1], [0], [0], [1], [0, 0, 1, 1], [], []>} : vector<32x144xf32>, vector<144x128xf32>, vector<32x128xf32> -> vector<32x128xf32>
    %c0_3 = arith.constant 0 : index
    %c0_4 = arith.constant 0 : index
    %3 = vector.load %arg3[%c0_3, %c0_4] : memref<1x128xf32, #tpu.memory_space<vmem>>, vector<1x128xf32>
    %4 = vector.broadcast %3 : vector<1x128xf32> to vector<32x128xf32>
    %5 = arith.addf %2, %4 : vector<32x128xf32>
    %cst_5 = arith.constant 0.000000e+00 : f32
    %6 = vector.broadcast %cst_5 : f32 to vector<32x128xf32>
    %7 = arith.maximumf %5, %6 : vector<32x128xf32>
    %c0_6 = arith.constant 0 : index
    %c0_7 = arith.constant 0 : index
    %8 = vector.load %arg4[%c0_6, %c0_7] : memref<32x128xf32, #tpu.memory_space<vmem>>, vector<32x128xf32>
    tpu.vector_store %arg4[%c0_6, %c0_7], %7 {strides = array<i32>} : memref<32x128xf32, #tpu.memory_space<vmem>>, vector<32x128xf32>,
    return
  }
  func.func @transform_0(%arg0: i32) -> (i32, i32) {
    %c0_i32 = arith.constant 0 : i32
    %c0_i32_0 = arith.constant 0 : i32
    return %arg0, %c0_i32 : i32, i32
  }
  func.func @transform_1(%arg0: i32) -> (i32, i32) {
    %c0_i32 = arith.constant 0 : i32
    %c0_i32_0 = arith.constant 0 : i32
    %c0_i32_1 = arith.constant 0 : i32
    return %c0_i32, %c0_i32_0 : i32, i32
  }
  func.func @transform_2(%arg0: i32) -> (i32, i32) {
    %c0_i32 = arith.constant 0 : i32
    %c0_i32_0 = arith.constant 0 : i32
    %c0_i32_1 = arith.constant 0 : i32
    return %c0_i32, %c0_i32_0 : i32, i32
  }
  func.func @transform_3(%arg0: i32) -> (i32, i32) {
    %c0_i32 = arith.constant 0 : i32
    %c0_i32_0 = arith.constant 0 : i32
    return %arg0, %c0_i32 : i32, i32
  }
}

module attributes {stable_mosaic.version = 11 : i64} {
  func.func @kernel(%arg0: i32, %arg1: memref<32x288xf32, #tpu.memory_space<vmem>>, %arg2: memref<288x128xf32, #tpu.memory_space<vmem>>, %arg3: memref<1x128xf32, #tpu.memory_space<vmem>>, %arg4: memref<32x16xf32, #tpu.memory_space<vmem>>, %arg5: memref<16x128xf32, #tpu.memory_space<vmem>>, %arg6: memref<1x128xf32, #tpu.memory_space<vmem>>, %arg7: memref<32x128xf32, #tpu.memory_space<vmem>>) attributes {dimension_semantics = [#tpu.dimension_semantics<parallel>], iteration_bounds = array<i64: 1>, scalar_prefetch = 0 : i64, scratch_operands = 0 : i64, tpu.core_type = #tpu.core_type<tc>, window_params = [{transform_indices = @transform_0, window_bounds = array<i64: 32, 288>}, {pipeline_mode = #tpu.pipeline_mode<synchronous>, transform_indices = @transform_1, window_bounds = array<i64: 288, 128>}, {pipeline_mode = #tpu.pipeline_mode<synchronous>, transform_indices = @transform_2, window_bounds = array<i64: 1, 128>}, {transform_indices = @transform_3, window_bounds = array<i64: 32, 16>}, {pipeline_mode = #tpu.pipeline_mode<synchronous>, transform_indices = @transform_4, window_bounds = array<i64: 16, 128>}, {pipeline_mode = #tpu.pipeline_mode<synchronous>, transform_indices = @transform_5, window_bounds = array<i64: 1, 128>}, {transform_indices = @transform_6, window_bounds = array<i64: 32, 128>}]} {
    %c0 = arith.constant 0 : index
    %c0_0 = arith.constant 0 : index
    %0 = vector.load %arg1[%c0, %c0_0] : memref<32x288xf32, #tpu.memory_space<vmem>>, vector<32x288xf32>
    %c0_1 = arith.constant 0 : index
    %c0_2 = arith.constant 0 : index
    %1 = vector.load %arg2[%c0_1, %c0_2] : memref<288x128xf32, #tpu.memory_space<vmem>>, vector<288x128xf32>
    %cst = arith.constant dense<0.000000e+00> : vector<32x128xf32>
    %2 = tpu.matmul %0, %1, %cst {dimension_numbers = #tpu.dot_dimension_numbers<[1], [0], [0], [1], [0, 0, 1, 1], [], []>} : vector<32x288xf32>, vector<288x128xf32>, vector<32x128xf32> -> vector<32x128xf32>
    %c0_3 = arith.constant 0 : index
    %c0_4 = arith.constant 0 : index
    %3 = vector.load %arg3[%c0_3, %c0_4] : memref<1x128xf32, #tpu.memory_space<vmem>>, vector<1x128xf32>
    %4 = vector.broadcast %3 : vector<1x128xf32> to vector<32x128xf32>
    %5 = arith.addf %2, %4 : vector<32x128xf32>
    %c0_5 = arith.constant 0 : index
    %c0_6 = arith.constant 0 : index
    %6 = vector.load %arg4[%c0_5, %c0_6] : memref<32x16xf32, #tpu.memory_space<vmem>>, vector<32x16xf32>
    %c0_7 = arith.constant 0 : index
    %c0_8 = arith.constant 0 : index
    %7 = vector.load %arg5[%c0_7, %c0_8] : memref<16x128xf32, #tpu.memory_space<vmem>>, vector<16x128xf32>
    %cst_9 = arith.constant dense<0.000000e+00> : vector<32x128xf32>
    %8 = tpu.matmul %6, %7, %cst_9 {dimension_numbers = #tpu.dot_dimension_numbers<[1], [0], [0], [1], [0, 0, 1, 1], [], []>} : vector<32x16xf32>, vector<16x128xf32>, vector<32x128xf32> -> vector<32x128xf32>
    %c0_10 = arith.constant 0 : index
    %c0_11 = arith.constant 0 : index
    %9 = vector.load %arg6[%c0_10, %c0_11] : memref<1x128xf32, #tpu.memory_space<vmem>>, vector<1x128xf32>
    %10 = vector.broadcast %9 : vector<1x128xf32> to vector<32x128xf32>
    %11 = arith.addf %8, %10 : vector<32x128xf32>
    %12 = arith.addf %5, %11 : vector<32x128xf32>
    %cst_12 = arith.constant 0.000000e+00 : f32
    %13 = vector.broadcast %cst_12 : f32 to vector<32x128xf32>
    %14 = arith.maximumf %12, %13 : vector<32x128xf32>
    %c0_13 = arith.constant 0 : index
    %c0_14 = arith.constant 0 : index
    %15 = vector.load %arg7[%c0_13, %c0_14] : memref<32x128xf32, #tpu.memory_space<vmem>>, vector<32x128xf32>
    tpu.vector_store %arg7[%c0_13, %c0_14], %14 {strides = array<i32>} : memref<32x128xf32, #tpu.memory_space<vmem>>, vector<32x128xf32>,
    return
  }
  func.func @transform_0(%arg0: i32) -> (i32, i32) {
    %c0_i32 = arith.constant 0 : i32
    %c0_i32_0 = arith.constant 0 : i32
    return %arg0, %c0_i32 : i32, i32
  }
  func.func @transform_1(%arg0: i32) -> (i32, i32) {
    %c0_i32 = arith.constant 0 : i32
    %c0_i32_0 = arith.constant 0 : i32
    %c0_i32_1 = arith.constant 0 : i32
    return %c0_i32, %c0_i32_0 : i32, i32
  }
  func.func @transform_2(%arg0: i32) -> (i32, i32) {
    %c0_i32 = arith.constant 0 : i32
    %c0_i32_0 = arith.constant 0 : i32
    %c0_i32_1 = arith.constant 0 : i32
    return %c0_i32, %c0_i32_0 : i32, i32
  }
  func.func @transform_3(%arg0: i32) -> (i32, i32) {
    %c0_i32 = arith.constant 0 : i32
    %c0_i32_0 = arith.constant 0 : i32
    return %arg0, %c0_i32 : i32, i32
  }
  func.func @transform_4(%arg0: i32) -> (i32, i32) {
    %c0_i32 = arith.constant 0 : i32
    %c0_i32_0 = arith.constant 0 : i32
    %c0_i32_1 = arith.constant 0 : i32
    return %c0_i32, %c0_i32_0 : i32, i32
  }
  func.func @transform_5(%arg0: i32) -> (i32, i32) {
    %c0_i32 = arith.constant 0 : i32
    %c0_i32_0 = arith.constant 0 : i32
    %c0_i32_1 = arith.constant 0 : i32
    return %c0_i32, %c0_i32_0 : i32, i32
  }
  func.func @transform_6(%arg0: i32) -> (i32, i32) {
    %c0_i32 = arith.constant 0 : i32
    %c0_i32_0 = arith.constant 0 : i32
    return %arg0, %c0_i32 : i32, i32
  }
}

module attributes {stable_mosaic.version = 11 : i64} {
  func.func @kernel(%arg0: i32, %arg1: memref<8x288xf32, #tpu.memory_space<vmem>>, %arg2: memref<288x128xf32, #tpu.memory_space<vmem>>, %arg3: memref<1x128xf32, #tpu.memory_space<vmem>>, %arg4: memref<8x128xf32, #tpu.memory_space<vmem>>) attributes {dimension_semantics = [#tpu.dimension_semantics<parallel>], iteration_bounds = array<i64: 1>, scalar_prefetch = 0 : i64, scratch_operands = 0 : i64, tpu.core_type = #tpu.core_type<tc>, window_params = [{transform_indices = @transform_0, window_bounds = array<i64: 8, 288>}, {pipeline_mode = #tpu.pipeline_mode<synchronous>, transform_indices = @transform_1, window_bounds = array<i64: 288, 128>}, {pipeline_mode = #tpu.pipeline_mode<synchronous>, transform_indices = @transform_2, window_bounds = array<i64: 1, 128>}, {transform_indices = @transform_3, window_bounds = array<i64: 8, 128>}]} {
    %c0 = arith.constant 0 : index
    %c0_0 = arith.constant 0 : index
    %0 = vector.load %arg1[%c0, %c0_0] : memref<8x288xf32, #tpu.memory_space<vmem>>, vector<8x288xf32>
    %c0_1 = arith.constant 0 : index
    %c0_2 = arith.constant 0 : index
    %1 = vector.load %arg2[%c0_1, %c0_2] : memref<288x128xf32, #tpu.memory_space<vmem>>, vector<288x128xf32>
    %cst = arith.constant dense<0.000000e+00> : vector<8x128xf32>
    %2 = tpu.matmul %0, %1, %cst {dimension_numbers = #tpu.dot_dimension_numbers<[1], [0], [0], [1], [0, 0, 1, 1], [], []>} : vector<8x288xf32>, vector<288x128xf32>, vector<8x128xf32> -> vector<8x128xf32>
    %c0_3 = arith.constant 0 : index
    %c0_4 = arith.constant 0 : index
    %3 = vector.load %arg3[%c0_3, %c0_4] : memref<1x128xf32, #tpu.memory_space<vmem>>, vector<1x128xf32>
    %4 = vector.broadcast %3 : vector<1x128xf32> to vector<8x128xf32>
    %5 = arith.addf %2, %4 : vector<8x128xf32>
    %cst_5 = arith.constant 0.000000e+00 : f32
    %6 = vector.broadcast %cst_5 : f32 to vector<8x128xf32>
    %7 = arith.maximumf %5, %6 : vector<8x128xf32>
    %c0_6 = arith.constant 0 : index
    %c0_7 = arith.constant 0 : index
    %8 = vector.load %arg4[%c0_6, %c0_7] : memref<8x128xf32, #tpu.memory_space<vmem>>, vector<8x128xf32>
    tpu.vector_store %arg4[%c0_6, %c0_7], %7 {strides = array<i32>} : memref<8x128xf32, #tpu.memory_space<vmem>>, vector<8x128xf32>,
    return
  }
  func.func @transform_0(%arg0: i32) -> (i32, i32) {
    %c0_i32 = arith.constant 0 : i32
    %c0_i32_0 = arith.constant 0 : i32
    return %arg0, %c0_i32 : i32, i32
  }
  func.func @transform_1(%arg0: i32) -> (i32, i32) {
    %c0_i32 = arith.constant 0 : i32
    %c0_i32_0 = arith.constant 0 : i32
    %c0_i32_1 = arith.constant 0 : i32
    return %c0_i32, %c0_i32_0 : i32, i32
  }
  func.func @transform_2(%arg0: i32) -> (i32, i32) {
    %c0_i32 = arith.constant 0 : i32
    %c0_i32_0 = arith.constant 0 : i32
    %c0_i32_1 = arith.constant 0 : i32
    return %c0_i32, %c0_i32_0 : i32, i32
  }
  func.func @transform_3(%arg0: i32) -> (i32, i32) {
    %c0_i32 = arith.constant 0 : i32
    %c0_i32_0 = arith.constant 0 : i32
    return %arg0, %c0_i32 : i32, i32
  }
}

module attributes {stable_mosaic.version = 11 : i64} {
  func.func @kernel(%arg0: i32, %arg1: memref<8x576xf32, #tpu.memory_space<vmem>>, %arg2: memref<576x128xf32, #tpu.memory_space<vmem>>, %arg3: memref<1x128xf32, #tpu.memory_space<vmem>>, %arg4: memref<8x32xf32, #tpu.memory_space<vmem>>, %arg5: memref<32x128xf32, #tpu.memory_space<vmem>>, %arg6: memref<1x128xf32, #tpu.memory_space<vmem>>, %arg7: memref<8x128xf32, #tpu.memory_space<vmem>>) attributes {dimension_semantics = [#tpu.dimension_semantics<parallel>], iteration_bounds = array<i64: 1>, scalar_prefetch = 0 : i64, scratch_operands = 0 : i64, tpu.core_type = #tpu.core_type<tc>, window_params = [{transform_indices = @transform_0, window_bounds = array<i64: 8, 576>}, {pipeline_mode = #tpu.pipeline_mode<synchronous>, transform_indices = @transform_1, window_bounds = array<i64: 576, 128>}, {pipeline_mode = #tpu.pipeline_mode<synchronous>, transform_indices = @transform_2, window_bounds = array<i64: 1, 128>}, {transform_indices = @transform_3, window_bounds = array<i64: 8, 32>}, {pipeline_mode = #tpu.pipeline_mode<synchronous>, transform_indices = @transform_4, window_bounds = array<i64: 32, 128>}, {pipeline_mode = #tpu.pipeline_mode<synchronous>, transform_indices = @transform_5, window_bounds = array<i64: 1, 128>}, {transform_indices = @transform_6, window_bounds = array<i64: 8, 128>}]} {
    %c0 = arith.constant 0 : index
    %c0_0 = arith.constant 0 : index
    %0 = vector.load %arg1[%c0, %c0_0] : memref<8x576xf32, #tpu.memory_space<vmem>>, vector<8x576xf32>
    %c0_1 = arith.constant 0 : index
    %c0_2 = arith.constant 0 : index
    %1 = vector.load %arg2[%c0_1, %c0_2] : memref<576x128xf32, #tpu.memory_space<vmem>>, vector<576x128xf32>
    %cst = arith.constant dense<0.000000e+00> : vector<8x128xf32>
    %2 = tpu.matmul %0, %1, %cst {dimension_numbers = #tpu.dot_dimension_numbers<[1], [0], [0], [1], [0, 0, 1, 1], [], []>} : vector<8x576xf32>, vector<576x128xf32>, vector<8x128xf32> -> vector<8x128xf32>
    %c0_3 = arith.constant 0 : index
    %c0_4 = arith.constant 0 : index
    %3 = vector.load %arg3[%c0_3, %c0_4] : memref<1x128xf32, #tpu.memory_space<vmem>>, vector<1x128xf32>
    %4 = vector.broadcast %3 : vector<1x128xf32> to vector<8x128xf32>
    %5 = arith.addf %2, %4 : vector<8x128xf32>
    %c0_5 = arith.constant 0 : index
    %c0_6 = arith.constant 0 : index
    %6 = vector.load %arg4[%c0_5, %c0_6] : memref<8x32xf32, #tpu.memory_space<vmem>>, vector<8x32xf32>
    %c0_7 = arith.constant 0 : index
    %c0_8 = arith.constant 0 : index
    %7 = vector.load %arg5[%c0_7, %c0_8] : memref<32x128xf32, #tpu.memory_space<vmem>>, vector<32x128xf32>
    %cst_9 = arith.constant dense<0.000000e+00> : vector<8x128xf32>
    %8 = tpu.matmul %6, %7, %cst_9 {dimension_numbers = #tpu.dot_dimension_numbers<[1], [0], [0], [1], [0, 0, 1, 1], [], []>} : vector<8x32xf32>, vector<32x128xf32>, vector<8x128xf32> -> vector<8x128xf32>
    %c0_10 = arith.constant 0 : index
    %c0_11 = arith.constant 0 : index
    %9 = vector.load %arg6[%c0_10, %c0_11] : memref<1x128xf32, #tpu.memory_space<vmem>>, vector<1x128xf32>
    %10 = vector.broadcast %9 : vector<1x128xf32> to vector<8x128xf32>
    %11 = arith.addf %8, %10 : vector<8x128xf32>
    %12 = arith.addf %5, %11 : vector<8x128xf32>
    %cst_12 = arith.constant 0.000000e+00 : f32
    %13 = vector.broadcast %cst_12 : f32 to vector<8x128xf32>
    %14 = arith.maximumf %12, %13 : vector<8x128xf32>
    %c0_13 = arith.constant 0 : index
    %c0_14 = arith.constant 0 : index
    %15 = vector.load %arg7[%c0_13, %c0_14] : memref<8x128xf32, #tpu.memory_space<vmem>>, vector<8x128xf32>
    tpu.vector_store %arg7[%c0_13, %c0_14], %14 {strides = array<i32>} : memref<8x128xf32, #tpu.memory_space<vmem>>, vector<8x128xf32>,
    return
  }
  func.func @transform_0(%arg0: i32) -> (i32, i32) {
    %c0_i32 = arith.constant 0 : i32
    %c0_i32_0 = arith.constant 0 : i32
    return %arg0, %c0_i32 : i32, i32
  }
  func.func @transform_1(%arg0: i32) -> (i32, i32) {
    %c0_i32 = arith.constant 0 : i32
    %c0_i32_0 = arith.constant 0 : i32
    %c0_i32_1 = arith.constant 0 : i32
    return %c0_i32, %c0_i32_0 : i32, i32
  }
  func.func @transform_2(%arg0: i32) -> (i32, i32) {
    %c0_i32 = arith.constant 0 : i32
    %c0_i32_0 = arith.constant 0 : i32
    %c0_i32_1 = arith.constant 0 : i32
    return %c0_i32, %c0_i32_0 : i32, i32
  }
  func.func @transform_3(%arg0: i32) -> (i32, i32) {
    %c0_i32 = arith.constant 0 : i32
    %c0_i32_0 = arith.constant 0 : i32
    return %arg0, %c0_i32 : i32, i32
  }
  func.func @transform_4(%arg0: i32) -> (i32, i32) {
    %c0_i32 = arith.constant 0 : i32
    %c0_i32_0 = arith.constant 0 : i32
    %c0_i32_1 = arith.constant 0 : i32
    return %c0_i32, %c0_i32_0 : i32, i32
  }
  func.func @transform_5(%arg0: i32) -> (i32, i32) {
    %c0_i32 = arith.constant 0 : i32
    %c0_i32_0 = arith.constant 0 : i32
    %c0_i32_1 = arith.constant 0 : i32
    return %c0_i32, %c0_i32_0 : i32, i32
  }
  func.func @transform_6(%arg0: i32) -> (i32, i32) {
    %c0_i32 = arith.constant 0 : i32
    %c0_i32_0 = arith.constant 0 : i32
    return %arg0, %c0_i32 : i32, i32
  }
}

module attributes {stable_mosaic.version = 11 : i64} {
  func.func @_gap_fc_kernel(%arg0: i32, %arg1: memref<2x8xf32, #tpu.memory_space<vmem>>, %arg2: memref<8x128xf32, #tpu.memory_space<vmem>>, %arg3: memref<128x128xf32, #tpu.memory_space<vmem>>, %arg4: memref<1x128xf32, #tpu.memory_space<vmem>>, %arg5: memref<2x128xf32, #tpu.memory_space<vmem>>) attributes {dimension_semantics = [#tpu.dimension_semantics<arbitrary>], iteration_bounds = array<i64: 1>, scalar_prefetch = 0 : i64, scratch_operands = 0 : i64, tpu.core_type = #tpu.core_type<tc>, window_params = [{pipeline_mode = #tpu.pipeline_mode<synchronous>, transform_indices = @transform_0, window_bounds = array<i64: 2, 8>}, {pipeline_mode = #tpu.pipeline_mode<synchronous>, transform_indices = @transform_1, window_bounds = array<i64: 8, 128>}, {pipeline_mode = #tpu.pipeline_mode<synchronous>, transform_indices = @transform_2, window_bounds = array<i64: 128, 128>}, {pipeline_mode = #tpu.pipeline_mode<synchronous>, transform_indices = @transform_3, window_bounds = array<i64: 1, 128>}, {pipeline_mode = #tpu.pipeline_mode<synchronous>, transform_indices = @transform_4, window_bounds = array<i64: 2, 128>}]} {
    %c0 = arith.constant 0 : index
    %c0_0 = arith.constant 0 : index
    %0 = vector.load %arg1[%c0, %c0_0] : memref<2x8xf32, #tpu.memory_space<vmem>>, vector<2x8xf32>
    %c0_1 = arith.constant 0 : index
    %c0_2 = arith.constant 0 : index
    %1 = vector.load %arg2[%c0_1, %c0_2] : memref<8x128xf32, #tpu.memory_space<vmem>>, vector<8x128xf32>
    %cst = arith.constant dense<0.000000e+00> : vector<2x128xf32>
    %2 = tpu.matmul %0, %1, %cst {dimension_numbers = #tpu.dot_dimension_numbers<[1], [0], [0], [1], [0, 0, 1, 1], [], []>} : vector<2x8xf32>, vector<8x128xf32>, vector<2x128xf32> -> vector<2x128xf32>
    %c0_3 = arith.constant 0 : index
    %c0_4 = arith.constant 0 : index
    %3 = vector.load %arg3[%c0_3, %c0_4] : memref<128x128xf32, #tpu.memory_space<vmem>>, vector<128x128xf32>
    %cst_5 = arith.constant dense<0.000000e+00> : vector<2x128xf32>
    %4 = tpu.matmul %2, %3, %cst_5 {dimension_numbers = #tpu.dot_dimension_numbers<[1], [0], [0], [1], [0, 0, 1, 1], [], []>} : vector<2x128xf32>, vector<128x128xf32>, vector<2x128xf32> -> vector<2x128xf32>
    %c0_6 = arith.constant 0 : index
    %c0_7 = arith.constant 0 : index
    %5 = vector.load %arg4[%c0_6, %c0_7] : memref<1x128xf32, #tpu.memory_space<vmem>>, vector<1x128xf32>
    %6 = vector.broadcast %5 : vector<1x128xf32> to vector<2x128xf32>
    %7 = arith.addf %4, %6 : vector<2x128xf32>
    %c0_8 = arith.constant 0 : index
    %c0_9 = arith.constant 0 : index
    %8 = vector.load %arg5[%c0_8, %c0_9] : memref<2x128xf32, #tpu.memory_space<vmem>>, vector<2x128xf32>
    tpu.vector_store %arg5[%c0_8, %c0_9], %7 {strides = array<i32>} : memref<2x128xf32, #tpu.memory_space<vmem>>, vector<2x128xf32>,
    return
  }
  func.func @transform_0(%arg0: i32) -> (i32, i32) {
    %c0_i32 = arith.constant 0 : i32
    %c0_i32_0 = arith.constant 0 : i32
    %c0_i32_1 = arith.constant 0 : i32
    return %c0_i32, %c0_i32_0 : i32, i32
  }
  func.func @transform_1(%arg0: i32) -> (i32, i32) {
    %c0_i32 = arith.constant 0 : i32
    %c0_i32_0 = arith.constant 0 : i32
    %c0_i32_1 = arith.constant 0 : i32
    return %c0_i32, %c0_i32_0 : i32, i32
  }
  func.func @transform_2(%arg0: i32) -> (i32, i32) {
    %c0_i32 = arith.constant 0 : i32
    %c0_i32_0 = arith.constant 0 : i32
    %c0_i32_1 = arith.constant 0 : i32
    return %c0_i32, %c0_i32_0 : i32, i32
  }
  func.func @transform_3(%arg0: i32) -> (i32, i32) {
    %c0_i32 = arith.constant 0 : i32
    %c0_i32_0 = arith.constant 0 : i32
    %c0_i32_1 = arith.constant 0 : i32
    return %c0_i32, %c0_i32_0 : i32, i32
  }
  func.func @transform_4(%arg0: i32) -> (i32, i32) {
    %c0_i32 = arith.constant 0 : i32
    %c0_i32_0 = arith.constant 0 : i32
    %c0_i32_1 = arith.constant 0 : i32
    return %c0_i32, %c0_i32_0 : i32, i32
  }
}

</mosaic_0001>

<bundles_post_ra>
// kernel: _lambda_.10
= control target key start
LH: loop header
LB: loop body
LE: loop exit
PB: predicated region body
PF: predicated region fallthrough
CT: control target
= control target key end

     0   :  { %s854_s12 = smov 0   ;;  %s1034_s0 = inlined_call_operand.vmem [shape: f32[512,36], index: 0, kind: input, shape index: {}]   ;;  %s1035_s1 = inlined_call_operand.vmem [shape: f32[36,128], index: 1, kind: input, shape index: {}]   ;;  %s1036_s2 = inlined_call_operand.vmem [shape: f32[1,128], index: 2, kind: input, shape index: {}]   ;;  %s1037_s3 = inlined_call_operand.vmem [shape: f32[512,128], index: 3, kind: output, shape index: {}]  }
   0x1 LB: > { %s664_s13 = sadd.s32 4294967295, %s832_s12   ;;  %p668_p0 = scmp.ge.s32.totalorder %s832_s12, 1  ;;  %s832_s12 = sphi %s854_s12, %s13_s12  }
   0x2   : > { %p138_p1 = scmp.lt.s32.totalorder %s832_s12, 3 }
   0x4   : > { %p139_p2 = pnand %p668_p0, %p138_p1 }
   0x5   : > { %v206_v0 = vld [vmem:[%s1035_s1] sm:$0xff] (!%p139_p2)  ;;  %v207_v1 = vld [vmem:[%s1035_s1 + $0x8] sm:$0xff] (!%p139_p2)  ;;  %v208_v2 = vld [vmem:[%s1035_s1 + $0x10] sm:$0xff] (!%p139_p2)  ;;  %s669_s20 = sshll.u32 (!%p139_p2), %s664_s13, 5  ;;  %vm315_vm0 = vcmask (!%p139_p2), 1043456   ;;  %vm218_vm1 = vcmask (!%p139_p2), 293888  }
   0x6   : > { %142 = sbr.rel (%p139_p2) target bundleno = 265 (0x109), region = 32  ;;  %v804_v3 = vpack.c.bf16 (!%p139_p2), %v207_v1, %v206_v0  ;;  %v209_v4 = vld [vmem:[%s1035_s1 + $0x18] sm:$0xff] (!%p139_p2)  ;;  %p163_p3 = scmp.lt.s32.totalorder (!%p139_p2), %s669_s20, 63  ;;  %v210_v6 = vld [vmem:[%s1035_s1 + $0x20] sm:$0xf] (!%p139_p2) }
   0x7   : > { %v808_v5 = vpack.c.bf16 (!%p139_p2), %v209_v4, %v208_v2  ;;  %v958_v39 = vld [vmem:[%s1036_s2] ss:$0 sm:$0xff] (!%p139_p2) }
   0x8   : > { %805 = vmatprep.subr.bf16.mxu0 (!%p139_p2), %v804_v3  ;;  %812 = vmatprep.subr.bf16.mxu1 (!%p139_p2), %v804_v3 }
   0x9   : > { %807 = vmatpush3.bf16.msra.mxu0 (!%p139_p2), %v804_v3  ;;  %815 = vmatpush3.bf16.msra.mxu1 (!%p139_p2), %v804_v3 }
   0xa   : > { %809 = vmatprep.subr.bf16.mxu0 (!%p139_p2), %v808_v5  ;;  %813 = vmatprep.subr.bf16.mxu1 (!%p139_p2), %v808_v5 }
   0xd   : > { %s1039_s20 = smov (!%p163_p3, %s669_s20), 63  ;;  %811 = vmatpush3.bf16.msra.mxu0 %v808_v5  ;;  %816 = vmatpush3.bf16.msra.mxu1 %v808_v5 }
   0xe   : > { %s670_s23 = sshll.u32 %s1039_s20, 3  ;;  %754 = vmatprep.subr.msk.mxu0 %vm315_vm0, %v210_v6  ;;  %814 = vmatprep.subr.msk.mxu1 %vm315_vm0, %v210_v6 }
   0xf   : > { %s885_s28 = scalar_lea.vmem %s1034_s0, %s670_s23  ;;  %s967_s6 = scalar_lea.vmem %s1037_s3, %s670_s23 }
  0x10   : > { %v174_v7 = vld [vmem:[%s885_s28] sm:$0xff]  ;;  %v175_v9 = vld [vmem:[%s885_s28 + $0x8] sm:$0xff]  ;;  %v176_v11 = vld [vmem:[%s885_s28 + $0x10] sm:$0xff] }
  0x11   : > { %v190_v8 = vld [vmem:[%s885_s28 + $0x80] sm:$0xff]  ;;  %756 = vmatprep.mubr.msk.f32.mxu0 %vm218_vm1, %v174_v7  ;;  %v191_v10 = vld [vmem:[%s885_s28 + $0x88] sm:$0xff]  ;;  %v192_v12 = vld [vmem:[%s885_s28 + $0x90] sm:$0xff]  ;;  %755 = vmatpush3.msk.msra.mxu0 %vm315_vm0, %v210_v6 }
  0x12   : > { %780 = vmatprep.mubr.msk.f32.mxu1 %vm218_vm1, %v190_v8  ;;  %817 = vmatpush3.msk.msra.mxu1 %vm315_vm0, %v210_v6  ;;  %v177_v13 = vld [vmem:[%s885_s28 + $0x18] sm:$0xff]  ;;  %v178_v15 = vld [vmem:[%s885_s28 + $0x20] sm:$0xff]  ;;  %v179_v17 = vld [vmem:[%s885_s28 + $0x28] sm:$0xff] }
  0x13   : > { %757 = vmatmul.mubr.msk.f32.vlgmr.msra.gmra.mrb[0].mxu0 %vm218_vm1, %v175_v9  ;;  %781 = vmatmul.mubr.msk.f32.vlgmr.msra.gmra.mrb[0].mxu1 %vm218_vm1, %v191_v10  ;;  %v193_v14 = vld [vmem:[%s885_s28 + $0x98] sm:$0xff]  ;;  %v194_v16 = vld [vmem:[%s885_s28 + $0xa0] sm:$0xff]  ;;  %v195_v18 = vld [vmem:[%s885_s28 + $0xa8] sm:$0xff] }
  0x14   : > { %759 = vmatprep.mubr.msk.f32.mxu0 %vm218_vm1, %v176_v11  ;;  %783 = vmatprep.mubr.msk.f32.mxu1 %vm218_vm1, %v192_v12  ;;  %v180_v19 = vld [vmem:[%s885_s28 + $0x30] sm:$0xff]  ;;  %v181_v21 = vld [vmem:[%s885_s28 + $0x38] sm:$0xff]  ;;  %v182_v23 = vld [vmem:[%s885_s28 + $0x40] sm:$0xff] }
  0x15   : > { %v196_v20 = vld [vmem:[%s885_s28 + $0xb0] sm:$0xff]  ;;  %v197_v22 = vld [vmem:[%s885_s28 + $0xb8] sm:$0xff]  ;;  %v198_v24 = vld [vmem:[%s885_s28 + $0xc0] sm:$0xff] }
  0x16   : > { %v183_v25 = vld [vmem:[%s885_s28 + $0x48] sm:$0xff]  ;;  %v184_v27 = vld [vmem:[%s885_s28 + $0x50] sm:$0xff]  ;;  %v185_v29 = vld [vmem:[%s885_s28 + $0x58] sm:$0xff] }
  0x17   : > { %760 = vmatmul.mubr.msk.f32.gmra.mrb[2].mxu0 %vm218_vm1, %v177_v13  ;;  %784 = vmatmul.mubr.msk.f32.gmra.mrb[2].mxu1 %vm218_vm1, %v193_v14  ;;  %v199_v26 = vld [vmem:[%s885_s28 + $0xc8] sm:$0xff]  ;;  %v200_v28 = vld [vmem:[%s885_s28 + $0xd0] sm:$0xff]  ;;  %v201_v30 = vld [vmem:[%s885_s28 + $0xd8] sm:$0xff] }
  0x18   : > { %762 = vmatprep.mubr.msk.f32.mxu0 %vm218_vm1, %v178_v15  ;;  %786 = vmatprep.mubr.msk.f32.mxu1 %vm218_vm1, %v194_v16  ;;  %v186_v31 = vld [vmem:[%s885_s28 + $0x60] sm:$0xff]  ;;  %v187_v33 = vld [vmem:[%s885_s28 + $0x68] sm:$0xff]  ;;  %v188_v35 = vld [vmem:[%s885_s28 + $0x70] sm:$0xff] }
  0x19   : > { %v202_v32 = vld [vmem:[%s885_s28 + $0xe0] sm:$0xff]  ;;  %v203_v34 = vld [vmem:[%s885_s28 + $0xe8] sm:$0xff]  ;;  %v204_v36 = vld [vmem:[%s885_s28 + $0xf0] sm:$0xff] }
  0x1a   : > { %v189_v37 = vld [vmem:[%s885_s28 + $0x78] sm:$0xff] }
  0x1b   : > { %763 = vmatmul.mubr.msk.f32.gmra.mrb[4].mxu0 %vm218_vm1, %v179_v17  ;;  %787 = vmatmul.mubr.msk.f32.gmra.mrb[4].mxu1 %vm218_vm1, %v195_v18  ;;  %v205_v38 = vld [vmem:[%s885_s28 + $0xf8] sm:$0xff] }
  0x1c   : > { %765 = vmatprep.mubr.msk.f32.mxu0 %vm218_vm1, %v180_v19  ;;  %789 = vmatprep.mubr.msk.f32.mxu1 %vm218_vm1, %v196_v20 }
  0x1f   : > { %766 = vmatmul.mubr.msk.f32.gmra.mrb[6].mxu0 %vm218_vm1, %v181_v21  ;;  %790 = vmatmul.mubr.msk.f32.gmra.mrb[6].mxu1 %vm218_vm1, %v197_v22 }
  0x20   : > { %768 = vmatprep.mubr.msk.f32.mxu0 %vm218_vm1, %v182_v23  ;;  %792 = vmatprep.mubr.msk.f32.mxu1 %vm218_vm1, %v198_v24 }
  0x23   : > { %769 = vmatmul.mubr.msk.f32.gmra.mrb[8].mxu0 %vm218_vm1, %v183_v25  ;;  %793 = vmatmul.mubr.msk.f32.gmra.mrb[8].mxu1 %vm218_vm1, %v199_v26 }
  0x24   : > { %771 = vmatprep.mubr.msk.f32.mxu0 %vm218_vm1, %v184_v27  ;;  %795 = vmatprep.mubr.msk.f32.mxu1 %vm218_vm1, %v200_v28 }
  0x27   : > { %772 = vmatmul.mubr.msk.f32.gmra.mrb[10].mxu0 %vm218_vm1, %v185_v29  ;;  %796 = vmatmul.mubr.msk.f32.gmra.mrb[10].mxu1 %vm218_vm1, %v201_v30 }
  0x28   : > { %774 = vmatprep.mubr.msk.f32.mxu0 %vm218_vm1, %v186_v31  ;;  %798 = vmatprep.mubr.msk.f32.mxu1 %vm218_vm1, %v202_v32 }
  0x2b   : > { %775 = vmatmul.mubr.msk.f32.gmra.mrb[12].mxu0 %vm218_vm1, %v187_v33  ;;  %799 = vmatmul.mubr.msk.f32.gmra.mrb[12].mxu1 %vm218_vm1, %v203_v34 }
  0x2c   : > { %777 = vmatprep.mubr.msk.f32.mxu0 %vm218_vm1, %v188_v35  ;;  %801 = vmatprep.mubr.msk.f32.mxu1 %vm218_vm1, %v204_v36 }
  0x2f   : > { %778 = vmatmul.mubr.msk.f32.gmra.mrb[14].mxu0 %vm218_vm1, %v189_v37  ;;  %802 = vmatmul.mubr.msk.f32.gmra.mrb[14].mxu1 %vm218_vm1, %v205_v38 }
  0xe6   : > { %v758_v40 = vpop.f32.mrb[0].mxu0  ;;  %v782_v41 = vpop.f32.mrb[0].mxu1 }
  0xe7   : > { %v391_v42 = vadd.f32 %v758_v40, %v958_v39  ;;  %v471_v43 = vadd.f32 %v782_v41, %v958_v39  ;;  %v385_v44 = vpop.f32.mrb[1].mxu0  ;;  %v465_v45 = vpop.f32.mrb[1].mxu1 }
  0xe8   : > { %v386_v46 = vadd.f32 %v958_v39, %v385_v44  ;;  %v466_v47 = vadd.f32 %v958_v39, %v465_v45 }
  0xe9   : > { %v545_v48 = vmax.f32 %v391_v42, 0.0  ;;  %v561_v49 = vmax.f32 %v471_v43, 0.0 }
  0xea   : > { %v544_v50 = vmax.f32 %v386_v46, 0.0  ;;  %v560_v51 = vmax.f32 %v466_v47, 0.0  ;;  %v761_v52 = vpop.f32.mrb[2].mxu0  ;;  %v785_v53 = vpop.f32.mrb[2].mxu1 }
  0xeb   : > { %577 = vst [vmem:[%s967_s6 + $0x8] sm:$0xff] %v545_v48  ;;  %593 = vst [vmem:[%s967_s6 + $0x88] sm:$0xff] %v561_v49  ;;  %v401_v54 = vadd.f32 %v761_v52, %v958_v39  ;;  %v481_v55 = vadd.f32 %v785_v53, %v958_v39  ;;  %v395_v56 = vpop.f32.mrb[3].mxu0  ;;  %v475_v57 = vpop.f32.mrb[3].mxu1 }
  0xec   : > { %576 = vst [vmem:[%s967_s6] sm:$0xff] %v544_v50  ;;  %592 = vst [vmem:[%s967_s6 + $0x80] sm:$0xff] %v560_v51  ;;  %v396_v58 = vadd.f32 %v958_v39, %v395_v56  ;;  %v476_v59 = vadd.f32 %v958_v39, %v475_v57 }
  0xed   : > { %v547_v60 = vmax.f32 %v401_v54, 0.0  ;;  %v563_v61 = vmax.f32 %v481_v55, 0.0 }
  0xee   : > { %v546_v62 = vmax.f32 %v396_v58, 0.0  ;;  %v562_v63 = vmax.f32 %v476_v59, 0.0  ;;  %v764_v0 = vpop.f32.mrb[4].mxu0  ;;  %v788_v1 = vpop.f32.mrb[4].mxu1 }
  0xef   : > { %579 = vst [vmem:[%s967_s6 + $0x18] sm:$0xff] %v547_v60  ;;  %595 = vst [vmem:[%s967_s6 + $0x98] sm:$0xff] %v563_v61  ;;  %v411_v2 = vadd.f32 %v764_v0, %v958_v39  ;;  %v491_v3 = vadd.f32 %v788_v1, %v958_v39  ;;  %v405_v4 = vpop.f32.mrb[5].mxu0  ;;  %v485_v5 = vpop.f32.mrb[5].mxu1 }
  0xf0   : > { %578 = vst [vmem:[%s967_s6 + $0x10] sm:$0xff] %v546_v62  ;;  %594 = vst [vmem:[%s967_s6 + $0x90] sm:$0xff] %v562_v63  ;;  %v406_v6 = vadd.f32 %v958_v39, %v405_v4  ;;  %v486_v7 = vadd.f32 %v958_v39, %v485_v5 }
  0xf1   : > { %v549_v8 = vmax.f32 %v411_v2, 0.0  ;;  %v565_v9 = vmax.f32 %v491_v3, 0.0 }
  0xf2   : > { %v548_v10 = vmax.f32 %v406_v6, 0.0  ;;  %v564_v11 = vmax.f32 %v486_v7, 0.0  ;;  %v767_v12 = vpop.f32.mrb[6].mxu0  ;;  %v791_v13 = vpop.f32.mrb[6].mxu1 }
  0xf3   : > { %581 = vst [vmem:[%s967_s6 + $0x28] sm:$0xff] %v549_v8  ;;  %597 = vst [vmem:[%s967_s6 + $0xa8] sm:$0xff] %v565_v9  ;;  %v421_v14 = vadd.f32 %v767_v12, %v958_v39  ;;  %v501_v15 = vadd.f32 %v791_v13, %v958_v39  ;;  %v415_v16 = vpop.f32.mrb[7].mxu0  ;;  %v495_v17 = vpop.f32.mrb[7].mxu1 }
  0xf4   : > { %580 = vst [vmem:[%s967_s6 + $0x20] sm:$0xff] %v548_v10  ;;  %596 = vst [vmem:[%s967_s6 + $0xa0] sm:$0xff] %v564_v11  ;;  %v416_v18 = vadd.f32 %v958_v39, %v415_v16  ;;  %v496_v19 = vadd.f32 %v958_v39, %v495_v17 }
  0xf5   : > { %v551_v20 = vmax.f32 %v421_v14, 0.0  ;;  %v567_v21 = vmax.f32 %v501_v15, 0.0 }
  0xf6   : > { %v550_v22 = vmax.f32 %v416_v18, 0.0  ;;  %v566_v23 = vmax.f32 %v496_v19, 0.0  ;;  %v770_v24 = vpop.f32.mrb[8].mxu0  ;;  %v794_v25 = vpop.f32.mrb[8].mxu1 }
  0xf7   : > { %583 = vst [vmem:[%s967_s6 + $0x38] sm:$0xff] %v551_v20  ;;  %599 = vst [vmem:[%s967_s6 + $0xb8] sm:$0xff] %v567_v21  ;;  %v431_v26 = vadd.f32 %v770_v24, %v958_v39  ;;  %v511_v27 = vadd.f32 %v794_v25, %v958_v39  ;;  %v425_v28 = vpop.f32.mrb[9].mxu0  ;;  %v505_v29 = vpop.f32.mrb[9].mxu1 }
  0xf8   : > { %582 = vst [vmem:[%s967_s6 + $0x30] sm:$0xff] %v550_v22  ;;  %598 = vst [vmem:[%s967_s6 + $0xb0] sm:$0xff] %v566_v23  ;;  %v426_v30 = vadd.f32 %v958_v39, %v425_v28  ;;  %v506_v31 = vadd.f32 %v958_v39, %v505_v29 }
  0xf9   : > { %v553_v32 = vmax.f32 %v431_v26, 0.0  ;;  %v569_v33 = vmax.f32 %v511_v27, 0.0 }
  0xfa   : > { %v552_v34 = vmax.f32 %v426_v30, 0.0  ;;  %v568_v35 = vmax.f32 %v506_v31, 0.0  ;;  %v773_v36 = vpop.f32.mrb[10].mxu0  ;;  %v797_v37 = vpop.f32.mrb[10].mxu1 }
  0xfb   : > { %585 = vst [vmem:[%s967_s6 + $0x48] sm:$0xff] %v553_v32  ;;  %601 = vst [vmem:[%s967_s6 + $0xc8] sm:$0xff] %v569_v33  ;;  %v441_v38 = vadd.f32 %v773_v36, %v958_v39  ;;  %v521_v40 = vadd.f32 %v797_v37, %v958_v39  ;;  %v435_v41 = vpop.f32.mrb[11].mxu0  ;;  %v515_v42 = vpop.f32.mrb[11].mxu1 }
  0xfc   : > { %584 = vst [vmem:[%s967_s6 + $0x40] sm:$0xff] %v552_v34  ;;  %600 = vst [vmem:[%s967_s6 + $0xc0] sm:$0xff] %v568_v35  ;;  %v436_v43 = vadd.f32 %v958_v39, %v435_v41  ;;  %v516_v44 = vadd.f32 %v958_v39, %v515_v42 }
  0xfd   : > { %v555_v45 = vmax.f32 %v441_v38, 0.0  ;;  %v571_v46 = vmax.f32 %v521_v40, 0.0 }
  0xfe   : > { %v554_v47 = vmax.f32 %v436_v43, 0.0  ;;  %v570_v48 = vmax.f32 %v516_v44, 0.0  ;;  %v776_v49 = vpop.f32.mrb[12].mxu0  ;;  %v800_v50 = vpop.f32.mrb[12].mxu1 }
  0xff   : > { %587 = vst [vmem:[%s967_s6 + $0x58] sm:$0xff] %v555_v45  ;;  %603 = vst [vmem:[%s967_s6 + $0xd8] sm:$0xff] %v571_v46  ;;  %v451_v51 = vadd.f32 %v776_v49, %v958_v39  ;;  %v531_v52 = vadd.f32 %v800_v50, %v958_v39  ;;  %v445_v53 = vpop.f32.mrb[13].mxu0  ;;  %v525_v54 = vpop.f32.mrb[13].mxu1 }
 0x100   : > { %586 = vst [vmem:[%s967_s6 + $0x50] sm:$0xff] %v554_v47  ;;  %602 = vst [vmem:[%s967_s6 + $0xd0] sm:$0xff] %v570_v48  ;;  %v446_v55 = vadd.f32 %v958_v39, %v445_v53  ;;  %v526_v56 = vadd.f32 %v958_v39, %v525_v54 }
 0x101   : > { %v557_v57 = vmax.f32 %v451_v51, 0.0  ;;  %v573_v58 = vmax.f32 %v531_v52, 0.0 }
 0x102   : > { %v556_v59 = vmax.f32 %v446_v55, 0.0  ;;  %v572_v60 = vmax.f32 %v526_v56, 0.0  ;;  %v779_v61 = vpop.f32.mrb[14].mxu0  ;;  %v803_v62 = vpop.f32.mrb[14].mxu1 }
 0x103   : > { %589 = vst [vmem:[%s967_s6 + $0x68] sm:$0xff] %v557_v57  ;;  %605 = vst [vmem:[%s967_s6 + $0xe8] sm:$0xff] %v573_v58  ;;  %v461_v63 = vadd.f32 %v779_v61, %v958_v39  ;;  %v541_v0 = vadd.f32 %v803_v62, %v958_v39  ;;  %v455_v1 = vpop.f32.mrb[15].mxu0  ;;  %v535_v2 = vpop.f32.mrb[15].mxu1 }
 0x104   : > { %588 = vst [vmem:[%s967_s6 + $0x60] sm:$0xff] %v556_v59  ;;  %604 = vst [vmem:[%s967_s6 + $0xe0] sm:$0xff] %v572_v60  ;;  %v456_v3 = vadd.f32 %v958_v39, %v455_v1  ;;  %v536_v4 = vadd.f32 %v958_v39, %v535_v2 }
 0x105   : > { %v559_v5 = vmax.f32 %v461_v63, 0.0  ;;  %v575_v6 = vmax.f32 %v541_v0, 0.0 }
 0x106   : > { %v558_v7 = vmax.f32 %v456_v3, 0.0  ;;  %v574_v8 = vmax.f32 %v536_v4, 0.0 }
 0x107   : > { %591 = vst [vmem:[%s967_s6 + $0x78] sm:$0xff] %v559_v5  ;;  %607 = vst [vmem:[%s967_s6 + $0xf8] sm:$0xff] %v575_v6 }
 0x108   : > { %590 = vst [vmem:[%s967_s6 + $0x70] sm:$0xff] %v558_v7  ;;  %606 = vst [vmem:[%s967_s6 + $0xf0] sm:$0xff] %v574_v8 }
 0x109 PF: > { %s13_s12 = sadd.s32 1, %s832_s12  }
 0x10a   : > { %p10_p4 = scmp.ge.s32.totalorder %s13_s12, 4  }
 0x10c   :  { %12 = sbr.rel (!%p10_p4) target bundleno = 1 (0x1), region = 62 }

// kernel: _lambda_.11
= control target key start
LH: loop header
LB: loop body
LE: loop exit
PB: predicated region body
PF: predicated region fallthrough
CT: control target
= control target key end

     0   :  { %s877_s12 = smov 0   ;;  %s1065_s0 = inlined_call_operand.vmem [shape: f32[512,72], index: 0, kind: input, shape index: {}]   ;;  %s1066_s1 = inlined_call_operand.vmem [shape: f32[72,128], index: 1, kind: input, shape index: {}]   ;;  %s1067_s2 = inlined_call_operand.vmem [shape: f32[1,128], index: 2, kind: input, shape index: {}]   ;;  %s1068_s3 = inlined_call_operand.vmem [shape: f32[512,128], index: 3, kind: output, shape index: {}]  }
   0x1 LB: > { %s664_s13 = sadd.s32 4294967295, %s855_s12   ;;  %p668_p0 = scmp.ge.s32.totalorder %s855_s12, 1  ;;  %s855_s12 = sphi %s877_s12, %s13_s12  }
   0x2   : > { %p138_p1 = scmp.lt.s32.totalorder %s855_s12, 3 }
   0x4   : > { %p139_p2 = pnand %p668_p0, %p138_p1 }
   0x5   : > { %v206_v0 = vld [vmem:[%s1066_s1] sm:$0xff] (!%p139_p2)  ;;  %v207_v1 = vld [vmem:[%s1066_s1 + $0x8] sm:$0xff] (!%p139_p2)  ;;  %v208_v2 = vld [vmem:[%s1066_s1 + $0x10] sm:$0xff] (!%p139_p2)  ;;  %s669_s20 = sshll.u32 (!%p139_p2), %s664_s13, 5  ;;  %vm222_vm0 = vcmask (!%p139_p2), 588800  }
   0x6   : > { %142 = sbr.rel (%p139_p2) target bundleno = 273 (0x111), region = 32  ;;  %v815_v3 = vpack.c.bf16 (!%p139_p2), %v207_v1, %v206_v0  ;;  %v209_v4 = vld [vmem:[%s1066_s1 + $0x18] sm:$0xff] (!%p139_p2)  ;;  %p163_p3 = scmp.lt.s32.totalorder (!%p139_p2), %s669_s20, 63  ;;  %v210_v6 = vld [vmem:[%s1066_s1 + $0x20] sm:$0xff] (!%p139_p2)  ;;  %v211_v7 = vld [vmem:[%s1066_s1 + $0x28] sm:$0xff] (!%p139_p2) }
   0x7   : > { %v819_v5 = vpack.c.bf16 (!%p139_p2), %v209_v4, %v208_v2  ;;  %v823_v8 = vpack.c.bf16 (!%p139_p2), %v211_v7, %v210_v6  ;;  %v212_v9 = vld [vmem:[%s1066_s1 + $0x30] sm:$0xff] (!%p139_p2)  ;;  %v213_v10 = vld [vmem:[%s1066_s1 + $0x38] sm:$0xff] (!%p139_p2)  ;;  %v214_v14 = vld [vmem:[%s1066_s1 + $0x40] sm:$0xff] (!%p139_p2) }
   0x8   : > { %816 = vmatprep.subr.bf16.mxu0 (!%p139_p2), %v815_v3  ;;  %831 = vmatprep.subr.bf16.mxu1 (!%p139_p2), %v815_v3  ;;  %v827_v13 = vpack.c.bf16 (!%p139_p2), %v213_v10, %v212_v9  ;;  %v989_v45 = vld [vmem:[%s1067_s2] ss:$0 sm:$0xff] (!%p139_p2) }
   0x9   : > { %818 = vmatpush3.bf16.msra.mxu0 (!%p139_p2), %v815_v3  ;;  %836 = vmatpush3.bf16.msra.mxu1 (!%p139_p2), %v815_v3 }
   0xa   : > { %820 = vmatprep.subr.bf16.mxu0 (!%p139_p2), %v819_v5  ;;  %832 = vmatprep.subr.bf16.mxu1 (!%p139_p2), %v819_v5 }
   0xd   : > { %s1070_s20 = smov (!%p163_p3, %s669_s20), 63  ;;  %822 = vmatpush3.bf16.msra.mxu0 %v819_v5  ;;  %837 = vmatpush3.bf16.msra.mxu1 %v819_v5 }
   0xe   : > { %s670_s27 = sshll.u32 %s1070_s20, 3  ;;  %824 = vmatprep.subr.bf16.mxu0 %v823_v8  ;;  %833 = vmatprep.subr.bf16.mxu1 %v823_v8 }
   0xf   : > { %s917_s7 = scalar_lea.vmem %s1065_s0, %s670_s27  ;;  %s998_s15 = scalar_lea.vmem %s1068_s3, %s670_s27 }
  0x10   : > { %v174_v11 = vld [vmem:[%s917_s7] sm:$0xff]  ;;  %v175_v15 = vld [vmem:[%s917_s7 + $0x8] sm:$0xff]  ;;  %v176_v17 = vld [vmem:[%s917_s7 + $0x10] sm:$0xff] }
  0x11   : > { %v190_v12 = vld [vmem:[%s917_s7 + $0x80] sm:$0xff]  ;;  %767 = vmatprep.mubr.msk.f32.mxu0 %vm222_vm0, %v174_v11  ;;  %826 = vmatpush3.bf16.msra.mxu0 %v823_v8  ;;  %v191_v16 = vld [vmem:[%s917_s7 + $0x88] sm:$0xff]  ;;  %v192_v18 = vld [vmem:[%s917_s7 + $0x90] sm:$0xff] }
  0x12   : > { %791 = vmatprep.mubr.msk.f32.mxu1 %vm222_vm0, %v190_v12  ;;  %838 = vmatpush3.bf16.msra.mxu1 %v823_v8  ;;  %v177_v19 = vld [vmem:[%s917_s7 + $0x18] sm:$0xff]  ;;  %v178_v21 = vld [vmem:[%s917_s7 + $0x20] sm:$0xff]  ;;  %v179_v23 = vld [vmem:[%s917_s7 + $0x28] sm:$0xff] }
  0x13   : > { %828 = vmatprep.subr.bf16.mxu0 %v827_v13  ;;  %834 = vmatprep.subr.bf16.mxu1 %v827_v13  ;;  %v193_v20 = vld [vmem:[%s917_s7 + $0x98] sm:$0xff]  ;;  %v194_v22 = vld [vmem:[%s917_s7 + $0xa0] sm:$0xff]  ;;  %v195_v24 = vld [vmem:[%s917_s7 + $0xa8] sm:$0xff] }
  0x14   : > { %v180_v25 = vld [vmem:[%s917_s7 + $0x30] sm:$0xff]  ;;  %v181_v27 = vld [vmem:[%s917_s7 + $0x38] sm:$0xff]  ;;  %v182_v29 = vld [vmem:[%s917_s7 + $0x40] sm:$0xff] }
  0x15   : > { %830 = vmatpush3.bf16.msra.mxu0 %v827_v13  ;;  %v196_v26 = vld [vmem:[%s917_s7 + $0xb0] sm:$0xff]  ;;  %v197_v28 = vld [vmem:[%s917_s7 + $0xb8] sm:$0xff]  ;;  %v198_v30 = vld [vmem:[%s917_s7 + $0xc0] sm:$0xff] }
  0x16   : > { %839 = vmatpush3.bf16.msra.mxu1 %v827_v13  ;;  %765 = vmatprep.subr.mxu0 %v214_v14  ;;  %v183_v31 = vld [vmem:[%s917_s7 + $0x48] sm:$0xff]  ;;  %v184_v33 = vld [vmem:[%s917_s7 + $0x50] sm:$0xff]  ;;  %v185_v35 = vld [vmem:[%s917_s7 + $0x58] sm:$0xff] }
  0x17   : > { %835 = vmatprep.subr.mxu1 %v214_v14  ;;  %v199_v32 = vld [vmem:[%s917_s7 + $0xc8] sm:$0xff]  ;;  %v200_v34 = vld [vmem:[%s917_s7 + $0xd0] sm:$0xff]  ;;  %v201_v36 = vld [vmem:[%s917_s7 + $0xd8] sm:$0xff] }
  0x18   : > { %v186_v37 = vld [vmem:[%s917_s7 + $0x60] sm:$0xff]  ;;  %v187_v39 = vld [vmem:[%s917_s7 + $0x68] sm:$0xff]  ;;  %v188_v41 = vld [vmem:[%s917_s7 + $0x70] sm:$0xff] }
  0x19   : > { %766 = vmatpush3.msra.mxu0 %v214_v14  ;;  %v202_v38 = vld [vmem:[%s917_s7 + $0xe0] sm:$0xff]  ;;  %v203_v40 = vld [vmem:[%s917_s7 + $0xe8] sm:$0xff]  ;;  %v204_v42 = vld [vmem:[%s917_s7 + $0xf0] sm:$0xff] }
  0x1a   : > { %840 = vmatpush3.msra.mxu1 %v214_v14  ;;  %768 = vmatmul.mubr.msk.f32.vlgmr.msra.gmra.mrb[0].mxu0 %vm222_vm0, %v175_v15  ;;  %v189_v43 = vld [vmem:[%s917_s7 + $0x78] sm:$0xff] }
  0x1b   : > { %792 = vmatmul.mubr.msk.f32.vlgmr.msra.gmra.mrb[0].mxu1 %vm222_vm0, %v191_v16  ;;  %770 = vmatprep.mubr.msk.f32.mxu0 %vm222_vm0, %v176_v17  ;;  %v205_v44 = vld [vmem:[%s917_s7 + $0xf8] sm:$0xff] }
  0x1c   : > { %794 = vmatprep.mubr.msk.f32.mxu1 %vm222_vm0, %v192_v18 }
  0x1e   : > { %771 = vmatmul.mubr.msk.f32.gmra.mrb[2].mxu0 %vm222_vm0, %v177_v19 }
  0x1f   : > { %795 = vmatmul.mubr.msk.f32.gmra.mrb[2].mxu1 %vm222_vm0, %v193_v20  ;;  %773 = vmatprep.mubr.msk.f32.mxu0 %vm222_vm0, %v178_v21 }
  0x20   : > { %797 = vmatprep.mubr.msk.f32.mxu1 %vm222_vm0, %v194_v22 }
  0x22   : > { %774 = vmatmul.mubr.msk.f32.gmra.mrb[4].mxu0 %vm222_vm0, %v179_v23 }
  0x23   : > { %798 = vmatmul.mubr.msk.f32.gmra.mrb[4].mxu1 %vm222_vm0, %v195_v24  ;;  %776 = vmatprep.mubr.msk.f32.mxu0 %vm222_vm0, %v180_v25 }
  0x24   : > { %800 = vmatprep.mubr.msk.f32.mxu1 %vm222_vm0, %v196_v26 }
  0x26   : > { %777 = vmatmul.mubr.msk.f32.gmra.mrb[6].mxu0 %vm222_vm0, %v181_v27 }
  0x27   : > { %801 = vmatmul.mubr.msk.f32.gmra.mrb[6].mxu1 %vm222_vm0, %v197_v28  ;;  %779 = vmatprep.mubr.msk.f32.mxu0 %vm222_vm0, %v182_v29 }
  0x28   : > { %803 = vmatprep.mubr.msk.f32.mxu1 %vm222_vm0, %v198_v30 }
  0x2a   : > { %780 = vmatmul.mubr.msk.f32.gmra.mrb[8].mxu0 %vm222_vm0, %v183_v31 }
  0x2b   : > { %804 = vmatmul.mubr.msk.f32.gmra.mrb[8].mxu1 %vm222_vm0, %v199_v32  ;;  %782 = vmatprep.mubr.msk.f32.mxu0 %vm222_vm0, %v184_v33 }
  0x2c   : > { %806 = vmatprep.mubr.msk.f32.mxu1 %vm222_vm0, %v200_v34 }
  0x2e   : > { %783 = vmatmul.mubr.msk.f32.gmra.mrb[10].mxu0 %vm222_vm0, %v185_v35 }
  0x2f   : > { %807 = vmatmul.mubr.msk.f32.gmra.mrb[10].mxu1 %vm222_vm0, %v201_v36  ;;  %785 = vmatprep.mubr.msk.f32.mxu0 %vm222_vm0, %v186_v37 }
  0x30   : > { %809 = vmatprep.mubr.msk.f32.mxu1 %vm222_vm0, %v202_v38 }
  0x32   : > { %786 = vmatmul.mubr.msk.f32.gmra.mrb[12].mxu0 %vm222_vm0, %v187_v39 }
  0x33   : > { %810 = vmatmul.mubr.msk.f32.gmra.mrb[12].mxu1 %vm222_vm0, %v203_v40  ;;  %788 = vmatprep.mubr.msk.f32.mxu0 %vm222_vm0, %v188_v41 }
  0x34   : > { %812 = vmatprep.mubr.msk.f32.mxu1 %vm222_vm0, %v204_v42 }
  0x36   : > { %789 = vmatmul.mubr.msk.f32.gmra.mrb[14].mxu0 %vm222_vm0, %v189_v43 }
  0x37   : > { %813 = vmatmul.mubr.msk.f32.gmra.mrb[14].mxu1 %vm222_vm0, %v205_v44 }
  0xed   : > { %v769_v46 = vpop.f32.mrb[0].mxu0 }
  0xee   : > { %v793_v47 = vpop.f32.mrb[0].mxu1  ;;  %v391_v48 = vadd.f32 %v769_v46, %v989_v45  ;;  %v385_v50 = vpop.f32.mrb[1].mxu0 }
  0xef   : > { %v471_v49 = vadd.f32 %v793_v47, %v989_v45  ;;  %v465_v51 = vpop.f32.mrb[1].mxu1  ;;  %v386_v52 = vadd.f32 %v989_v45, %v385_v50 }
  0xf0   : > { %v466_v53 = vadd.f32 %v989_v45, %v465_v51  ;;  %v545_v54 = vmax.f32 %v391_v48, 0.0 }
  0xf1   : > { %v561_v55 = vmax.f32 %v471_v49, 0.0  ;;  %v544_v56 = vmax.f32 %v386_v52, 0.0  ;;  %v772_v58 = vpop.f32.mrb[2].mxu0 }
  0xf2   : > { %v560_v57 = vmax.f32 %v466_v53, 0.0  ;;  %v796_v59 = vpop.f32.mrb[2].mxu1  ;;  %577 = vst [vmem:[%s998_s15 + $0x8] sm:$0xff] %v545_v54  ;;  %v401_v60 = vadd.f32 %v772_v58, %v989_v45  ;;  %v395_v62 = vpop.f32.mrb[3].mxu0 }
  0xf3   : > { %593 = vst [vmem:[%s998_s15 + $0x88] sm:$0xff] %v561_v55  ;;  %v481_v61 = vadd.f32 %v796_v59, %v989_v45  ;;  %v475_v63 = vpop.f32.mrb[3].mxu1  ;;  %576 = vst [vmem:[%s998_s15] sm:$0xff] %v544_v56  ;;  %v396_v0 = vadd.f32 %v989_v45, %v395_v62 }
  0xf4   : > { %592 = vst [vmem:[%s998_s15 + $0x80] sm:$0xff] %v560_v57  ;;  %v476_v1 = vadd.f32 %v989_v45, %v475_v63  ;;  %v547_v2 = vmax.f32 %v401_v60, 0.0 }
  0xf5   : > { %v563_v3 = vmax.f32 %v481_v61, 0.0  ;;  %v546_v4 = vmax.f32 %v396_v0, 0.0  ;;  %v775_v6 = vpop.f32.mrb[4].mxu0 }
  0xf6   : > { %v562_v5 = vmax.f32 %v476_v1, 0.0  ;;  %v799_v7 = vpop.f32.mrb[4].mxu1  ;;  %579 = vst [vmem:[%s998_s15 + $0x18] sm:$0xff] %v547_v2  ;;  %v411_v8 = vadd.f32 %v775_v6, %v989_v45  ;;  %v405_v10 = vpop.f32.mrb[5].mxu0 }
  0xf7   : > { %595 = vst [vmem:[%s998_s15 + $0x98] sm:$0xff] %v563_v3  ;;  %v491_v9 = vadd.f32 %v799_v7, %v989_v45  ;;  %v485_v11 = vpop.f32.mrb[5].mxu1  ;;  %578 = vst [vmem:[%s998_s15 + $0x10] sm:$0xff] %v546_v4  ;;  %v406_v12 = vadd.f32 %v989_v45, %v405_v10 }
  0xf8   : > { %594 = vst [vmem:[%s998_s15 + $0x90] sm:$0xff] %v562_v5  ;;  %v486_v13 = vadd.f32 %v989_v45, %v485_v11  ;;  %v549_v14 = vmax.f32 %v411_v8, 0.0 }
  0xf9   : > { %v565_v15 = vmax.f32 %v491_v9, 0.0  ;;  %v548_v16 = vmax.f32 %v406_v12, 0.0  ;;  %v778_v18 = vpop.f32.mrb[6].mxu0 }
  0xfa   : > { %v564_v17 = vmax.f32 %v486_v13, 0.0  ;;  %v802_v19 = vpop.f32.mrb[6].mxu1  ;;  %581 = vst [vmem:[%s998_s15 + $0x28] sm:$0xff] %v549_v14  ;;  %v421_v20 = vadd.f32 %v778_v18, %v989_v45  ;;  %v415_v22 = vpop.f32.mrb[7].mxu0 }
  0xfb   : > { %597 = vst [vmem:[%s998_s15 + $0xa8] sm:$0xff] %v565_v15  ;;  %v501_v21 = vadd.f32 %v802_v19, %v989_v45  ;;  %v495_v23 = vpop.f32.mrb[7].mxu1  ;;  %580 = vst [vmem:[%s998_s15 + $0x20] sm:$0xff] %v548_v16  ;;  %v416_v24 = vadd.f32 %v989_v45, %v415_v22 }
  0xfc   : > { %596 = vst [vmem:[%s998_s15 + $0xa0] sm:$0xff] %v564_v17  ;;  %v496_v25 = vadd.f32 %v989_v45, %v495_v23  ;;  %v551_v26 = vmax.f32 %v421_v20, 0.0 }
  0xfd   : > { %v567_v27 = vmax.f32 %v501_v21, 0.0  ;;  %v550_v28 = vmax.f32 %v416_v24, 0.0  ;;  %v781_v30 = vpop.f32.mrb[8].mxu0 }
  0xfe   : > { %v566_v29 = vmax.f32 %v496_v25, 0.0  ;;  %v805_v31 = vpop.f32.mrb[8].mxu1  ;;  %583 = vst [vmem:[%s998_s15 + $0x38] sm:$0xff] %v551_v26  ;;  %v431_v32 = vadd.f32 %v781_v30, %v989_v45  ;;  %v425_v34 = vpop.f32.mrb[9].mxu0 }
  0xff   : > { %599 = vst [vmem:[%s998_s15 + $0xb8] sm:$0xff] %v567_v27  ;;  %v511_v33 = vadd.f32 %v805_v31, %v989_v45  ;;  %v505_v35 = vpop.f32.mrb[9].mxu1  ;;  %582 = vst [vmem:[%s998_s15 + $0x30] sm:$0xff] %v550_v28  ;;  %v426_v36 = vadd.f32 %v989_v45, %v425_v34 }
 0x100   : > { %598 = vst [vmem:[%s998_s15 + $0xb0] sm:$0xff] %v566_v29  ;;  %v506_v37 = vadd.f32 %v989_v45, %v505_v35  ;;  %v553_v38 = vmax.f32 %v431_v32, 0.0 }
 0x101   : > { %v569_v39 = vmax.f32 %v511_v33, 0.0  ;;  %v552_v40 = vmax.f32 %v426_v36, 0.0  ;;  %v784_v42 = vpop.f32.mrb[10].mxu0 }
 0x102   : > { %v568_v41 = vmax.f32 %v506_v37, 0.0  ;;  %v808_v43 = vpop.f32.mrb[10].mxu1  ;;  %585 = vst [vmem:[%s998_s15 + $0x48] sm:$0xff] %v553_v38  ;;  %v441_v44 = vadd.f32 %v784_v42, %v989_v45  ;;  %v435_v47 = vpop.f32.mrb[11].mxu0 }
 0x103   : > { %601 = vst [vmem:[%s998_s15 + $0xc8] sm:$0xff] %v569_v39  ;;  %v521_v46 = vadd.f32 %v808_v43, %v989_v45  ;;  %v515_v48 = vpop.f32.mrb[11].mxu1  ;;  %584 = vst [vmem:[%s998_s15 + $0x40] sm:$0xff] %v552_v40  ;;  %v436_v49 = vadd.f32 %v989_v45, %v435_v47 }
 0x104   : > { %600 = vst [vmem:[%s998_s15 + $0xc0] sm:$0xff] %v568_v41  ;;  %v516_v50 = vadd.f32 %v989_v45, %v515_v48  ;;  %v555_v51 = vmax.f32 %v441_v44, 0.0 }
 0x105   : > { %v571_v52 = vmax.f32 %v521_v46, 0.0  ;;  %v554_v53 = vmax.f32 %v436_v49, 0.0  ;;  %v787_v55 = vpop.f32.mrb[12].mxu0 }
 0x106   : > { %v570_v54 = vmax.f32 %v516_v50, 0.0  ;;  %v811_v56 = vpop.f32.mrb[12].mxu1  ;;  %587 = vst [vmem:[%s998_s15 + $0x58] sm:$0xff] %v555_v51  ;;  %v451_v57 = vadd.f32 %v787_v55, %v989_v45  ;;  %v445_v59 = vpop.f32.mrb[13].mxu0 }
 0x107   : > { %603 = vst [vmem:[%s998_s15 + $0xd8] sm:$0xff] %v571_v52  ;;  %v531_v58 = vadd.f32 %v811_v56, %v989_v45  ;;  %v525_v60 = vpop.f32.mrb[13].mxu1  ;;  %586 = vst [vmem:[%s998_s15 + $0x50] sm:$0xff] %v554_v53  ;;  %v446_v61 = vadd.f32 %v989_v45, %v445_v59 }
 0x108   : > { %602 = vst [vmem:[%s998_s15 + $0xd0] sm:$0xff] %v570_v54  ;;  %v526_v62 = vadd.f32 %v989_v45, %v525_v60  ;;  %v557_v63 = vmax.f32 %v451_v57, 0.0 }
 0x109   : > { %v573_v0 = vmax.f32 %v531_v58, 0.0  ;;  %v556_v1 = vmax.f32 %v446_v61, 0.0  ;;  %v790_v3 = vpop.f32.mrb[14].mxu0 }
 0x10a   : > { %v572_v2 = vmax.f32 %v526_v62, 0.0  ;;  %v814_v4 = vpop.f32.mrb[14].mxu1  ;;  %589 = vst [vmem:[%s998_s15 + $0x68] sm:$0xff] %v557_v63  ;;  %v461_v5 = vadd.f32 %v790_v3, %v989_v45  ;;  %v455_v7 = vpop.f32.mrb[15].mxu0 }
 0x10b   : > { %605 = vst [vmem:[%s998_s15 + $0xe8] sm:$0xff] %v573_v0  ;;  %v541_v6 = vadd.f32 %v814_v4, %v989_v45  ;;  %v535_v8 = vpop.f32.mrb[15].mxu1  ;;  %588 = vst [vmem:[%s998_s15 + $0x60] sm:$0xff] %v556_v1  ;;  %v456_v9 = vadd.f32 %v989_v45, %v455_v7 }
 0x10c   : > { %604 = vst [vmem:[%s998_s15 + $0xe0] sm:$0xff] %v572_v2  ;;  %v536_v10 = vadd.f32 %v989_v45, %v535_v8  ;;  %v559_v11 = vmax.f32 %v461_v5, 0.0 }
 0x10d   : > { %v575_v12 = vmax.f32 %v541_v6, 0.0  ;;  %v558_v13 = vmax.f32 %v456_v9, 0.0 }
 0x10e   : > { %v574_v14 = vmax.f32 %v536_v10, 0.0  ;;  %591 = vst [vmem:[%s998_s15 + $0x78] sm:$0xff] %v559_v11 }
 0x10f   : > { %607 = vst [vmem:[%s998_s15 + $0xf8] sm:$0xff] %v575_v12  ;;  %590 = vst [vmem:[%s998_s15 + $0x70] sm:$0xff] %v558_v13 }
 0x110   : > { %606 = vst [vmem:[%s998_s15 + $0xf0] sm:$0xff] %v574_v14 }
 0x111 PF: > { %s13_s12 = sadd.s32 1, %s855_s12  }
 0x112   : > { %p10_p4 = scmp.ge.s32.totalorder %s13_s12, 4  }
 0x114   :  { %12 = sbr.rel (!%p10_p4) target bundleno = 1 (0x1), region = 62 }

// kernel: _lambda_.12
= control target key start
LH: loop header
LB: loop body
LE: loop exit
PB: predicated region body
PF: predicated region fallthrough
CT: control target
= control target key end

     0   :  { %s1009_s15 = smov 0   ;;  %s1232_s0 = inlined_call_operand.vmem [shape: f32[512,72], index: 0, kind: input, shape index: {}]   ;;  %s1233_s1 = inlined_call_operand.vmem [shape: f32[72,128], index: 1, kind: input, shape index: {}]   ;;  %s1234_s2 = inlined_call_operand.vmem [shape: f32[1,128], index: 2, kind: input, shape index: {}]   ;;  %s1235_s3 = inlined_call_operand.vmem [shape: f32[512,128], index: 3, kind: input, shape index: {}]   ;;  %s1236_s4 = inlined_call_operand.vmem [shape: f32[512,128], index: 4, kind: output, shape index: {}]  }
   0x1 LB: > { %s789_s16 = sadd.s32 4294967295, %s982_s15   ;;  %p793_p0 = scmp.ge.s32.totalorder %s982_s15, 1  ;;  %s982_s15 = sphi %s1009_s15, %s14_s15  }
   0x2   : > { %p174_p1 = scmp.lt.s32.totalorder %s982_s15, 3 }
   0x4   : > { %p175_p2 = pnand %p793_p0, %p174_p1 }
   0x5   : > { %v255_v0 = vld [vmem:[%s1233_s1] sm:$0xff] (!%p175_p2)  ;;  %v256_v1 = vld [vmem:[%s1233_s1 + $0x8] sm:$0xff] (!%p175_p2)  ;;  %v257_v2 = vld [vmem:[%s1233_s1 + $0x10] sm:$0xff] (!%p175_p2)  ;;  %s794_s23 = sshll.u32 (!%p175_p2), %s789_s16, 5  ;;  %vm271_vm0 = vcmask (!%p175_p2), 588800  }
   0x6   : > { %178 = sbr.rel (%p175_p2) target bundleno = 275 (0x113), region = 36  ;;  %v942_v3 = vpack.c.bf16 (!%p175_p2), %v256_v1, %v255_v0  ;;  %v258_v4 = vld [vmem:[%s1233_s1 + $0x18] sm:$0xff] (!%p175_p2)  ;;  %p206_p3 = scmp.lt.s32.totalorder (!%p175_p2), %s794_s23, 63  ;;  %v259_v6 = vld [vmem:[%s1233_s1 + $0x20] sm:$0xff] (!%p175_p2)  ;;  %v260_v7 = vld [vmem:[%s1233_s1 + $0x28] sm:$0xff] (!%p175_p2) }
   0x7   : > { %v946_v5 = vpack.c.bf16 (!%p175_p2), %v258_v4, %v257_v2  ;;  %v950_v8 = vpack.c.bf16 (!%p175_p2), %v260_v7, %v259_v6  ;;  %v261_v9 = vld [vmem:[%s1233_s1 + $0x30] sm:$0xff] (!%p175_p2)  ;;  %v262_v10 = vld [vmem:[%s1233_s1 + $0x38] sm:$0xff] (!%p175_p2)  ;;  %v263_v14 = vld [vmem:[%s1233_s1 + $0x40] sm:$0xff] (!%p175_p2) }
   0x8   : > { %943 = vmatprep.subr.bf16.mxu0 (!%p175_p2), %v942_v3  ;;  %958 = vmatprep.subr.bf16.mxu1 (!%p175_p2), %v942_v3  ;;  %v954_v13 = vpack.c.bf16 (!%p175_p2), %v262_v10, %v261_v9  ;;  %v1125_v45 = vld [vmem:[%s1234_s2] ss:$0 sm:$0xff] (!%p175_p2) }
   0x9   : > { %945 = vmatpush3.bf16.msra.mxu0 (!%p175_p2), %v942_v3  ;;  %963 = vmatpush3.bf16.msra.mxu1 (!%p175_p2), %v942_v3 }
   0xa   : > { %947 = vmatprep.subr.bf16.mxu0 (!%p175_p2), %v946_v5  ;;  %959 = vmatprep.subr.bf16.mxu1 (!%p175_p2), %v946_v5 }
   0xd   : > { %s1238_s23 = smov (!%p206_p3, %s794_s23), 63  ;;  %949 = vmatpush3.bf16.msra.mxu0 %v946_v5  ;;  %964 = vmatpush3.bf16.msra.mxu1 %v946_v5 }
   0xe   : > { %s1035_s30 = sshll.u32 %s1238_s23, 3  ;;  %951 = vmatprep.subr.bf16.mxu0 %v950_v8  ;;  %960 = vmatprep.subr.bf16.mxu1 %v950_v8 }
   0xf   : > { %s1047_s11 = scalar_lea.vmem %s1232_s0, %s1035_s30  ;;  %s1120_s17 = scalar_lea.vmem %s1235_s3, %s1035_s30 }
  0x10   : > { %v223_v11 = vld [vmem:[%s1047_s11] sm:$0xff]  ;;  %v224_v15 = vld [vmem:[%s1047_s11 + $0x8] sm:$0xff]  ;;  %v225_v17 = vld [vmem:[%s1047_s11 + $0x10] sm:$0xff]  ;;  %s1139_s22 = scalar_lea.vmem %s1236_s4, %s1035_s30 }
  0x11   : > { %v239_v12 = vld [vmem:[%s1047_s11 + $0x80] sm:$0xff]  ;;  %894 = vmatprep.mubr.msk.f32.mxu0 %vm271_vm0, %v223_v11  ;;  %953 = vmatpush3.bf16.msra.mxu0 %v950_v8  ;;  %v240_v16 = vld [vmem:[%s1047_s11 + $0x88] sm:$0xff]  ;;  %v241_v18 = vld [vmem:[%s1047_s11 + $0x90] sm:$0xff] }
  0x12   : > { %918 = vmatprep.mubr.msk.f32.mxu1 %vm271_vm0, %v239_v12  ;;  %965 = vmatpush3.bf16.msra.mxu1 %v950_v8  ;;  %v226_v19 = vld [vmem:[%s1047_s11 + $0x18] sm:$0xff]  ;;  %v227_v21 = vld [vmem:[%s1047_s11 + $0x20] sm:$0xff]  ;;  %v228_v23 = vld [vmem:[%s1047_s11 + $0x28] sm:$0xff] }
  0x13   : > { %955 = vmatprep.subr.bf16.mxu0 %v954_v13  ;;  %961 = vmatprep.subr.bf16.mxu1 %v954_v13  ;;  %v242_v20 = vld [vmem:[%s1047_s11 + $0x98] sm:$0xff]  ;;  %v243_v22 = vld [vmem:[%s1047_s11 + $0xa0] sm:$0xff]  ;;  %v244_v24 = vld [vmem:[%s1047_s11 + $0xa8] sm:$0xff] }
  0x14   : > { %v229_v25 = vld [vmem:[%s1047_s11 + $0x30] sm:$0xff]  ;;  %v230_v27 = vld [vmem:[%s1047_s11 + $0x38] sm:$0xff]  ;;  %v231_v29 = vld [vmem:[%s1047_s11 + $0x40] sm:$0xff] }
  0x15   : > { %957 = vmatpush3.bf16.msra.mxu0 %v954_v13  ;;  %v245_v26 = vld [vmem:[%s1047_s11 + $0xb0] sm:$0xff]  ;;  %v246_v28 = vld [vmem:[%s1047_s11 + $0xb8] sm:$0xff]  ;;  %v247_v30 = vld [vmem:[%s1047_s11 + $0xc0] sm:$0xff] }
  0x16   : > { %966 = vmatpush3.bf16.msra.mxu1 %v954_v13  ;;  %892 = vmatprep.subr.mxu0 %v263_v14  ;;  %v232_v31 = vld [vmem:[%s1047_s11 + $0x48] sm:$0xff]  ;;  %v233_v33 = vld [vmem:[%s1047_s11 + $0x50] sm:$0xff]  ;;  %v234_v35 = vld [vmem:[%s1047_s11 + $0x58] sm:$0xff] }
  0x17   : > { %962 = vmatprep.subr.mxu1 %v263_v14  ;;  %v248_v32 = vld [vmem:[%s1047_s11 + $0xc8] sm:$0xff]  ;;  %v249_v34 = vld [vmem:[%s1047_s11 + $0xd0] sm:$0xff]  ;;  %v250_v36 = vld [vmem:[%s1047_s11 + $0xd8] sm:$0xff] }
  0x18   : > { %v235_v37 = vld [vmem:[%s1047_s11 + $0x60] sm:$0xff]  ;;  %v236_v39 = vld [vmem:[%s1047_s11 + $0x68] sm:$0xff]  ;;  %v237_v41 = vld [vmem:[%s1047_s11 + $0x70] sm:$0xff] }
  0x19   : > { %893 = vmatpush3.msra.mxu0 %v263_v14  ;;  %v251_v38 = vld [vmem:[%s1047_s11 + $0xe0] sm:$0xff]  ;;  %v252_v40 = vld [vmem:[%s1047_s11 + $0xe8] sm:$0xff]  ;;  %v253_v42 = vld [vmem:[%s1047_s11 + $0xf0] sm:$0xff] }
  0x1a   : > { %967 = vmatpush3.msra.mxu1 %v263_v14  ;;  %895 = vmatmul.mubr.msk.f32.vlgmr.msra.gmra.mrb[0].mxu0 %vm271_vm0, %v224_v15  ;;  %v238_v43 = vld [vmem:[%s1047_s11 + $0x78] sm:$0xff]  ;;  %v594_v47 = vld [vmem:[%s1120_s17 + $0x8] sm:$0xff]  ;;  %v593_v53 = vld [vmem:[%s1120_s17] sm:$0xff] }
  0x1b   : > { %919 = vmatmul.mubr.msk.f32.vlgmr.msra.gmra.mrb[0].mxu1 %vm271_vm0, %v240_v16  ;;  %897 = vmatprep.mubr.msk.f32.mxu0 %vm271_vm0, %v225_v17  ;;  %v254_v44 = vld [vmem:[%s1047_s11 + $0xf8] sm:$0xff]  ;;  %v610_v49 = vld [vmem:[%s1120_s17 + $0x88] sm:$0xff]  ;;  %v609_v55 = vld [vmem:[%s1120_s17 + $0x80] sm:$0xff] }
  0x1c   : > { %921 = vmatprep.mubr.msk.f32.mxu1 %vm271_vm0, %v241_v18  ;;  %v596_v63 = vld [vmem:[%s1120_s17 + $0x18] sm:$0xff]  ;;  %v595_v7 = vld [vmem:[%s1120_s17 + $0x10] sm:$0xff] }
  0x1d   : > { %v612_v1 = vld [vmem:[%s1120_s17 + $0x98] sm:$0xff]  ;;  %v611_v9 = vld [vmem:[%s1120_s17 + $0x90] sm:$0xff] }
  0x1e   : > { %898 = vmatmul.mubr.msk.f32.gmra.mrb[2].mxu0 %vm271_vm0, %v226_v19  ;;  %v598_v19 = vld [vmem:[%s1120_s17 + $0x28] sm:$0xff] }
  0x1f   : > { %922 = vmatmul.mubr.msk.f32.gmra.mrb[2].mxu1 %vm271_vm0, %v242_v20  ;;  %900 = vmatprep.mubr.msk.f32.mxu0 %vm271_vm0, %v227_v21  ;;  %v614_v21 = vld [vmem:[%s1120_s17 + $0xa8] sm:$0xff] }
  0x20   : > { %924 = vmatprep.mubr.msk.f32.mxu1 %vm271_vm0, %v243_v22 }
  0x22   : > { %901 = vmatmul.mubr.msk.f32.gmra.mrb[4].mxu0 %vm271_vm0, %v228_v23 }
  0x23   : > { %925 = vmatmul.mubr.msk.f32.gmra.mrb[4].mxu1 %vm271_vm0, %v244_v24  ;;  %903 = vmatprep.mubr.msk.f32.mxu0 %vm271_vm0, %v229_v25 }
  0x24   : > { %927 = vmatprep.mubr.msk.f32.mxu1 %vm271_vm0, %v245_v26 }
  0x26   : > { %904 = vmatmul.mubr.msk.f32.gmra.mrb[6].mxu0 %vm271_vm0, %v230_v27  ;;  %v597_v27 = vld [vmem:[%s1120_s17 + $0x20] sm:$0xff] }
  0x27   : > { %928 = vmatmul.mubr.msk.f32.gmra.mrb[6].mxu1 %vm271_vm0, %v246_v28  ;;  %906 = vmatprep.mubr.msk.f32.mxu0 %vm271_vm0, %v231_v29  ;;  %v613_v29 = vld [vmem:[%s1120_s17 + $0xa0] sm:$0xff] }
  0x28   : > { %930 = vmatprep.mubr.msk.f32.mxu1 %vm271_vm0, %v247_v30 }
  0x2a   : > { %907 = vmatmul.mubr.msk.f32.gmra.mrb[8].mxu0 %vm271_vm0, %v232_v31 }
  0x2b   : > { %931 = vmatmul.mubr.msk.f32.gmra.mrb[8].mxu1 %vm271_vm0, %v248_v32  ;;  %909 = vmatprep.mubr.msk.f32.mxu0 %vm271_vm0, %v233_v33 }
  0x2c   : > { %933 = vmatprep.mubr.msk.f32.mxu1 %vm271_vm0, %v249_v34 }
  0x2e   : > { %910 = vmatmul.mubr.msk.f32.gmra.mrb[10].mxu0 %vm271_vm0, %v234_v35 }
  0x2f   : > { %934 = vmatmul.mubr.msk.f32.gmra.mrb[10].mxu1 %vm271_vm0, %v250_v36  ;;  %912 = vmatprep.mubr.msk.f32.mxu0 %vm271_vm0, %v235_v37 }
  0x30   : > { %936 = vmatprep.mubr.msk.f32.mxu1 %vm271_vm0, %v251_v38 }
  0x32   : > { %913 = vmatmul.mubr.msk.f32.gmra.mrb[12].mxu0 %vm271_vm0, %v236_v39  ;;  %v600_v39 = vld [vmem:[%s1120_s17 + $0x38] sm:$0xff] }
  0x33   : > { %937 = vmatmul.mubr.msk.f32.gmra.mrb[12].mxu1 %vm271_vm0, %v252_v40  ;;  %915 = vmatprep.mubr.msk.f32.mxu0 %vm271_vm0, %v237_v41  ;;  %v616_v41 = vld [vmem:[%s1120_s17 + $0xb8] sm:$0xff] }
  0x34   : > { %939 = vmatprep.mubr.msk.f32.mxu1 %vm271_vm0, %v253_v42 }
  0x36   : > { %916 = vmatmul.mubr.msk.f32.gmra.mrb[14].mxu0 %vm271_vm0, %v238_v43 }
  0x37   : > { %940 = vmatmul.mubr.msk.f32.gmra.mrb[14].mxu1 %vm271_vm0, %v254_v44 }
  0xed   : > { %v896_v46 = vpop.f32.mrb[0].mxu0 }
  0xee   : > { %v920_v48 = vpop.f32.mrb[0].mxu1  ;;  %v440_v50 = vadd.f32 %v896_v46, %v1125_v45  ;;  %v434_v52 = vpop.f32.mrb[1].mxu0 }
  0xef   : > { %v520_v51 = vadd.f32 %v920_v48, %v1125_v45  ;;  %v514_v54 = vpop.f32.mrb[1].mxu1  ;;  %v435_v56 = vadd.f32 %v1125_v45, %v434_v52  ;;  %v599_v48 = vld [vmem:[%s1120_s17 + $0x30] sm:$0xff] }
  0xf0   : > { %v515_v57 = vadd.f32 %v1125_v45, %v514_v54  ;;  %v626_v58 = vadd.f32 %v594_v47, %v440_v50  ;;  %v615_v50 = vld [vmem:[%s1120_s17 + $0xb0] sm:$0xff] }
  0xf1   : > { %v642_v59 = vadd.f32 %v610_v49, %v520_v51  ;;  %v625_v60 = vadd.f32 %v593_v53, %v435_v56  ;;  %v899_v62 = vpop.f32.mrb[2].mxu0 }
  0xf2   : > { %v641_v61 = vadd.f32 %v609_v55, %v515_v57  ;;  %v923_v0 = vpop.f32.mrb[2].mxu1  ;;  %v658_v2 = vmax.f32 %v626_v58, 0.0  ;;  %v450_v4 = vadd.f32 %v899_v62, %v1125_v45  ;;  %v444_v6 = vpop.f32.mrb[3].mxu0  ;;  %v618_v62 = vld [vmem:[%s1120_s17 + $0xc8] sm:$0xff] }
  0xf3   : > { %v674_v3 = vmax.f32 %v642_v59, 0.0  ;;  %v530_v5 = vadd.f32 %v923_v0, %v1125_v45  ;;  %v524_v8 = vpop.f32.mrb[3].mxu1  ;;  %v657_v10 = vmax.f32 %v625_v60, 0.0  ;;  %v445_v12 = vadd.f32 %v1125_v45, %v444_v6  ;;  %v602_v60 = vld [vmem:[%s1120_s17 + $0x48] sm:$0xff]  ;;  %v617_v6 = vld [vmem:[%s1120_s17 + $0xc0] sm:$0xff] }
  0xf4   : > { %v673_v11 = vmax.f32 %v641_v61, 0.0  ;;  %v525_v13 = vadd.f32 %v1125_v45, %v524_v8  ;;  %690 = vst [vmem:[%s1139_s22 + $0x8] sm:$0xff] %v658_v2  ;;  %v628_v14 = vadd.f32 %v596_v63, %v450_v4  ;;  %v601_v4 = vld [vmem:[%s1120_s17 + $0x40] sm:$0xff] }
  0xf5   : > { %706 = vst [vmem:[%s1139_s22 + $0x88] sm:$0xff] %v674_v3  ;;  %v644_v15 = vadd.f32 %v612_v1, %v530_v5  ;;  %689 = vst [vmem:[%s1139_s22] sm:$0xff] %v657_v10  ;;  %v627_v16 = vadd.f32 %v595_v7, %v445_v12  ;;  %v902_v18 = vpop.f32.mrb[4].mxu0 }
  0xf6   : > { %705 = vst [vmem:[%s1139_s22 + $0x80] sm:$0xff] %v673_v11  ;;  %v643_v17 = vadd.f32 %v611_v9, %v525_v13  ;;  %v926_v20 = vpop.f32.mrb[4].mxu1  ;;  %v660_v22 = vmax.f32 %v628_v14, 0.0  ;;  %v460_v24 = vadd.f32 %v902_v18, %v1125_v45  ;;  %v454_v26 = vpop.f32.mrb[5].mxu0  ;;  %v620_v18 = vld [vmem:[%s1120_s17 + $0xd8] sm:$0xff] }
  0xf7   : > { %v676_v23 = vmax.f32 %v644_v15, 0.0  ;;  %v540_v25 = vadd.f32 %v926_v20, %v1125_v45  ;;  %v534_v28 = vpop.f32.mrb[5].mxu1  ;;  %v659_v30 = vmax.f32 %v627_v16, 0.0  ;;  %v455_v32 = vadd.f32 %v1125_v45, %v454_v26  ;;  %v604_v16 = vld [vmem:[%s1120_s17 + $0x58] sm:$0xff]  ;;  %v619_v26 = vld [vmem:[%s1120_s17 + $0xd0] sm:$0xff] }
  0xf8   : > { %v675_v31 = vmax.f32 %v643_v17, 0.0  ;;  %v535_v33 = vadd.f32 %v1125_v45, %v534_v28  ;;  %692 = vst [vmem:[%s1139_s22 + $0x18] sm:$0xff] %v660_v22  ;;  %v630_v34 = vadd.f32 %v598_v19, %v460_v24  ;;  %v603_v24 = vld [vmem:[%s1120_s17 + $0x50] sm:$0xff] }
  0xf9   : > { %708 = vst [vmem:[%s1139_s22 + $0x98] sm:$0xff] %v676_v23  ;;  %v646_v35 = vadd.f32 %v614_v21, %v540_v25  ;;  %691 = vst [vmem:[%s1139_s22 + $0x10] sm:$0xff] %v659_v30  ;;  %v629_v36 = vadd.f32 %v597_v27, %v455_v32  ;;  %v905_v38 = vpop.f32.mrb[6].mxu0 }
  0xfa   : > { %707 = vst [vmem:[%s1139_s22 + $0x90] sm:$0xff] %v675_v31  ;;  %v645_v37 = vadd.f32 %v613_v29, %v535_v33  ;;  %v929_v40 = vpop.f32.mrb[6].mxu1  ;;  %v662_v42 = vmax.f32 %v630_v34, 0.0  ;;  %v470_v44 = vadd.f32 %v905_v38, %v1125_v45  ;;  %v464_v47 = vpop.f32.mrb[7].mxu0  ;;  %v622_v38 = vld [vmem:[%s1120_s17 + $0xe8] sm:$0xff] }
  0xfb   : > { %v678_v43 = vmax.f32 %v646_v35, 0.0  ;;  %v550_v46 = vadd.f32 %v929_v40, %v1125_v45  ;;  %v544_v49 = vpop.f32.mrb[7].mxu1  ;;  %v661_v51 = vmax.f32 %v629_v36, 0.0  ;;  %v465_v53 = vadd.f32 %v1125_v45, %v464_v47  ;;  %v606_v36 = vld [vmem:[%s1120_s17 + $0x68] sm:$0xff]  ;;  %v621_v47 = vld [vmem:[%s1120_s17 + $0xe0] sm:$0xff] }
  0xfc   : > { %v677_v52 = vmax.f32 %v645_v37, 0.0  ;;  %v545_v54 = vadd.f32 %v1125_v45, %v544_v49  ;;  %694 = vst [vmem:[%s1139_s22 + $0x28] sm:$0xff] %v662_v42  ;;  %v632_v55 = vadd.f32 %v600_v39, %v470_v44  ;;  %v605_v44 = vld [vmem:[%s1120_s17 + $0x60] sm:$0xff] }
  0xfd   : > { %710 = vst [vmem:[%s1139_s22 + $0xa8] sm:$0xff] %v678_v43  ;;  %v648_v56 = vadd.f32 %v616_v41, %v550_v46  ;;  %693 = vst [vmem:[%s1139_s22 + $0x20] sm:$0xff] %v661_v51  ;;  %v631_v57 = vadd.f32 %v599_v48, %v465_v53  ;;  %v908_v59 = vpop.f32.mrb[8].mxu0 }
  0xfe   : > { %709 = vst [vmem:[%s1139_s22 + $0xa0] sm:$0xff] %v677_v52  ;;  %v647_v58 = vadd.f32 %v615_v50, %v545_v54  ;;  %v932_v61 = vpop.f32.mrb[8].mxu1  ;;  %v664_v63 = vmax.f32 %v632_v55, 0.0  ;;  %v480_v1 = vadd.f32 %v908_v59, %v1125_v45  ;;  %v474_v3 = vpop.f32.mrb[9].mxu0  ;;  %v624_v59 = vld [vmem:[%s1120_s17 + $0xf8] sm:$0xff] }
  0xff   : > { %v680_v0 = vmax.f32 %v648_v56, 0.0  ;;  %v560_v2 = vadd.f32 %v932_v61, %v1125_v45  ;;  %v554_v5 = vpop.f32.mrb[9].mxu1  ;;  %v663_v7 = vmax.f32 %v631_v57, 0.0  ;;  %v475_v9 = vadd.f32 %v1125_v45, %v474_v3  ;;  %v608_v57 = vld [vmem:[%s1120_s17 + $0x78] sm:$0xff]  ;;  %v623_v3 = vld [vmem:[%s1120_s17 + $0xf0] sm:$0xff] }
 0x100   : > { %v679_v8 = vmax.f32 %v647_v58, 0.0  ;;  %v555_v10 = vadd.f32 %v1125_v45, %v554_v5  ;;  %696 = vst [vmem:[%s1139_s22 + $0x38] sm:$0xff] %v664_v63  ;;  %v634_v11 = vadd.f32 %v602_v60, %v480_v1  ;;  %v607_v1 = vld [vmem:[%s1120_s17 + $0x70] sm:$0xff] }
 0x101   : > { %712 = vst [vmem:[%s1139_s22 + $0xb8] sm:$0xff] %v680_v0  ;;  %v650_v12 = vadd.f32 %v618_v62, %v560_v2  ;;  %695 = vst [vmem:[%s1139_s22 + $0x30] sm:$0xff] %v663_v7  ;;  %v633_v13 = vadd.f32 %v601_v4, %v475_v9  ;;  %v911_v15 = vpop.f32.mrb[10].mxu0 }
 0x102   : > { %711 = vst [vmem:[%s1139_s22 + $0xb0] sm:$0xff] %v679_v8  ;;  %v649_v14 = vadd.f32 %v617_v6, %v555_v10  ;;  %v935_v17 = vpop.f32.mrb[10].mxu1  ;;  %v666_v19 = vmax.f32 %v634_v11, 0.0  ;;  %v490_v21 = vadd.f32 %v911_v15, %v1125_v45  ;;  %v484_v23 = vpop.f32.mrb[11].mxu0 }
 0x103   : > { %v682_v20 = vmax.f32 %v650_v12, 0.0  ;;  %v570_v22 = vadd.f32 %v935_v17, %v1125_v45  ;;  %v564_v25 = vpop.f32.mrb[11].mxu1  ;;  %v665_v27 = vmax.f32 %v633_v13, 0.0  ;;  %v485_v29 = vadd.f32 %v1125_v45, %v484_v23 }
 0x104   : > { %v681_v28 = vmax.f32 %v649_v14, 0.0  ;;  %v565_v30 = vadd.f32 %v1125_v45, %v564_v25  ;;  %698 = vst [vmem:[%s1139_s22 + $0x48] sm:$0xff] %v666_v19  ;;  %v636_v31 = vadd.f32 %v604_v16, %v490_v21 }
 0x105   : > { %714 = vst [vmem:[%s1139_s22 + $0xc8] sm:$0xff] %v682_v20  ;;  %v652_v32 = vadd.f32 %v620_v18, %v570_v22  ;;  %697 = vst [vmem:[%s1139_s22 + $0x40] sm:$0xff] %v665_v27  ;;  %v635_v33 = vadd.f32 %v603_v24, %v485_v29  ;;  %v914_v35 = vpop.f32.mrb[12].mxu0 }
 0x106   : > { %713 = vst [vmem:[%s1139_s22 + $0xc0] sm:$0xff] %v681_v28  ;;  %v651_v34 = vadd.f32 %v619_v26, %v565_v30  ;;  %v938_v37 = vpop.f32.mrb[12].mxu1  ;;  %v668_v39 = vmax.f32 %v636_v31, 0.0  ;;  %v500_v41 = vadd.f32 %v914_v35, %v1125_v45  ;;  %v494_v43 = vpop.f32.mrb[13].mxu0 }
 0x107   : > { %v684_v40 = vmax.f32 %v652_v32, 0.0  ;;  %v580_v42 = vadd.f32 %v938_v37, %v1125_v45  ;;  %v574_v46 = vpop.f32.mrb[13].mxu1  ;;  %v667_v48 = vmax.f32 %v635_v33, 0.0  ;;  %v495_v50 = vadd.f32 %v1125_v45, %v494_v43 }
 0x108   : > { %v683_v49 = vmax.f32 %v651_v34, 0.0  ;;  %v575_v51 = vadd.f32 %v1125_v45, %v574_v46  ;;  %700 = vst [vmem:[%s1139_s22 + $0x58] sm:$0xff] %v668_v39  ;;  %v638_v52 = vadd.f32 %v606_v36, %v500_v41 }
 0x109   : > { %716 = vst [vmem:[%s1139_s22 + $0xd8] sm:$0xff] %v684_v40  ;;  %v654_v53 = vadd.f32 %v622_v38, %v580_v42  ;;  %699 = vst [vmem:[%s1139_s22 + $0x50] sm:$0xff] %v667_v48  ;;  %v637_v54 = vadd.f32 %v605_v44, %v495_v50  ;;  %v917_v56 = vpop.f32.mrb[14].mxu0 }
 0x10a   : > { %715 = vst [vmem:[%s1139_s22 + $0xd0] sm:$0xff] %v683_v49  ;;  %v653_v55 = vadd.f32 %v621_v47, %v575_v51  ;;  %v941_v58 = vpop.f32.mrb[14].mxu1  ;;  %v670_v60 = vmax.f32 %v638_v52, 0.0  ;;  %v510_v62 = vadd.f32 %v917_v56, %v1125_v45  ;;  %v504_v0 = vpop.f32.mrb[15].mxu0 }
 0x10b   : > { %v686_v61 = vmax.f32 %v654_v53, 0.0  ;;  %v590_v63 = vadd.f32 %v941_v58, %v1125_v45  ;;  %v584_v2 = vpop.f32.mrb[15].mxu1  ;;  %v669_v4 = vmax.f32 %v637_v54, 0.0  ;;  %v505_v6 = vadd.f32 %v1125_v45, %v504_v0 }
 0x10c   : > { %v685_v5 = vmax.f32 %v653_v55, 0.0  ;;  %v585_v7 = vadd.f32 %v1125_v45, %v584_v2  ;;  %702 = vst [vmem:[%s1139_s22 + $0x68] sm:$0xff] %v670_v60  ;;  %v640_v8 = vadd.f32 %v608_v57, %v510_v62 }
 0x10d   : > { %718 = vst [vmem:[%s1139_s22 + $0xe8] sm:$0xff] %v686_v61  ;;  %v656_v9 = vadd.f32 %v624_v59, %v590_v63  ;;  %701 = vst [vmem:[%s1139_s22 + $0x60] sm:$0xff] %v669_v4  ;;  %v639_v10 = vadd.f32 %v607_v1, %v505_v6 }
 0x10e   : > { %717 = vst [vmem:[%s1139_s22 + $0xe0] sm:$0xff] %v685_v5  ;;  %v655_v11 = vadd.f32 %v623_v3, %v585_v7  ;;  %v672_v12 = vmax.f32 %v640_v8, 0.0 }
 0x10f   : > { %v688_v13 = vmax.f32 %v656_v9, 0.0  ;;  %v671_v14 = vmax.f32 %v639_v10, 0.0 }
 0x110   : > { %v687_v15 = vmax.f32 %v655_v11, 0.0  ;;  %704 = vst [vmem:[%s1139_s22 + $0x78] sm:$0xff] %v672_v12 }
 0x111   : > { %720 = vst [vmem:[%s1139_s22 + $0xf8] sm:$0xff] %v688_v13  ;;  %703 = vst [vmem:[%s1139_s22 + $0x70] sm:$0xff] %v671_v14 }
 0x112   : > { %719 = vst [vmem:[%s1139_s22 + $0xf0] sm:$0xff] %v687_v15 }
 0x113 PF: > { %s14_s15 = sadd.s32 1, %s982_s15  }
 0x114   : > { %p11_p4 = scmp.ge.s32.totalorder %s14_s15, 4  }
 0x116   :  { %13 = sbr.rel (!%p11_p4) target bundleno = 1 (0x1), region = 69 }

// kernel: _lambda_.13
= control target key start
LH: loop header
LB: loop body
LE: loop exit
PB: predicated region body
PF: predicated region fallthrough
CT: control target
= control target key end

     0   :  { %s529_s12 = smov 0   ;;  %s601_s0 = inlined_call_operand.vmem [shape: f32[128,72], index: 0, kind: input, shape index: {}]   ;;  %s602_s1 = inlined_call_operand.vmem [shape: f32[72,128], index: 1, kind: input, shape index: {}]   ;;  %s603_s2 = inlined_call_operand.vmem [shape: f32[1,128], index: 2, kind: input, shape index: {}]   ;;  %s604_s3 = inlined_call_operand.vmem [shape: f32[128,128], index: 3, kind: output, shape index: {}]  }
   0x1 LB: > { %s400_s13 = sadd.s32 4294967295, %s507_s12   ;;  %p404_p0 = scmp.ge.s32.totalorder %s507_s12, 1  ;;  %s507_s12 = sphi %s529_s12, %s13_s12  }
   0x2   : > { %p138_p1 = scmp.lt.s32.totalorder %s507_s12, 3 }
   0x4   : > { %p139_p2 = pnand %p404_p0, %p138_p1 }
   0x5   : > { %v182_v0 = vld [vmem:[%s602_s1] sm:$0xff] (!%p139_p2)  ;;  %v183_v1 = vld [vmem:[%s602_s1 + $0x8] sm:$0xff] (!%p139_p2)  ;;  %v184_v2 = vld [vmem:[%s602_s1 + $0x10] sm:$0xff] (!%p139_p2)  ;;  %s405_s20 = sshll.u32 (!%p139_p2), %s400_s13, 3  ;;  %vm198_vm0 = vcmask (!%p139_p2), 588800  }
   0x6   : > { %142 = sbr.rel (%p139_p2) target bundleno = 249 (0xf9), region = 32  ;;  %v467_v3 = vpack.c.bf16 (!%p139_p2), %v183_v1, %v182_v0  ;;  %v185_v4 = vld [vmem:[%s602_s1 + $0x18] sm:$0xff] (!%p139_p2)  ;;  %p163_p3 = scmp.lt.s32.totalorder (!%p139_p2), %s405_s20, 15  ;;  %v186_v6 = vld [vmem:[%s602_s1 + $0x20] sm:$0xff] (!%p139_p2)  ;;  %v187_v7 = vld [vmem:[%s602_s1 + $0x28] sm:$0xff] (!%p139_p2) }
   0x7   : > { %v471_v5 = vpack.c.bf16 (!%p139_p2), %v185_v4, %v184_v2  ;;  %v475_v8 = vpack.c.bf16 (!%p139_p2), %v187_v7, %v186_v6  ;;  %v188_v9 = vld [vmem:[%s602_s1 + $0x30] sm:$0xff] (!%p139_p2)  ;;  %v189_v10 = vld [vmem:[%s602_s1 + $0x38] sm:$0xff] (!%p139_p2)  ;;  %v190_v14 = vld [vmem:[%s602_s1 + $0x40] sm:$0xff] (!%p139_p2) }
   0x8   : > { %468 = vmatprep.subr.bf16.mxu0 (!%p139_p2), %v467_v3  ;;  %483 = vmatprep.subr.bf16.mxu1 (!%p139_p2), %v467_v3  ;;  %v479_v13 = vpack.c.bf16 (!%p139_p2), %v189_v10, %v188_v9  ;;  %v409_v21 = vld [vmem:[%s603_s2] ss:$0 sm:$0xff] (!%p139_p2) }
   0x9   : > { %470 = vmatpush3.bf16.msra.mxu0 (!%p139_p2), %v467_v3  ;;  %488 = vmatpush3.bf16.msra.mxu1 (!%p139_p2), %v467_v3 }
   0xa   : > { %472 = vmatprep.subr.bf16.mxu0 (!%p139_p2), %v471_v5  ;;  %484 = vmatprep.subr.bf16.mxu1 (!%p139_p2), %v471_v5 }
   0xd   : > { %s606_s20 = smov (!%p163_p3, %s405_s20), 15  ;;  %474 = vmatpush3.bf16.msra.mxu0 %v471_v5  ;;  %489 = vmatpush3.bf16.msra.mxu1 %v471_v5 }
   0xe   : > { %s406_s27 = sshll.u32 %s606_s20, 3  ;;  %476 = vmatprep.subr.bf16.mxu0 %v475_v8  ;;  %485 = vmatprep.subr.bf16.mxu1 %v475_v8 }
   0xf   : > { %s569_s7 = scalar_lea.vmem %s601_s0, %s406_s27  ;;  %s172_s15 = scalar_lea.vmem %s604_s3, %s406_s27 }
  0x10   : > { %v174_v11 = vld [vmem:[%s569_s7] sm:$0xff]  ;;  %v175_v15 = vld [vmem:[%s569_s7 + $0x8] sm:$0xff]  ;;  %v176_v17 = vld [vmem:[%s569_s7 + $0x10] sm:$0xff] }
  0x11   : > { %v178_v12 = vld [vmem:[%s569_s7 + $0x20] sm:$0xff]  ;;  %455 = vmatprep.mubr.msk.f32.mxu0 %vm198_vm0, %v174_v11  ;;  %478 = vmatpush3.bf16.msra.mxu0 %v475_v8  ;;  %v179_v16 = vld [vmem:[%s569_s7 + $0x28] sm:$0xff]  ;;  %v180_v18 = vld [vmem:[%s569_s7 + $0x30] sm:$0xff] }
  0x12   : > { %461 = vmatprep.mubr.msk.f32.mxu1 %vm198_vm0, %v178_v12  ;;  %490 = vmatpush3.bf16.msra.mxu1 %v475_v8  ;;  %v177_v19 = vld [vmem:[%s569_s7 + $0x18] sm:$0xff] }
  0x13   : > { %480 = vmatprep.subr.bf16.mxu0 %v479_v13  ;;  %486 = vmatprep.subr.bf16.mxu1 %v479_v13  ;;  %v181_v20 = vld [vmem:[%s569_s7 + $0x38] sm:$0xff] }
  0x15   : > { %482 = vmatpush3.bf16.msra.mxu0 %v479_v13 }
  0x16   : > { %491 = vmatpush3.bf16.msra.mxu1 %v479_v13  ;;  %453 = vmatprep.subr.mxu0 %v190_v14 }
  0x17   : > { %487 = vmatprep.subr.mxu1 %v190_v14 }
  0x19   : > { %454 = vmatpush3.msra.mxu0 %v190_v14 }
  0x1a   : > { %492 = vmatpush3.msra.mxu1 %v190_v14  ;;  %456 = vmatmul.mubr.msk.f32.vlgmr.msra.gmra.mrb[0].mxu0 %vm198_vm0, %v175_v15 }
  0x1b   : > { %462 = vmatmul.mubr.msk.f32.vlgmr.msra.gmra.mrb[0].mxu1 %vm198_vm0, %v179_v16  ;;  %458 = vmatprep.mubr.msk.f32.mxu0 %vm198_vm0, %v176_v17 }
  0x1c   : > { %464 = vmatprep.mubr.msk.f32.mxu1 %vm198_vm0, %v180_v18 }
  0x1e   : > { %459 = vmatmul.mubr.msk.f32.gmra.mrb[2].mxu0 %vm198_vm0, %v177_v19 }
  0x1f   : > { %465 = vmatmul.mubr.msk.f32.gmra.mrb[2].mxu1 %vm198_vm0, %v181_v20 }
  0xed   : > { %v457_v22 = vpop.f32.mrb[0].mxu0 }
  0xee   : > { %v463_v23 = vpop.f32.mrb[0].mxu1  ;;  %v295_v24 = vadd.f32 %v457_v22, %v409_v21  ;;  %v289_v26 = vpop.f32.mrb[1].mxu0 }
  0xef   : > { %v315_v25 = vadd.f32 %v463_v23, %v409_v21  ;;  %v309_v27 = vpop.f32.mrb[1].mxu1  ;;  %v290_v28 = vadd.f32 %v409_v21, %v289_v26 }
  0xf0   : > { %v310_v29 = vadd.f32 %v409_v21, %v309_v27  ;;  %v329_v30 = vmax.f32 %v295_v24, 0.0 }
  0xf1   : > { %v333_v31 = vmax.f32 %v315_v25, 0.0  ;;  %v328_v32 = vmax.f32 %v290_v28, 0.0  ;;  %v460_v34 = vpop.f32.mrb[2].mxu0 }
  0xf2   : > { %v332_v33 = vmax.f32 %v310_v29, 0.0  ;;  %v466_v35 = vpop.f32.mrb[2].mxu1  ;;  %337 = vst [vmem:[%s172_s15 + $0x8] sm:$0xff] %v329_v30  ;;  %v305_v36 = vadd.f32 %v460_v34, %v409_v21  ;;  %v299_v38 = vpop.f32.mrb[3].mxu0 }
  0xf3   : > { %341 = vst [vmem:[%s172_s15 + $0x28] sm:$0xff] %v333_v31  ;;  %v325_v37 = vadd.f32 %v466_v35, %v409_v21  ;;  %v319_v39 = vpop.f32.mrb[3].mxu1  ;;  %336 = vst [vmem:[%s172_s15] sm:$0xff] %v328_v32  ;;  %v300_v40 = vadd.f32 %v409_v21, %v299_v38 }
  0xf4   : > { %340 = vst [vmem:[%s172_s15 + $0x20] sm:$0xff] %v332_v33  ;;  %v320_v41 = vadd.f32 %v409_v21, %v319_v39  ;;  %v331_v42 = vmax.f32 %v305_v36, 0.0 }
  0xf5   : > { %v335_v43 = vmax.f32 %v325_v37, 0.0  ;;  %v330_v44 = vmax.f32 %v300_v40, 0.0 }
  0xf6   : > { %v334_v45 = vmax.f32 %v320_v41, 0.0  ;;  %339 = vst [vmem:[%s172_s15 + $0x18] sm:$0xff] %v331_v42 }
  0xf7   : > { %343 = vst [vmem:[%s172_s15 + $0x38] sm:$0xff] %v335_v43  ;;  %338 = vst [vmem:[%s172_s15 + $0x10] sm:$0xff] %v330_v44 }
  0xf8   : > { %342 = vst [vmem:[%s172_s15 + $0x30] sm:$0xff] %v334_v45 }
  0xf9 PF: > { %s13_s12 = sadd.s32 1, %s507_s12  }
  0xfa   : > { %p10_p4 = scmp.ge.s32.totalorder %s13_s12, 4  }
  0xfc   :  { %12 = sbr.rel (!%p10_p4) target bundleno = 1 (0x1), region = 62 }

// kernel: _lambda_.14
= control target key start
LH: loop header
LB: loop body
LE: loop exit
PB: predicated region body
PF: predicated region fallthrough
CT: control target
= control target key end

     0   :  { %s843_s21 = smov 0   ;;  %s1006_s0 = inlined_call_operand.vmem [shape: f32[128,144], index: 0, kind: input, shape index: {}]   ;;  %s1007_s1 = inlined_call_operand.vmem [shape: f32[144,128], index: 1, kind: input, shape index: {}]   ;;  %s1008_s2 = inlined_call_operand.vmem [shape: f32[1,128], index: 2, kind: input, shape index: {}]   ;;  %s1009_s3 = inlined_call_operand.vmem [shape: f32[128,8], index: 3, kind: input, shape index: {}]   ;;  %s1010_s4 = inlined_call_operand.vmem [shape: f32[8,128], index: 4, kind: input, shape index: {}]   ;;  %s1011_s5 = inlined_call_operand.vmem [shape: f32[1,128], index: 5, kind: input, shape index: {}]   ;;  %s1012_s6 = inlined_call_operand.vmem [shape: f32[128,128], index: 6, kind: output, shape index: {}]  }
   0x1 LB: > { %s689_s22 = sadd.s32 4294967295, %s805_s21   ;;  %p693_p0 = scmp.ge.s32.totalorder %s805_s21, 1  ;;  %s805_s21 = sphi %s843_s21, %s16_s21  }
   0x2   : > { %p225_p1 = scmp.lt.s32.totalorder %s805_s21, 3 }
   0x4   : > { %p226_p2 = pnand %p693_p0, %p225_p1 }
   0x5   : > { %v296_v0 = vld [vmem:[%s1007_s1] sm:$0xff] (!%p226_p2)  ;;  %v297_v1 = vld [vmem:[%s1007_s1 + $0x8] sm:$0xff] (!%p226_p2)  ;;  %v298_v2 = vld [vmem:[%s1007_s1 + $0x10] sm:$0xff] (!%p226_p2)  ;;  %s694_s29 = sshll.u32 (!%p226_p2), %s689_s22, 3  ;;  %v807_v3 = vmov (!%p226_p2), 0.0|0.0   ;;  %vm321_vm0 = vcmask (!%p226_p2), 130048  }
   0x6   : > { %229 = sbr.rel (%p226_p2) target bundleno = 283 (0x11b), region = 44  ;;  %745 = vmatprep.subr.bf16.mxu0 (!%p226_p2), %v807_v3  ;;  %772 = vmatprep.subr.bf16.mxu1 (!%p226_p2), %v807_v3  ;;  %v746_v4 = vpack.c.bf16 (!%p226_p2), %v297_v1, %v296_v0  ;;  %v299_v5 = vld [vmem:[%s1007_s1 + $0x18] sm:$0xff] (!%p226_p2)  ;;  %p262_p3 = scmp.lt.s32.totalorder (!%p226_p2), %s694_s29, 15  ;;  %v300_v7 = vld [vmem:[%s1007_s1 + $0x20] sm:$0xff] (!%p226_p2)  ;;  %v301_v8 = vld [vmem:[%s1007_s1 + $0x28] sm:$0xff] (!%p226_p2)  ;;  %vm467_vm1 = vcmask (!%p226_p2), 64512  }
   0x7   : > { %v749_v6 = vpack.c.bf16 (!%p226_p2), %v299_v5, %v298_v2  ;;  %v752_v9 = vpack.c.bf16 (!%p226_p2), %v301_v8, %v300_v7  ;;  %v302_v12 = vld [vmem:[%s1007_s1 + $0x30] sm:$0xff] (!%p226_p2)  ;;  %v303_v13 = vld [vmem:[%s1007_s1 + $0x38] sm:$0xff] (!%p226_p2)  ;;  %v304_v15 = vld [vmem:[%s1007_s1 + $0x40] sm:$0xff] (!%p226_p2) }
   0x8   : > { %747 = vmatpush1.bf16.msra.mxu0 (!%p226_p2), %v746_v4  ;;  %781 = vmatpush1.bf16.msra.mxu1 (!%p226_p2), %v746_v4  ;;  %v755_v14 = vpack.c.bf16 (!%p226_p2), %v303_v13, %v302_v12  ;;  %v305_v16 = vld [vmem:[%s1007_s1 + $0x48] sm:$0xff] (!%p226_p2)  ;;  %v306_v18 = vld [vmem:[%s1007_s1 + $0x50] sm:$0xff] (!%p226_p2)  ;;  %v307_v19 = vld [vmem:[%s1007_s1 + $0x58] sm:$0xff] (!%p226_p2) }
   0x9   : > { %748 = vmatprep.subr.bf16.mxu0 (!%p226_p2), %v807_v3  ;;  %773 = vmatprep.subr.bf16.mxu1 (!%p226_p2), %v807_v3  ;;  %v758_v17 = vpack.c.bf16 (!%p226_p2), %v305_v16, %v304_v15  ;;  %v761_v20 = vpack.c.bf16 (!%p226_p2), %v307_v19, %v306_v18  ;;  %v308_v21 = vld [vmem:[%s1007_s1 + $0x60] sm:$0xff] (!%p226_p2)  ;;  %v309_v22 = vld [vmem:[%s1007_s1 + $0x68] sm:$0xff] (!%p226_p2)  ;;  %v310_v24 = vld [vmem:[%s1007_s1 + $0x70] sm:$0xff] (!%p226_p2) }
   0xa   : > { %v764_v23 = vpack.c.bf16 (!%p226_p2), %v309_v22, %v308_v21  ;;  %v311_v25 = vld [vmem:[%s1007_s1 + $0x78] sm:$0xff] (!%p226_p2)  ;;  %v312_v27 = vld [vmem:[%s1007_s1 + $0x80] sm:$0xff] (!%p226_p2)  ;;  %v313_v28 = vld [vmem:[%s1007_s1 + $0x88] sm:$0xff] (!%p226_p2) }
   0xb   : > { %v767_v26 = vpack.c.bf16 (!%p226_p2), %v311_v25, %v310_v24  ;;  %v770_v29 = vpack.c.bf16 (!%p226_p2), %v313_v28, %v312_v27  ;;  %v459_v30 = vld [vmem:[%s1010_s4] sm:$0xff] (!%p226_p2) }
   0xc   : > { %750 = vmatpush1.bf16.msra.mxu0 (!%p226_p2), %v749_v6  ;;  %782 = vmatpush1.bf16.msra.mxu1 (!%p226_p2), %v749_v6  ;;  %v710_v61 = vld [vmem:[%s1011_s5] ss:$0 sm:$0xff] (!%p226_p2) }
   0xd   : > { %s1014_s29 = smov (!%p262_p3, %s694_s29), 15  ;;  %751 = vmatprep.subr.bf16.mxu0 %v807_v3  ;;  %774 = vmatprep.subr.bf16.mxu1 %v807_v3  ;;  %v701_v62 = vld [vmem:[%s1008_s2] ss:$0 sm:$0xff] }
   0xe   : > { %s721_s12 = sshll.u32 %s1014_s29, 4  ;;  %s698_s22 = sshll.u32 %s1014_s29, 3 }
   0xf   : > { %s879_s15 = scalar_lea.vmem %s1006_s0, %s721_s12  ;;  %s948_s25 = scalar_lea.vmem %s1009_s3, %s698_s22 }
  0x10   : > { %v281_v10 = vld [vmem:[%s879_s15 + $0x8] sm:$0xff]  ;;  %753 = vmatpush1.bf16.msra.mxu0 %v752_v9  ;;  %783 = vmatpush1.bf16.msra.mxu1 %v752_v9  ;;  %v280_v31 = vld [vmem:[%s879_s15] sm:$0xff]  ;;  %v283_v33 = vld [vmem:[%s879_s15 + $0x18] sm:$0xff]  ;;  %s993_s8 = scalar_lea.vmem %s1012_s6, %s698_s22 }
  0x11   : > { %v293_v11 = vld [vmem:[%s879_s15 + $0x68] sm:$0xff]  ;;  %702 = vmatprep.mubr.msk.f32.mxu0 %vm321_vm0, %v281_v10  ;;  %754 = vmatprep.subr.bf16.mxu0 %v807_v3  ;;  %v292_v32 = vld [vmem:[%s879_s15 + $0x60] sm:$0xff]  ;;  %v295_v34 = vld [vmem:[%s879_s15 + $0x78] sm:$0xff] }
  0x12   : > { %708 = vmatprep.mubr.msk.f32.mxu1 %vm321_vm0, %v293_v11  ;;  %775 = vmatprep.subr.bf16.mxu1 %v807_v3  ;;  %v282_v35 = vld [vmem:[%s879_s15 + $0x10] sm:$0xff]  ;;  %v285_v37 = vld [vmem:[%s879_s15 + $0x28] sm:$0xff]  ;;  %v451_v38 = vld [vmem:[%s948_s25] sm:$0xff] }
  0x13   : > { %v294_v36 = vld [vmem:[%s879_s15 + $0x70] sm:$0xff]  ;;  %v284_v39 = vld [vmem:[%s879_s15 + $0x20] sm:$0xff]  ;;  %v452_v40 = vld [vmem:[%s948_s25 + $0x8] sm:$0xff] }
  0x14   : > { %756 = vmatpush1.bf16.msra.mxu0 %v755_v14  ;;  %784 = vmatpush1.bf16.msra.mxu1 %v755_v14  ;;  %v287_v41 = vld [vmem:[%s879_s15 + $0x38] sm:$0xff]  ;;  %v453_v42 = vld [vmem:[%s948_s25 + $0x10] sm:$0xff]  ;;  %v289_v45 = vld [vmem:[%s879_s15 + $0x48] sm:$0xff] }
  0x15   : > { %757 = vmatprep.subr.bf16.mxu0 %v807_v3  ;;  %776 = vmatprep.subr.bf16.mxu1 %v807_v3  ;;  %v286_v43 = vld [vmem:[%s879_s15 + $0x30] sm:$0xff]  ;;  %v454_v44 = vld [vmem:[%s948_s25 + $0x18] sm:$0xff]  ;;  %v455_v46 = vld [vmem:[%s948_s25 + $0x20] sm:$0xff] }
  0x16   : > { %v288_v47 = vld [vmem:[%s879_s15 + $0x40] sm:$0xff]  ;;  %v456_v48 = vld [vmem:[%s948_s25 + $0x28] sm:$0xff]  ;;  %v291_v49 = vld [vmem:[%s879_s15 + $0x58] sm:$0xff] }
  0x17   : > { %v457_v50 = vld [vmem:[%s948_s25 + $0x30] sm:$0xff]  ;;  %v458_v52 = vld [vmem:[%s948_s25 + $0x38] sm:$0xff] }
  0x18   : > { %759 = vmatpush1.bf16.msra.mxu0 %v758_v17  ;;  %785 = vmatpush1.bf16.msra.mxu1 %v758_v17  ;;  %v290_v51 = vld [vmem:[%s879_s15 + $0x50] sm:$0xff] }
  0x19   : > { %760 = vmatprep.subr.bf16.mxu0 %v807_v3  ;;  %777 = vmatprep.subr.bf16.mxu1 %v807_v3 }
  0x1c   : > { %762 = vmatpush1.bf16.msra.mxu0 %v761_v20  ;;  %786 = vmatpush1.bf16.msra.mxu1 %v761_v20 }
  0x1d   : > { %763 = vmatprep.subr.bf16.mxu0 %v807_v3  ;;  %778 = vmatprep.subr.bf16.mxu1 %v807_v3 }
  0x20   : > { %765 = vmatpush1.bf16.msra.mxu0 %v764_v23  ;;  %787 = vmatpush1.bf16.msra.mxu1 %v764_v23 }
  0x21   : > { %766 = vmatprep.subr.bf16.mxu0 %v807_v3  ;;  %779 = vmatprep.subr.bf16.mxu1 %v807_v3 }
  0x24   : > { %768 = vmatpush1.bf16.msra.mxu0 %v767_v26  ;;  %788 = vmatpush1.bf16.msra.mxu1 %v767_v26 }
  0x25   : > { %769 = vmatprep.subr.bf16.mxu0 %v807_v3  ;;  %780 = vmatprep.subr.bf16.mxu1 %v807_v3 }
  0x28   : > { %771 = vmatpush1.bf16.msra.mxu0 %v770_v29  ;;  %789 = vmatpush1.bf16.msra.mxu1 %v770_v29 }
  0x29   : > { %731 = vmatprep.subr.mxu1 %v459_v30 }
  0x2b   : > { %411 = vmatmul.mubr.f32.vlgmr.msra.gmra.mrb[0].mxu0 %v280_v31  ;;  %441 = vmatmul.mubr.f32.vlgmr.msra.gmra.mrb[0].mxu1 %v292_v32 }
  0x2c   : > { %732 = vmatpush3.msra.mxu1 %v459_v30  ;;  %703 = vmatprep.mubr.msk.f32.mxu0 %vm321_vm0, %v283_v33 }
  0x2d   : > { %709 = vmatprep.mubr.msk.f32.mxu1 %vm321_vm0, %v295_v34 }
  0x2f   : > { %416 = vmatmul.mubr.f32.gmra.mrb[2].mxu0 %v282_v35  ;;  %446 = vmatmul.mubr.f32.gmra.mrb[2].mxu1 %v294_v36 }
  0x30   : > { %704 = vmatprep.mubr.msk.f32.mxu0 %vm321_vm0, %v285_v37  ;;  %733 = vmatprep.mubr.msk.f32.mxu1 %vm467_vm1, %v451_v38 }
  0x33   : > { %421 = vmatmul.mubr.f32.gmra.mrb[4].mxu0 %v284_v39  ;;  %734 = vmatmul.mubr.msk.f32.vlgmr.msra.gmra.mrb[4].mxu1 %vm467_vm1, %v452_v40 }
  0x34   : > { %705 = vmatprep.mubr.msk.f32.mxu0 %vm321_vm0, %v287_v41  ;;  %736 = vmatprep.mubr.msk.f32.mxu1 %vm467_vm1, %v453_v42 }
  0x37   : > { %426 = vmatmul.mubr.f32.gmra.mrb[6].mxu0 %v286_v43  ;;  %737 = vmatmul.mubr.msk.f32.gmra.mrb[6].mxu1 %vm467_vm1, %v454_v44 }
  0x38   : > { %706 = vmatprep.mubr.msk.f32.mxu0 %vm321_vm0, %v289_v45  ;;  %739 = vmatprep.mubr.msk.f32.mxu1 %vm467_vm1, %v455_v46 }
  0x3b   : > { %431 = vmatmul.mubr.f32.gmra.mrb[8].mxu0 %v288_v47  ;;  %740 = vmatmul.mubr.msk.f32.gmra.mrb[8].mxu1 %vm467_vm1, %v456_v48 }
  0x3c   : > { %707 = vmatprep.mubr.msk.f32.mxu0 %vm321_vm0, %v291_v49  ;;  %742 = vmatprep.mubr.msk.f32.mxu1 %vm467_vm1, %v457_v50 }
  0x3f   : > { %436 = vmatmul.mubr.f32.gmra.mrb[10].mxu0 %v290_v51  ;;  %743 = vmatmul.mubr.msk.f32.gmra.mrb[10].mxu1 %vm467_vm1, %v458_v52 }
  0xfe   : > { %v442_v53 = vpop.f32.mrb[0].mxu1  ;;  %v412_v54 = vpop.f32.mrb[0].mxu0 }
  0xff   : > { %v444_v55 = vpop.f32.mrb[1].mxu1  ;;  %v414_v56 = vpop.f32.mrb[1].mxu0  ;;  %v413_v5 = vadd.f32 %v701_v62, %v412_v54  ;;  %v443_v38 = vadd.f32 %v701_v62, %v442_v53 }
 0x102   : > { %v447_v57 = vpop.f32.mrb[2].mxu1  ;;  %v417_v58 = vpop.f32.mrb[2].mxu0 }
 0x103   : > { %v449_v59 = vpop.f32.mrb[3].mxu1  ;;  %v419_v60 = vpop.f32.mrb[3].mxu0  ;;  %v418_v1 = vadd.f32 %v701_v62, %v417_v58  ;;  %v448_v32 = vadd.f32 %v701_v62, %v447_v57 }
 0x106   : > { %v735_v63 = vpop.f32.mrb[4].mxu1  ;;  %v422_v0 = vpop.f32.mrb[4].mxu0 }
 0x107   : > { %v564_v2 = vadd.f32 %v735_v63, %v710_v61  ;;  %v558_v3 = vpop.f32.mrb[5].mxu1  ;;  %v424_v4 = vpop.f32.mrb[5].mxu0  ;;  %v423_v16 = vadd.f32 %v701_v62, %v422_v0 }
 0x108   : > { %v559_v6 = vadd.f32 %v710_v61, %v558_v3 }
 0x109   : > { %v598_v7 = vadd.f32 %v564_v2, %v418_v1 }
 0x10a   : > { %v597_v8 = vadd.f32 %v559_v6, %v413_v5  ;;  %v738_v9 = vpop.f32.mrb[6].mxu1  ;;  %v427_v10 = vpop.f32.mrb[6].mxu0 }
 0x10b   : > { %v606_v11 = vmax.f32 %v598_v7, 0.0  ;;  %v574_v12 = vadd.f32 %v738_v9, %v710_v61  ;;  %v428_v13 = vadd.f32 %v701_v62, %v427_v10  ;;  %v568_v14 = vpop.f32.mrb[7].mxu1  ;;  %v429_v15 = vpop.f32.mrb[7].mxu0 }
 0x10c   : > { %v605_v17 = vmax.f32 %v597_v8, 0.0  ;;  %v569_v18 = vadd.f32 %v710_v61, %v568_v14 }
 0x10d   : > { %614 = vst [vmem:[%s993_s8 + $0x8] sm:$0xff] %v606_v11  ;;  %v600_v19 = vadd.f32 %v574_v12, %v428_v13 }
 0x10e   : > { %613 = vst [vmem:[%s993_s8] sm:$0xff] %v605_v17  ;;  %v599_v20 = vadd.f32 %v569_v18, %v423_v16  ;;  %v741_v21 = vpop.f32.mrb[8].mxu1  ;;  %v432_v22 = vpop.f32.mrb[8].mxu0 }
 0x10f   : > { %v608_v23 = vmax.f32 %v600_v19, 0.0  ;;  %v433_v24 = vadd.f32 %v701_v62, %v432_v22  ;;  %v578_v25 = vpop.f32.mrb[9].mxu1  ;;  %v434_v26 = vpop.f32.mrb[9].mxu0  ;;  %v584_v33 = vadd.f32 %v741_v21, %v710_v61 }
 0x110   : > { %v607_v27 = vmax.f32 %v599_v20, 0.0  ;;  %v579_v28 = vadd.f32 %v710_v61, %v578_v25 }
 0x111   : > { %616 = vst [vmem:[%s993_s8 + $0x18] sm:$0xff] %v608_v23 }
 0x112   : > { %615 = vst [vmem:[%s993_s8 + $0x10] sm:$0xff] %v607_v27  ;;  %v601_v29 = vadd.f32 %v579_v28, %v433_v24  ;;  %v437_v30 = vpop.f32.mrb[10].mxu0  ;;  %v744_v31 = vpop.f32.mrb[10].mxu1 }
 0x113   : > { %v438_v34 = vadd.f32 %v701_v62, %v437_v30  ;;  %v594_v35 = vadd.f32 %v744_v31, %v710_v61  ;;  %v588_v36 = vpop.f32.mrb[11].mxu1  ;;  %v439_v37 = vpop.f32.mrb[11].mxu0 }
 0x114   : > { %v609_v39 = vmax.f32 %v601_v29, 0.0  ;;  %v589_v40 = vadd.f32 %v710_v61, %v588_v36 }
 0x115   : > { %v602_v41 = vadd.f32 %v584_v33, %v438_v34  ;;  %v604_v42 = vadd.f32 %v594_v35, %v448_v32 }
 0x116   : > { %617 = vst [vmem:[%s993_s8 + $0x20] sm:$0xff] %v609_v39  ;;  %v603_v43 = vadd.f32 %v589_v40, %v443_v38 }
 0x117   : > { %v610_v44 = vmax.f32 %v602_v41, 0.0  ;;  %v612_v45 = vmax.f32 %v604_v42, 0.0 }
 0x118   : > { %v611_v46 = vmax.f32 %v603_v43, 0.0 }
 0x119   : > { %618 = vst [vmem:[%s993_s8 + $0x28] sm:$0xff] %v610_v44  ;;  %620 = vst [vmem:[%s993_s8 + $0x38] sm:$0xff] %v612_v45 }
 0x11a   : > { %619 = vst [vmem:[%s993_s8 + $0x30] sm:$0xff] %v611_v46 }
 0x11b PF: > { %s16_s21 = sadd.s32 1, %s805_s21  }
 0x11c   : > { %p13_p4 = scmp.ge.s32.totalorder %s16_s21, 4  }
 0x11e   :  { %15 = sbr.rel (!%p13_p4) target bundleno = 1 (0x1), region = 77 }

// kernel: _lambda_.15
= control target key start
LH: loop header
LB: loop body
LE: loop exit
PB: predicated region body
PF: predicated region fallthrough
CT: control target
= control target key end

     0   :  { %v208_v0 = vmov 0.0|0.0   ;;  %vm47_vm0 = vcmask 130048   ;;  %s344_s1 = inlined_call_operand.vmem [shape: f32[144,128], index: 1, kind: input, shape index: {}]   ;;  %s345_s0 = inlined_call_operand.vmem [shape: f32[32,144], index: 0, kind: input, shape index: {}]   ;;  %s346_s2 = inlined_call_operand.vmem [shape: f32[1,128], index: 2, kind: input, shape index: {}]   ;;  %s347_s3 = inlined_call_operand.vmem [shape: f32[32,128], index: 3, kind: output, shape index: {}]  }
   0x1   :  { %162 = vmatprep.subr.bf16.mxu0 %v208_v0  ;;  %189 = vmatprep.subr.bf16.mxu1 %v208_v0  ;;  %v22_v1 = vld [vmem:[%s344_s1] sm:$0xff]  ;;  %v23_v2 = vld [vmem:[%s344_s1 + $0x8] sm:$0xff]  ;;  %v24_v3 = vld [vmem:[%s344_s1 + $0x10] sm:$0xff] }
   0x2   :  { %v163_v4 = vpack.c.bf16 %v23_v2, %v22_v1  ;;  %v25_v5 = vld [vmem:[%s344_s1 + $0x18] sm:$0xff]  ;;  %v26_v7 = vld [vmem:[%s344_s1 + $0x20] sm:$0xff]  ;;  %v27_v8 = vld [vmem:[%s344_s1 + $0x28] sm:$0xff] }
   0x3   :  { %v166_v6 = vpack.c.bf16 %v25_v5, %v24_v3  ;;  %v15_v9 = vld [vmem:[%s345_s0 + $0x8] sm:$0xff]  ;;  %v169_v11 = vpack.c.bf16 %v27_v8, %v26_v7  ;;  %v28_v12 = vld [vmem:[%s344_s1 + $0x30] sm:$0xff]  ;;  %v29_v13 = vld [vmem:[%s344_s1 + $0x38] sm:$0xff] }
   0x4   :  { %164 = vmatpush1.bf16.msra.mxu0 %v163_v4  ;;  %198 = vmatpush1.bf16.msra.mxu1 %v163_v4  ;;  %v19_v10 = vld [vmem:[%s345_s0 + $0x28] sm:$0xff]  ;;  %v172_v14 = vpack.c.bf16 %v29_v13, %v28_v12  ;;  %v30_v15 = vld [vmem:[%s344_s1 + $0x40] sm:$0xff]  ;;  %v32_v18 = vld [vmem:[%s344_s1 + $0x50] sm:$0xff] }
   0x5   :  { %165 = vmatprep.subr.bf16.mxu0 %v208_v0  ;;  %190 = vmatprep.subr.bf16.mxu1 %v208_v0  ;;  %v31_v16 = vld [vmem:[%s344_s1 + $0x48] sm:$0xff]  ;;  %v33_v19 = vld [vmem:[%s344_s1 + $0x58] sm:$0xff]  ;;  %v34_v21 = vld [vmem:[%s344_s1 + $0x60] sm:$0xff] }
   0x6   :  { %158 = vmatprep.mubr.msk.f32.mxu0 %vm47_vm0, %v15_v9  ;;  %160 = vmatprep.mubr.msk.f32.mxu1 %vm47_vm0, %v19_v10  ;;  %v175_v17 = vpack.c.bf16 %v31_v16, %v30_v15  ;;  %v178_v20 = vpack.c.bf16 %v33_v19, %v32_v18  ;;  %v35_v22 = vld [vmem:[%s344_s1 + $0x68] sm:$0xff]  ;;  %v36_v24 = vld [vmem:[%s344_s1 + $0x70] sm:$0xff]  ;;  %v37_v25 = vld [vmem:[%s344_s1 + $0x78] sm:$0xff] }
   0x7   :  { %v181_v23 = vpack.c.bf16 %v35_v22, %v34_v21  ;;  %v184_v26 = vpack.c.bf16 %v37_v25, %v36_v24  ;;  %v38_v27 = vld [vmem:[%s344_s1 + $0x80] sm:$0xff]  ;;  %v39_v28 = vld [vmem:[%s344_s1 + $0x88] sm:$0xff]  ;;  %v17_v32 = vld [vmem:[%s345_s0 + $0x18] sm:$0xff] }
   0x8   :  { %167 = vmatpush1.bf16.msra.mxu0 %v166_v6  ;;  %199 = vmatpush1.bf16.msra.mxu1 %v166_v6  ;;  %v187_v29 = vpack.c.bf16 %v39_v28, %v38_v27  ;;  %v14_v30 = vld [vmem:[%s345_s0] sm:$0xff]  ;;  %v21_v33 = vld [vmem:[%s345_s0 + $0x38] sm:$0xff]  ;;  %v16_v34 = vld [vmem:[%s345_s0 + $0x10] sm:$0xff] }
   0x9   :  { %168 = vmatprep.subr.bf16.mxu0 %v208_v0  ;;  %191 = vmatprep.subr.bf16.mxu1 %v208_v0  ;;  %v18_v31 = vld [vmem:[%s345_s0 + $0x20] sm:$0xff]  ;;  %v20_v35 = vld [vmem:[%s345_s0 + $0x30] sm:$0xff] }
   0xa   :  { %v157_v36 = vld [vmem:[%s346_s2] ss:$0 sm:$0xff] }
   0xc   :  { %170 = vmatpush1.bf16.msra.mxu0 %v169_v11  ;;  %200 = vmatpush1.bf16.msra.mxu1 %v169_v11 }
   0xd   :  { %171 = vmatprep.subr.bf16.mxu0 %v208_v0  ;;  %192 = vmatprep.subr.bf16.mxu1 %v208_v0 }
  0x10   :  { %173 = vmatpush1.bf16.msra.mxu0 %v172_v14  ;;  %201 = vmatpush1.bf16.msra.mxu1 %v172_v14 }
  0x11   :  { %174 = vmatprep.subr.bf16.mxu0 %v208_v0  ;;  %193 = vmatprep.subr.bf16.mxu1 %v208_v0 }
  0x14   :  { %176 = vmatpush1.bf16.msra.mxu0 %v175_v17  ;;  %202 = vmatpush1.bf16.msra.mxu1 %v175_v17 }
  0x15   :  { %177 = vmatprep.subr.bf16.mxu0 %v208_v0  ;;  %194 = vmatprep.subr.bf16.mxu1 %v208_v0 }
  0x18   :  { %179 = vmatpush1.bf16.msra.mxu0 %v178_v20  ;;  %203 = vmatpush1.bf16.msra.mxu1 %v178_v20 }
  0x19   :  { %180 = vmatprep.subr.bf16.mxu0 %v208_v0  ;;  %195 = vmatprep.subr.bf16.mxu1 %v208_v0 }
  0x1c   :  { %182 = vmatpush1.bf16.msra.mxu0 %v181_v23  ;;  %204 = vmatpush1.bf16.msra.mxu1 %v181_v23 }
  0x1d   :  { %183 = vmatprep.subr.bf16.mxu0 %v208_v0  ;;  %196 = vmatprep.subr.bf16.mxu1 %v208_v0 }
  0x20   :  { %185 = vmatpush1.bf16.msra.mxu0 %v184_v26  ;;  %205 = vmatpush1.bf16.msra.mxu1 %v184_v26 }
  0x21   :  { %186 = vmatprep.subr.bf16.mxu0 %v208_v0  ;;  %197 = vmatprep.subr.bf16.mxu1 %v208_v0 }
  0x24   :  { %188 = vmatpush1.bf16.msra.mxu0 %v187_v29  ;;  %206 = vmatpush1.bf16.msra.mxu1 %v187_v29 }
  0x27   :  { %125 = vmatmul.mubr.f32.vlgmr.msra.gmra.mrb[0].mxu0 %v14_v30  ;;  %135 = vmatmul.mubr.f32.vlgmr.msra.gmra.mrb[0].mxu1 %v18_v31 }
  0x28   :  { %159 = vmatprep.mubr.msk.f32.mxu0 %vm47_vm0, %v17_v32  ;;  %161 = vmatprep.mubr.msk.f32.mxu1 %vm47_vm0, %v21_v33 }
  0x2b   :  { %130 = vmatmul.mubr.f32.gmra.mrb[2].mxu0 %v16_v34  ;;  %140 = vmatmul.mubr.f32.gmra.mrb[2].mxu1 %v20_v35 }
  0xfa   :  { %v126_v37 = vpop.f32.mrb[0].mxu0  ;;  %v136_v38 = vpop.f32.mrb[0].mxu1 }
  0xfb   :  { %v127_v39 = vadd.f32 %v157_v36, %v126_v37  ;;  %v137_v40 = vadd.f32 %v157_v36, %v136_v38  ;;  %v128_v41 = vpop.f32.mrb[1].mxu0  ;;  %v138_v42 = vpop.f32.mrb[1].mxu1 }
  0xfd   :  { %v145_v43 = vmax.f32 %v127_v39, 0.0  ;;  %v147_v44 = vmax.f32 %v137_v40, 0.0 }
  0xfe   :  { %v131_v45 = vpop.f32.mrb[2].mxu0  ;;  %v141_v46 = vpop.f32.mrb[2].mxu1 }
  0xff   :  { %149 = vst [vmem:[%s347_s3] sm:$0xff] %v145_v43  ;;  %151 = vst [vmem:[%s347_s3 + $0x10] sm:$0xff] %v147_v44  ;;  %v132_v47 = vadd.f32 %v157_v36, %v131_v45  ;;  %v142_v48 = vadd.f32 %v157_v36, %v141_v46  ;;  %v133_v49 = vpop.f32.mrb[3].mxu0  ;;  %v143_v50 = vpop.f32.mrb[3].mxu1 }
 0x101   :  { %v146_v51 = vmax.f32 %v132_v47, 0.0  ;;  %v148_v52 = vmax.f32 %v142_v48, 0.0 }
 0x103   :  { %150 = vst [vmem:[%s347_s3 + $0x8] sm:$0xff] %v146_v51  ;;  %152 = vst [vmem:[%s347_s3 + $0x18] sm:$0xff] %v148_v52 }

// kernel: _lambda_.16
= control target key start
LH: loop header
LB: loop body
LE: loop exit
PB: predicated region body
PF: predicated region fallthrough
CT: control target
= control target key end

     0   :  { %vm78_vm0 = vcmask 261120   ;;  %vm274_vm1 = vcmask 130048   ;;  %s759_s1 = inlined_call_operand.vmem [shape: f32[288,128], index: 1, kind: input, shape index: {}]   ;;  %s760_s0 = inlined_call_operand.vmem [shape: f32[32,288], index: 0, kind: input, shape index: {}]   ;;  %s761_s4 = inlined_call_operand.vmem [shape: f32[16,128], index: 4, kind: input, shape index: {}]   ;;  %s762_s3 = inlined_call_operand.vmem [shape: f32[32,16], index: 3, kind: input, shape index: {}]   ;;  %s763_s2 = inlined_call_operand.vmem [shape: f32[1,128], index: 2, kind: input, shape index: {}]   ;;  %s764_s5 = inlined_call_operand.vmem [shape: f32[1,128], index: 5, kind: input, shape index: {}]   ;;  %s765_s6 = inlined_call_operand.vmem [shape: f32[32,128], index: 6, kind: output, shape index: {}]  }
   0x1   :  { %v51_v0 = vld [vmem:[%s759_s1 + $0x80] sm:$0xff]  ;;  %v52_v1 = vld [vmem:[%s759_s1 + $0x88] sm:$0xff]  ;;  %v53_v5 = vld [vmem:[%s759_s1 + $0x90] sm:$0xff] }
   0x2   :  { %v35_v2 = vld [vmem:[%s759_s1] sm:$0xff]  ;;  %v480_v3 = vpack.c.bf16 %v52_v1, %v51_v0  ;;  %v36_v4 = vld [vmem:[%s759_s1 + $0x8] sm:$0xff]  ;;  %v54_v6 = vld [vmem:[%s759_s1 + $0x98] sm:$0xff] }
   0x3   :  { %v482_v7 = vpack.c.bf16 %v36_v4, %v35_v2  ;;  %v484_v8 = vpack.c.bf16 %v54_v6, %v53_v5  ;;  %v37_v9 = vld [vmem:[%s759_s1 + $0x10] sm:$0xff]  ;;  %v38_v10 = vld [vmem:[%s759_s1 + $0x18] sm:$0xff]  ;;  %v55_v11 = vld [vmem:[%s759_s1 + $0xa0] sm:$0xff] }
   0x4   :  { %481 = vmatprep.subr.bf16.mxu0 %v480_v3  ;;  %v56_v12 = vld [vmem:[%s759_s1 + $0xa8] sm:$0xff]  ;;  %v486_v13 = vpack.c.bf16 %v38_v10, %v37_v9  ;;  %v39_v15 = vld [vmem:[%s759_s1 + $0x20] sm:$0xff]  ;;  %v57_v17 = vld [vmem:[%s759_s1 + $0xb0] sm:$0xff] }
   0x5   :  { %483 = vmatpush3.bf16.msra.mxu0 %v482_v7  ;;  %v488_v14 = vpack.c.bf16 %v56_v12, %v55_v11  ;;  %v40_v16 = vld [vmem:[%s759_s1 + $0x28] sm:$0xff]  ;;  %v58_v18 = vld [vmem:[%s759_s1 + $0xb8] sm:$0xff]  ;;  %v67_v19 = vld [vmem:[%s759_s1 + $0x100] sm:$0xff] }
   0x6   :  { %485 = vmatprep.subr.bf16.mxu0 %v484_v8  ;;  %v68_v20 = vld [vmem:[%s759_s1 + $0x108] sm:$0xff]  ;;  %v490_v21 = vpack.c.bf16 %v40_v16, %v39_v15  ;;  %v41_v22 = vld [vmem:[%s759_s1 + $0x30] sm:$0xff]  ;;  %v492_v24 = vpack.c.bf16 %v58_v18, %v57_v17  ;;  %v42_v25 = vld [vmem:[%s759_s1 + $0x38] sm:$0xff] }
   0x7   :  { %v512_v23 = vpack.c.bf16 %v68_v20, %v67_v19  ;;  %v69_v26 = vld [vmem:[%s759_s1 + $0x110] sm:$0xff]  ;;  %v70_v27 = vld [vmem:[%s759_s1 + $0x118] sm:$0xff]  ;;  %v59_v28 = vld [vmem:[%s759_s1 + $0xc0] sm:$0xff]  ;;  %v494_v32 = vpack.c.bf16 %v42_v25, %v41_v22 }
   0x8   :  { %v60_v29 = vld [vmem:[%s759_s1 + $0xc8] sm:$0xff]  ;;  %v516_v30 = vpack.c.bf16 %v70_v27, %v69_v26  ;;  %v25_v31 = vld [vmem:[%s760_s0 + $0x10] sm:$0xff]  ;;  %v43_v35 = vld [vmem:[%s759_s1 + $0x40] sm:$0xff] }
   0x9   :  { %487 = vmatpush3.bf16.msra.mxu0 %v486_v13  ;;  %513 = vmatprep.subr.bf16.mxu1 %v512_v23  ;;  %v24_v33 = vld [vmem:[%s760_s0 + $0x8] sm:$0xff]  ;;  %v496_v34 = vpack.c.bf16 %v60_v29, %v59_v28  ;;  %v61_v37 = vld [vmem:[%s759_s1 + $0xd0] sm:$0xff]  ;;  %v62_v38 = vld [vmem:[%s759_s1 + $0xd8] sm:$0xff] }
   0xa   :  { %489 = vmatprep.subr.bf16.mxu0 %v488_v14  ;;  %515 = vmatpush3.bf16.msra.mxu1 %v512_v23  ;;  %v44_v36 = vld [vmem:[%s759_s1 + $0x48] sm:$0xff]  ;;  %v265_v39 = vld [vmem:[%s761_s4] sm:$0xff]  ;;  %v500_v45 = vpack.c.bf16 %v62_v38, %v61_v37  ;;  %v45_v46 = vld [vmem:[%s759_s1 + $0x50] sm:$0xff] }
   0xb   :  { %464 = vmatprep.mubr.msk.f32.mxu1 %vm78_vm0, %v25_v31  ;;  %517 = vmatprep.subr.bf16.mxu1 %v516_v30  ;;  %v266_v40 = vld [vmem:[%s761_s4 + $0x8] sm:$0xff]  ;;  %v498_v43 = vpack.c.bf16 %v44_v36, %v43_v35  ;;  %v31_v44 = vld [vmem:[%s760_s0 + $0x40] sm:$0xff]  ;;  %v46_v47 = vld [vmem:[%s759_s1 + $0x58] sm:$0xff] }
   0xc   :  { %155 = vmatprep.mubr.f32.mxu0 %v24_v33  ;;  %v28_v41 = vld [vmem:[%s760_s0 + $0x28] sm:$0xff]  ;;  %v520_v42 = vpack.c.bf16 %v266_v40, %v265_v39  ;;  %v63_v48 = vld [vmem:[%s759_s1 + $0xe0] sm:$0xff]  ;;  %v34_v50 = vld [vmem:[%s760_s0 + $0x58] sm:$0xff]  ;;  %v502_v51 = vpack.c.bf16 %v46_v47, %v45_v46 }
   0xd   :  { %491 = vmatpush3.bf16.msra.mxu0 %v490_v21  ;;  %v64_v49 = vld [vmem:[%s759_s1 + $0xe8] sm:$0xff]  ;;  %v261_v52 = vld [vmem:[%s762_s3] sm:$0xff]  ;;  %v65_v56 = vld [vmem:[%s759_s1 + $0xf0] sm:$0xff] }
   0xe   :  { %493 = vmatprep.subr.bf16.mxu0 %v492_v24  ;;  %519 = vmatpush3.bf16.msra.mxu1 %v516_v30  ;;  %v504_v53 = vpack.c.bf16 %v64_v49, %v63_v48  ;;  %v47_v54 = vld [vmem:[%s759_s1 + $0x60] sm:$0xff]  ;;  %v48_v55 = vld [vmem:[%s759_s1 + $0x68] sm:$0xff]  ;;  %v66_v57 = vld [vmem:[%s759_s1 + $0xf8] sm:$0xff] }
   0xf   :  { %521 = vmatprep.subr.bf16.mxu1 %v520_v42  ;;  %v262_v58 = vld [vmem:[%s762_s3 + $0x8] sm:$0xff]  ;;  %v506_v59 = vpack.c.bf16 %v48_v55, %v47_v54  ;;  %v263_v60 = vld [vmem:[%s762_s3 + $0x10] sm:$0xff]  ;;  %v508_v61 = vpack.c.bf16 %v66_v57, %v65_v56  ;;  %v50_v63 = vld [vmem:[%s759_s1 + $0x78] sm:$0xff] }
  0x10   :  { %v49_v62 = vld [vmem:[%s759_s1 + $0x70] sm:$0xff]  ;;  %v264_v0 = vld [vmem:[%s762_s3 + $0x18] sm:$0xff]  ;;  %v23_v2 = vld [vmem:[%s760_s0] sm:$0xff] }
  0x11   :  { %495 = vmatpush3.bf16.msra.mxu0 %v494_v32  ;;  %465 = vmatmul.mubr.msk.f32.vlgmr.msra.gmra.mrb[0].mxu1 %vm78_vm0, %v28_v41  ;;  %v510_v1 = vpack.c.bf16 %v50_v63, %v49_v62  ;;  %v27_v3 = vld [vmem:[%s760_s0 + $0x20] sm:$0xff]  ;;  %v26_v4 = vld [vmem:[%s760_s0 + $0x18] sm:$0xff]  ;;  %v29_v6 = vld [vmem:[%s760_s0 + $0x30] sm:$0xff] }
  0x12   :  { %497 = vmatprep.subr.bf16.mxu0 %v496_v34  ;;  %467 = vmatprep.mubr.msk.f32.mxu1 %vm78_vm0, %v31_v44  ;;  %v30_v5 = vld [vmem:[%s760_s0 + $0x38] sm:$0xff]  ;;  %v33_v7 = vld [vmem:[%s760_s0 + $0x50] sm:$0xff]  ;;  %v32_v8 = vld [vmem:[%s760_s0 + $0x48] sm:$0xff] }
  0x13   :  { %523 = vmatpush3.bf16.msra.mxu1 %v520_v42  ;;  %v388_v15 = vld [vmem:[%s763_s2] ss:$0 sm:$0xff] }
  0x14   :  { %v393_v20 = vld [vmem:[%s764_s5] ss:$0 sm:$0xff] }
  0x15   :  { %499 = vmatpush3.bf16.msra.mxu0 %v498_v43  ;;  %468 = vmatmul.mubr.msk.f32.gmra.mrb[2].mxu1 %vm78_vm0, %v34_v50 }
  0x16   :  { %501 = vmatprep.subr.bf16.mxu0 %v500_v45  ;;  %474 = vmatprep.mubr.msk.f32.mxu1 %vm274_vm1, %v261_v52 }
  0x19   :  { %503 = vmatpush3.bf16.msra.mxu0 %v502_v51  ;;  %475 = vmatmul.mubr.msk.f32.vlgmr.msra.gmra.mrb[0].mxu1 %vm274_vm1, %v262_v58 }
  0x1a   :  { %505 = vmatprep.subr.bf16.mxu0 %v504_v53  ;;  %477 = vmatprep.mubr.msk.f32.mxu1 %vm274_vm1, %v263_v60 }
  0x1d   :  { %507 = vmatpush3.bf16.msra.mxu0 %v506_v59  ;;  %478 = vmatmul.mubr.msk.f32.gmra.mrb[2].mxu1 %vm274_vm1, %v264_v0 }
  0x1e   :  { %509 = vmatprep.subr.bf16.mxu0 %v508_v61 }
  0x21   :  { %511 = vmatpush3.bf16.msra.mxu0 %v510_v1 }
  0x24   :  { %156 = vmatmul.mubr.f32.vlgmr.msra.gmra.mrb[0].mxu0 %v23_v2 }
  0x25   :  { %160 = vmatprep.mubr.f32.mxu0 %v27_v3 }
  0x28   :  { %161 = vmatmul.mubr.f32.gmra.mrb[2].mxu0 %v26_v4 }
  0x29   :  { %165 = vmatprep.mubr.f32.mxu0 %v30_v5 }
  0x2c   :  { %166 = vmatmul.mubr.f32.gmra.mrb[4].mxu0 %v29_v6 }
  0x2d   :  { %170 = vmatprep.mubr.f32.mxu0 %v33_v7 }
  0x30   :  { %171 = vmatmul.mubr.f32.gmra.mrb[6].mxu0 %v32_v8 }
  0xec   :  { %v476_v9 = vpop.f32.mrb[0].mxu1 }
  0xed   :  { %v353_v10 = vpop.f32.mrb[1].mxu1 }
  0xf0   :  { %v479_v11 = vpop.f32.mrb[2].mxu1 }
  0xf1   :  { %v363_v12 = vpop.f32.mrb[3].mxu1 }
  0xf7   :  { %v430_v13 = vpop.f32.mrb[0].mxu0 }
  0xf8   :  { %v431_v14 = vpop.f32.mrb[1].mxu0 }
  0xf9   :  { %v432_v16 = vadd.f32 %v431_v14, %v430_v13 }
  0xfb   :  { %v433_v17 = vpop.f32.mrb[2].mxu0  ;;  %v158_v18 = vadd.f32 %v432_v16, %v388_v15 }
  0xfc   :  { %v434_v19 = vpop.f32.mrb[3].mxu0 }
  0xfd   :  { %v435_v21 = vadd.f32 %v434_v19, %v433_v17  ;;  %v526_v22 = vadd.f32 %v353_v10, %v158_v18 }
  0xff   :  { %v163_v23 = vadd.f32 %v435_v21, %v388_v15  ;;  %v527_v24 = vadd.f32 %v526_v22, %v393_v20  ;;  %v436_v25 = vpop.f32.mrb[4].mxu0 }
 0x100   :  { %v437_v26 = vpop.f32.mrb[5].mxu0 }
 0x101   :  { %v524_v27 = vadd.f32 %v476_v9, %v163_v23  ;;  %v376_v28 = vmax.f32 %v527_v24, 0.0  ;;  %v438_v29 = vadd.f32 %v437_v26, %v436_v25 }
 0x103   :  { %v525_v30 = vadd.f32 %v524_v27, %v393_v20  ;;  %380 = vst [vmem:[%s765_s6] sm:$0xff] %v376_v28  ;;  %v168_v31 = vadd.f32 %v438_v29, %v388_v15  ;;  %v439_v32 = vpop.f32.mrb[6].mxu0 }
 0x104   :  { %v440_v33 = vpop.f32.mrb[7].mxu0 }
 0x105   :  { %v377_v34 = vmax.f32 %v525_v30, 0.0  ;;  %v530_v35 = vadd.f32 %v393_v20, %v168_v31  ;;  %v441_v36 = vadd.f32 %v440_v33, %v439_v32 }
 0x107   :  { %381 = vst [vmem:[%s765_s6 + $0x8] sm:$0xff] %v377_v34  ;;  %v531_v37 = vadd.f32 %v530_v35, %v363_v12  ;;  %v173_v38 = vadd.f32 %v441_v36, %v388_v15 }
 0x109   :  { %v378_v39 = vmax.f32 %v531_v37, 0.0  ;;  %v528_v40 = vadd.f32 %v393_v20, %v173_v38 }
 0x10b   :  { %382 = vst [vmem:[%s765_s6 + $0x10] sm:$0xff] %v378_v39  ;;  %v529_v41 = vadd.f32 %v528_v40, %v479_v11 }
 0x10d   :  { %v379_v42 = vmax.f32 %v529_v41, 0.0 }
 0x10f   :  { %383 = vst [vmem:[%s765_s6 + $0x18] sm:$0xff] %v379_v42 }

// kernel: _lambda_.17
= control target key start
LH: loop header
LB: loop body
LE: loop exit
PB: predicated region body
PF: predicated region fallthrough
CT: control target
= control target key end

     0   :  { %v304_v3 = vmov 0.0|0.0   ;;  %vm305_vm0 = vmmov 0   ;;  %v306_v4 = vmov 0.0   ;;  %vm60_vm1 = vcmask 261120   ;;  %s450_s1 = inlined_call_operand.vmem [shape: f32[288,128], index: 1, kind: input, shape index: {}]   ;;  %s451_s0 = inlined_call_operand.vmem [shape: f32[8,288], index: 0, kind: input, shape index: {}]   ;;  %s452_s2 = inlined_call_operand.vmem [shape: f32[1,128], index: 2, kind: input, shape index: {}]   ;;  %s453_s3 = inlined_call_operand.vmem [shape: f32[8,128], index: 3, kind: output, shape index: {}]  }
   0x1   :  { %v33_v0 = vld [vmem:[%s450_s1 + $0x80] sm:$0xff]  ;;  %v34_v1 = vld [vmem:[%s450_s1 + $0x88] sm:$0xff]  ;;  %295 = vmatprep.subr.bf16.mxu1 %v304_v3  ;;  %260 = vmatprep.mubr.msk.f32.mxu1 %vm305_vm0, %v306_v4  ;;  %v35_v7 = vld [vmem:[%s450_s1 + $0x90] sm:$0xff] }
   0x2   :  { %v17_v2 = vld [vmem:[%s450_s1] sm:$0xff]  ;;  %v263_v5 = vpack.c.bf16 %v34_v1, %v33_v0  ;;  %v18_v6 = vld [vmem:[%s450_s1 + $0x8] sm:$0xff]  ;;  %v36_v8 = vld [vmem:[%s450_s1 + $0x98] sm:$0xff] }
   0x3   :  { %v265_v9 = vpack.c.bf16 %v18_v6, %v17_v2  ;;  %v267_v10 = vpack.c.bf16 %v36_v8, %v35_v7  ;;  %v19_v11 = vld [vmem:[%s450_s1 + $0x10] sm:$0xff]  ;;  %v20_v12 = vld [vmem:[%s450_s1 + $0x18] sm:$0xff]  ;;  %v37_v13 = vld [vmem:[%s450_s1 + $0xa0] sm:$0xff] }
   0x4   :  { %264 = vmatprep.subr.bf16.mxu0 %v263_v5  ;;  %v38_v14 = vld [vmem:[%s450_s1 + $0xa8] sm:$0xff]  ;;  %v269_v15 = vpack.c.bf16 %v20_v12, %v19_v11  ;;  %v21_v17 = vld [vmem:[%s450_s1 + $0x20] sm:$0xff]  ;;  %v39_v19 = vld [vmem:[%s450_s1 + $0xb0] sm:$0xff] }
   0x5   :  { %266 = vmatpush3.bf16.msra.mxu0 %v265_v9  ;;  %v271_v16 = vpack.c.bf16 %v38_v14, %v37_v13  ;;  %v22_v18 = vld [vmem:[%s450_s1 + $0x28] sm:$0xff]  ;;  %v40_v20 = vld [vmem:[%s450_s1 + $0xb8] sm:$0xff]  ;;  %v23_v23 = vld [vmem:[%s450_s1 + $0x30] sm:$0xff] }
   0x6   :  { %268 = vmatprep.subr.bf16.mxu0 %v267_v10  ;;  %v273_v21 = vpack.c.bf16 %v22_v18, %v21_v17  ;;  %v275_v22 = vpack.c.bf16 %v40_v20, %v39_v19  ;;  %v24_v24 = vld [vmem:[%s450_s1 + $0x38] sm:$0xff]  ;;  %v41_v25 = vld [vmem:[%s450_s1 + $0xc0] sm:$0xff]  ;;  %v42_v26 = vld [vmem:[%s450_s1 + $0xc8] sm:$0xff] }
   0x7   :  { %v49_v27 = vld [vmem:[%s450_s1 + $0x100] sm:$0xff]  ;;  %v50_v28 = vld [vmem:[%s450_s1 + $0x108] sm:$0xff]  ;;  %v277_v30 = vpack.c.bf16 %v24_v24, %v23_v23  ;;  %v51_v32 = vld [vmem:[%s450_s1 + $0x110] sm:$0xff]  ;;  %v279_v34 = vpack.c.bf16 %v42_v26, %v41_v25 }
   0x8   :  { %v15_v29 = vld [vmem:[%s451_s0 + $0x8] sm:$0xff]  ;;  %v296_v31 = vpack.c.bf16 %v50_v28, %v49_v27  ;;  %v52_v33 = vld [vmem:[%s450_s1 + $0x118] sm:$0xff]  ;;  %v25_v35 = vld [vmem:[%s450_s1 + $0x40] sm:$0xff] }
   0x9   :  { %270 = vmatpush3.bf16.msra.mxu0 %v269_v15  ;;  %128 = vmatprep.mubr.f32.mxu0 %v15_v29  ;;  %v26_v36 = vld [vmem:[%s450_s1 + $0x48] sm:$0xff]  ;;  %v43_v37 = vld [vmem:[%s450_s1 + $0xd0] sm:$0xff]  ;;  %v44_v38 = vld [vmem:[%s450_s1 + $0xd8] sm:$0xff]  ;;  %v299_v39 = vpack.c.bf16 %v52_v33, %v51_v32 }
   0xa   :  { %272 = vmatprep.subr.bf16.mxu0 %v271_v16  ;;  %297 = vmatpush3.bf16.msra.mxu1 %v296_v31  ;;  %v281_v40 = vpack.c.bf16 %v26_v36, %v25_v35  ;;  %v283_v41 = vpack.c.bf16 %v44_v38, %v43_v37  ;;  %v27_v42 = vld [vmem:[%s450_s1 + $0x50] sm:$0xff]  ;;  %v28_v43 = vld [vmem:[%s450_s1 + $0x58] sm:$0xff]  ;;  %v45_v44 = vld [vmem:[%s450_s1 + $0xe0] sm:$0xff] }
   0xb   :  { %298 = vmatprep.subr.bf16.mxu1 %v304_v3  ;;  %v46_v45 = vld [vmem:[%s450_s1 + $0xe8] sm:$0xff]  ;;  %v16_v46 = vld [vmem:[%s451_s0 + $0x10] sm:$0xff]  ;;  %v285_v47 = vpack.c.bf16 %v28_v43, %v27_v42  ;;  %v29_v49 = vld [vmem:[%s450_s1 + $0x60] sm:$0xff] }
   0xc   :  { %v287_v48 = vpack.c.bf16 %v46_v45, %v45_v44  ;;  %v30_v50 = vld [vmem:[%s450_s1 + $0x68] sm:$0xff]  ;;  %v47_v51 = vld [vmem:[%s450_s1 + $0xf0] sm:$0xff]  ;;  %v48_v52 = vld [vmem:[%s450_s1 + $0xf8] sm:$0xff] }
   0xd   :  { %274 = vmatpush3.bf16.msra.mxu0 %v273_v21  ;;  %v289_v53 = vpack.c.bf16 %v30_v50, %v29_v49  ;;  %v291_v54 = vpack.c.bf16 %v48_v52, %v47_v51  ;;  %v31_v55 = vld [vmem:[%s450_s1 + $0x70] sm:$0xff]  ;;  %v32_v56 = vld [vmem:[%s450_s1 + $0x78] sm:$0xff]  ;;  %v14_v58 = vld [vmem:[%s451_s0] sm:$0xff] }
   0xe   :  { %276 = vmatprep.subr.bf16.mxu0 %v275_v22  ;;  %300 = vmatpush3.bf16.msra.mxu1 %v299_v39  ;;  %v293_v57 = vpack.c.bf16 %v32_v56, %v31_v55  ;;  %v210_v63 = vld [vmem:[%s452_s2] ss:$0 sm:$0xff] }
  0x11   :  { %278 = vmatpush3.bf16.msra.mxu0 %v277_v30  ;;  %261 = vmatmul.mubr.msk.f32.vlgmr.msra.gmra.mrb[0].mxu1 %vm60_vm1, %v16_v46 }
  0x12   :  { %280 = vmatprep.subr.bf16.mxu0 %v279_v34 }
  0x15   :  { %282 = vmatpush3.bf16.msra.mxu0 %v281_v40 }
  0x16   :  { %284 = vmatprep.subr.bf16.mxu0 %v283_v41 }
  0x19   :  { %286 = vmatpush3.bf16.msra.mxu0 %v285_v47 }
  0x1a   :  { %288 = vmatprep.subr.bf16.mxu0 %v287_v48 }
  0x1d   :  { %290 = vmatpush3.bf16.msra.mxu0 %v289_v53 }
  0x1e   :  { %292 = vmatprep.subr.bf16.mxu0 %v291_v54 }
  0x21   :  { %294 = vmatpush3.bf16.msra.mxu0 %v293_v57 }
  0x24   :  { %129 = vmatmul.mubr.f32.vlgmr.msra.gmra.mrb[0].mxu0 %v14_v58 }
  0xe4   :  { %v200_v59 = vpop.f32.mrb[0].mxu1 }
  0xe5   :  { %v262_v60 = vpop.f32.mrb[1].mxu1 }
  0xf7   :  { %v244_v61 = vpop.f32.mrb[0].mxu0 }
  0xf8   :  { %v245_v62 = vpop.f32.mrb[1].mxu0 }
  0xf9   :  { %v246_v0 = vadd.f32 %v245_v62, %v244_v61 }
  0xfb   :  { %v131_v1 = vadd.f32 %v246_v0, %v210_v63 }
  0xfd   :  { %v201_v2 = vadd.f32 %v200_v59, %v131_v1 }
  0xff   :  { %v204_v3 = vmax.f32 %v201_v2, 0.0 }
 0x101   :  { %205 = vst [vmem:[%s453_s3] sm:$0xff] %v204_v3 }

// kernel: _lambda_.18
= control target key start
LH: loop header
LB: loop body
LE: loop exit
PB: predicated region body
PF: predicated region fallthrough
CT: control target
= control target key end

     0   :  { %vm621_vm0 = vmmov 0   ;;  %vm333_vm1 = vcmask 261120   ;;  %vm107_vm2 = vcmask 523264   ;;  %s913_s1 = inlined_call_operand.vmem [shape: f32[576,128], index: 1, kind: input, shape index: {}]   ;;  %s914_s0 = inlined_call_operand.vmem [shape: f32[8,576], index: 0, kind: input, shape index: {}]   ;;  %s915_s4 = inlined_call_operand.vmem [shape: f32[32,128], index: 4, kind: input, shape index: {}]   ;;  %s916_s3 = inlined_call_operand.vmem [shape: f32[8,32], index: 3, kind: input, shape index: {}]   ;;  %s917_s2 = inlined_call_operand.vmem [shape: f32[1,128], index: 2, kind: input, shape index: {}]   ;;  %s918_s5 = inlined_call_operand.vmem [shape: f32[1,128], index: 5, kind: input, shape index: {}]   ;;  %s919_s6 = inlined_call_operand.vmem [shape: f32[8,128], index: 6, kind: output, shape index: {}]  }
   0x1   :  { %v44_v0 = vld [vmem:[%s913_s1 + $0x80] sm:$0xff]  ;;  %v45_v1 = vld [vmem:[%s913_s1 + $0x88] sm:$0xff]  ;;  %v46_v11 = vld [vmem:[%s913_s1 + $0x90] sm:$0xff] }
   0x2   :  { %v76_v2 = vld [vmem:[%s913_s1 + $0x180] sm:$0xff]  ;;  %v532_v3 = vpack.c.bf16 %v45_v1, %v44_v0  ;;  %v77_v4 = vld [vmem:[%s913_s1 + $0x188] sm:$0xff]  ;;  %v47_v13 = vld [vmem:[%s913_s1 + $0x98] sm:$0xff] }
   0x3   :  { %v28_v5 = vld [vmem:[%s913_s1] sm:$0xff]  ;;  %v29_v6 = vld [vmem:[%s913_s1 + $0x8] sm:$0xff]  ;;  %v564_v7 = vpack.c.bf16 %v77_v4, %v76_v2  ;;  %v78_v14 = vld [vmem:[%s913_s1 + $0x190] sm:$0xff]  ;;  %v536_v16 = vpack.c.bf16 %v47_v13, %v46_v11 }
   0x4   :  { %v534_v8 = vpack.c.bf16 %v29_v6, %v28_v5  ;;  %v60_v9 = vld [vmem:[%s913_s1 + $0x100] sm:$0xff]  ;;  %v61_v10 = vld [vmem:[%s913_s1 + $0x108] sm:$0xff]  ;;  %533 = vmatprep.subr.bf16.mxu0 %v532_v3  ;;  %v79_v15 = vld [vmem:[%s913_s1 + $0x198] sm:$0xff] }
   0x5   :  { %v566_v12 = vpack.c.bf16 %v61_v10, %v60_v9  ;;  %565 = vmatprep.subr.bf16.mxu1 %v564_v7  ;;  %v568_v17 = vpack.c.bf16 %v79_v15, %v78_v14  ;;  %v30_v18 = vld [vmem:[%s913_s1 + $0x10] sm:$0xff]  ;;  %v31_v19 = vld [vmem:[%s913_s1 + $0x18] sm:$0xff]  ;;  %v48_v23 = vld [vmem:[%s913_s1 + $0xa0] sm:$0xff] }
   0x6   :  { %535 = vmatpush3.bf16.msra.mxu0 %v534_v8  ;;  %v62_v20 = vld [vmem:[%s913_s1 + $0x110] sm:$0xff]  ;;  %v538_v21 = vpack.c.bf16 %v31_v19, %v30_v18  ;;  %v63_v22 = vld [vmem:[%s913_s1 + $0x118] sm:$0xff]  ;;  %v49_v24 = vld [vmem:[%s913_s1 + $0xa8] sm:$0xff] }
   0x7   :  { %567 = vmatpush3.bf16.msra.mxu1 %v566_v12  ;;  %537 = vmatprep.subr.bf16.mxu0 %v536_v16  ;;  %v570_v25 = vpack.c.bf16 %v63_v22, %v62_v20  ;;  %v540_v26 = vpack.c.bf16 %v49_v24, %v48_v23  ;;  %v80_v27 = vld [vmem:[%s913_s1 + $0x1a0] sm:$0xff]  ;;  %v81_v28 = vld [vmem:[%s913_s1 + $0x1a8] sm:$0xff]  ;;  %v50_v35 = vld [vmem:[%s913_s1 + $0xb0] sm:$0xff] }
   0x8   :  { %569 = vmatprep.subr.bf16.mxu1 %v568_v17  ;;  %v32_v29 = vld [vmem:[%s913_s1 + $0x20] sm:$0xff]  ;;  %v572_v30 = vpack.c.bf16 %v81_v28, %v80_v27  ;;  %v33_v31 = vld [vmem:[%s913_s1 + $0x28] sm:$0xff]  ;;  %v51_v36 = vld [vmem:[%s913_s1 + $0xb8] sm:$0xff] }
   0x9   :  { %v64_v32 = vld [vmem:[%s913_s1 + $0x120] sm:$0xff]  ;;  %v65_v33 = vld [vmem:[%s913_s1 + $0x128] sm:$0xff]  ;;  %v542_v34 = vpack.c.bf16 %v33_v31, %v32_v29  ;;  %v82_v37 = vld [vmem:[%s913_s1 + $0x1b0] sm:$0xff]  ;;  %v544_v39 = vpack.c.bf16 %v51_v36, %v50_v35 }
   0xa   :  { %539 = vmatpush3.bf16.msra.mxu0 %v538_v21  ;;  %v574_v38 = vpack.c.bf16 %v65_v33, %v64_v32  ;;  %v83_v40 = vld [vmem:[%s913_s1 + $0x1b8] sm:$0xff]  ;;  %v34_v41 = vld [vmem:[%s913_s1 + $0x30] sm:$0xff]  ;;  %v52_v46 = vld [vmem:[%s913_s1 + $0xc0] sm:$0xff] }
   0xb   :  { %571 = vmatpush3.bf16.msra.mxu1 %v570_v25  ;;  %541 = vmatprep.subr.bf16.mxu0 %v540_v26  ;;  %v35_v42 = vld [vmem:[%s913_s1 + $0x38] sm:$0xff]  ;;  %v576_v43 = vpack.c.bf16 %v83_v40, %v82_v37  ;;  %v66_v44 = vld [vmem:[%s913_s1 + $0x130] sm:$0xff]  ;;  %v53_v47 = vld [vmem:[%s913_s1 + $0xc8] sm:$0xff] }
   0xc   :  { %573 = vmatprep.subr.bf16.mxu1 %v572_v30  ;;  %v67_v45 = vld [vmem:[%s913_s1 + $0x138] sm:$0xff]  ;;  %v84_v48 = vld [vmem:[%s913_s1 + $0x1c0] sm:$0xff]  ;;  %v85_v49 = vld [vmem:[%s913_s1 + $0x1c8] sm:$0xff]  ;;  %v546_v50 = vpack.c.bf16 %v35_v42, %v34_v41  ;;  %v548_v52 = vpack.c.bf16 %v53_v47, %v52_v46  ;;  %v620_v42 = vmov 0.0|0.0  }
   0xd   :  { %v578_v51 = vpack.c.bf16 %v67_v45, %v66_v44  ;;  %v36_v53 = vld [vmem:[%s913_s1 + $0x40] sm:$0xff]  ;;  %v37_v54 = vld [vmem:[%s913_s1 + $0x48] sm:$0xff]  ;;  %v580_v56 = vpack.c.bf16 %v85_v49, %v84_v48  ;;  %v54_v58 = vld [vmem:[%s913_s1 + $0xd0] sm:$0xff]  ;;  %v622_v49 = vmov 0.0  }
   0xe   :  { %543 = vmatpush3.bf16.msra.mxu0 %v542_v34  ;;  %v68_v55 = vld [vmem:[%s913_s1 + $0x140] sm:$0xff]  ;;  %v69_v57 = vld [vmem:[%s913_s1 + $0x148] sm:$0xff]  ;;  %v55_v59 = vld [vmem:[%s913_s1 + $0xd8] sm:$0xff]  ;;  %v550_v62 = vpack.c.bf16 %v37_v54, %v36_v53 }
   0xf   :  { %575 = vmatpush3.bf16.msra.mxu1 %v574_v38  ;;  %545 = vmatprep.subr.bf16.mxu0 %v544_v39  ;;  %v86_v60 = vld [vmem:[%s913_s1 + $0x1d0] sm:$0xff]  ;;  %v87_v61 = vld [vmem:[%s913_s1 + $0x1d8] sm:$0xff]  ;;  %v582_v63 = vpack.c.bf16 %v69_v57, %v68_v55  ;;  %v552_v0 = vpack.c.bf16 %v55_v59, %v54_v58  ;;  %v56_v6 = vld [vmem:[%s913_s1 + $0xe0] sm:$0xff] }
  0x10   :  { %577 = vmatprep.subr.bf16.mxu1 %v576_v43  ;;  %v38_v1 = vld [vmem:[%s913_s1 + $0x50] sm:$0xff]  ;;  %v39_v2 = vld [vmem:[%s913_s1 + $0x58] sm:$0xff]  ;;  %v584_v4 = vpack.c.bf16 %v87_v61, %v86_v60  ;;  %v57_v7 = vld [vmem:[%s913_s1 + $0xe8] sm:$0xff] }
  0x11   :  { %v70_v3 = vld [vmem:[%s913_s1 + $0x150] sm:$0xff]  ;;  %v71_v5 = vld [vmem:[%s913_s1 + $0x158] sm:$0xff]  ;;  %v88_v8 = vld [vmem:[%s913_s1 + $0x1e0] sm:$0xff]  ;;  %v554_v10 = vpack.c.bf16 %v39_v2, %v38_v1  ;;  %v556_v14 = vpack.c.bf16 %v57_v7, %v56_v6 }
  0x12   :  { %547 = vmatpush3.bf16.msra.mxu0 %v546_v50  ;;  %v89_v9 = vld [vmem:[%s913_s1 + $0x1e8] sm:$0xff]  ;;  %v40_v11 = vld [vmem:[%s913_s1 + $0x60] sm:$0xff]  ;;  %v586_v13 = vpack.c.bf16 %v71_v5, %v70_v3  ;;  %v26_v17 = vld [vmem:[%s914_s0 + $0x18] sm:$0xff] }
  0x13   :  { %579 = vmatpush3.bf16.msra.mxu1 %v578_v51  ;;  %549 = vmatprep.subr.bf16.mxu0 %v548_v52  ;;  %v41_v12 = vld [vmem:[%s913_s1 + $0x68] sm:$0xff]  ;;  %v72_v15 = vld [vmem:[%s913_s1 + $0x160] sm:$0xff]  ;;  %v588_v18 = vpack.c.bf16 %v89_v9, %v88_v8  ;;  %v58_v20 = vld [vmem:[%s913_s1 + $0xf0] sm:$0xff] }
  0x14   :  { %581 = vmatprep.subr.bf16.mxu1 %v580_v56  ;;  %v24_v16 = vld [vmem:[%s914_s0 + $0x8] sm:$0xff]  ;;  %v59_v21 = vld [vmem:[%s913_s1 + $0xf8] sm:$0xff]  ;;  %v90_v22 = vld [vmem:[%s913_s1 + $0x1f0] sm:$0xff]  ;;  %245 = vmatprep.mubr.f32.mxu1 %v26_v17  ;;  %v558_v24 = vpack.c.bf16 %v41_v12, %v40_v11 }
  0x15   :  { %v73_v19 = vld [vmem:[%s913_s1 + $0x168] sm:$0xff]  ;;  %175 = vmatprep.mubr.f32.mxu0 %v24_v16  ;;  %v91_v23 = vld [vmem:[%s913_s1 + $0x1f8] sm:$0xff]  ;;  %v560_v26 = vpack.c.bf16 %v59_v21, %v58_v20  ;;  %v42_v27 = vld [vmem:[%s913_s1 + $0x70] sm:$0xff] }
  0x16   :  { %551 = vmatpush3.bf16.msra.mxu0 %v550_v62  ;;  %v590_v25 = vpack.c.bf16 %v73_v19, %v72_v15  ;;  %v43_v28 = vld [vmem:[%s913_s1 + $0x78] sm:$0xff]  ;;  %v592_v29 = vpack.c.bf16 %v91_v23, %v90_v22  ;;  %v74_v30 = vld [vmem:[%s913_s1 + $0x170] sm:$0xff]  ;;  %v322_v34 = vld [vmem:[%s915_s4] sm:$0xff] }
  0x17   :  { %583 = vmatpush3.bf16.msra.mxu1 %v582_v63  ;;  %553 = vmatprep.subr.bf16.mxu0 %v552_v0  ;;  %v75_v31 = vld [vmem:[%s913_s1 + $0x178] sm:$0xff]  ;;  %v562_v32 = vpack.c.bf16 %v43_v28, %v42_v27  ;;  %v323_v35 = vld [vmem:[%s915_s4 + $0x8] sm:$0xff]  ;;  %v92_v36 = vld [vmem:[%s913_s1 + $0x200] sm:$0xff] }
  0x18   :  { %585 = vmatprep.subr.bf16.mxu1 %v584_v4  ;;  %v594_v33 = vpack.c.bf16 %v75_v31, %v74_v30  ;;  %v93_v37 = vld [vmem:[%s913_s1 + $0x208] sm:$0xff]  ;;  %v23_v38 = vld [vmem:[%s914_s0] sm:$0xff]  ;;  %v609_v39 = vpack.c.bf16 %v323_v35, %v322_v34  ;;  %v25_v40 = vld [vmem:[%s914_s0 + $0x10] sm:$0xff] }
  0x19   :  { %v597_v41 = vpack.c.bf16 %v93_v37, %v92_v36  ;;  %v324_v43 = vld [vmem:[%s915_s4 + $0x10] sm:$0xff]  ;;  %v325_v44 = vld [vmem:[%s915_s4 + $0x18] sm:$0xff]  ;;  %v96_v50 = vld [vmem:[%s913_s1 + $0x220] sm:$0xff] }
  0x1a   :  { %555 = vmatpush3.bf16.msra.mxu0 %v554_v10  ;;  %v94_v45 = vld [vmem:[%s913_s1 + $0x210] sm:$0xff]  ;;  %v95_v46 = vld [vmem:[%s913_s1 + $0x218] sm:$0xff]  ;;  %v612_v47 = vpack.c.bf16 %v325_v44, %v324_v43  ;;  %v97_v51 = vld [vmem:[%s913_s1 + $0x228] sm:$0xff] }
  0x1b   :  { %587 = vmatpush3.bf16.msra.mxu1 %v586_v13  ;;  %557 = vmatprep.subr.bf16.mxu0 %v556_v14  ;;  %v600_v48 = vpack.c.bf16 %v95_v46, %v94_v45  ;;  %v321_v52 = vld [vmem:[%s916_s3] sm:$0xff]  ;;  %v603_v53 = vpack.c.bf16 %v97_v51, %v96_v50  ;;  %v98_v54 = vld [vmem:[%s913_s1 + $0x230] sm:$0xff]  ;;  %v99_v55 = vld [vmem:[%s913_s1 + $0x238] sm:$0xff] }
  0x1c   :  { %589 = vmatprep.subr.bf16.mxu1 %v588_v18  ;;  %v606_v56 = vpack.c.bf16 %v99_v55, %v98_v54  ;;  %v27_v57 = vld [vmem:[%s914_s0 + $0x20] sm:$0xff] }
  0x1d   :  { %v414_v60 = vld [vmem:[%s917_s2] ss:$0 sm:$0xff] }
  0x1e   :  { %559 = vmatpush3.bf16.msra.mxu0 %v558_v24  ;;  %v416_v6 = vld [vmem:[%s918_s5] ss:$0 sm:$0xff] }
  0x1f   :  { %591 = vmatpush3.bf16.msra.mxu1 %v590_v25  ;;  %561 = vmatprep.subr.bf16.mxu0 %v560_v26 }
  0x20   :  { %593 = vmatprep.subr.bf16.mxu1 %v592_v29 }
  0x22   :  { %563 = vmatpush3.bf16.msra.mxu0 %v562_v32 }
  0x23   :  { %595 = vmatpush3.bf16.msra.mxu1 %v594_v33  ;;  %608 = vmatprep.subr.bf16.mxu0 %v620_v42 }
  0x24   :  { %596 = vmatprep.subr.bf16.mxu1 %v620_v42 }
  0x25   :  { %176 = vmatmul.mubr.f32.vlgmr.msra.gmra.mrb[0].mxu0 %v23_v38 }
  0x26   :  { %246 = vmatmul.mubr.f32.vlgmr.msra.gmra.mrb[0].mxu1 %v25_v40  ;;  %610 = vmatpush3.bf16.msra.mxu0 %v609_v39 }
  0x27   :  { %598 = vmatpush3.bf16.msra.mxu1 %v597_v41  ;;  %518 = vmatprep.mubr.msk.f32.mxu1 %vm621_vm0, %v622_v49 }
  0x28   :  { %599 = vmatprep.subr.bf16.mxu1 %v620_v42  ;;  %611 = vmatprep.subr.bf16.mxu0 %v620_v42 }
  0x29   :  { %529 = vmatprep.mubr.msk.f32.mxu0 %vm621_vm0, %v622_v49 }
  0x2a   :  { %613 = vmatpush3.bf16.msra.mxu0 %v612_v47 }
  0x2b   :  { %601 = vmatpush3.bf16.msra.mxu1 %v600_v48 }
  0x2c   :  { %602 = vmatprep.subr.bf16.mxu1 %v620_v42 }
  0x2d   :  { %530 = vmatmul.mubr.msk.f32.vlgmr.msra.gmra.mrb[2].mxu0 %vm333_vm1, %v321_v52 }
  0x2f   :  { %604 = vmatpush3.bf16.msra.mxu1 %v603_v53 }
  0x30   :  { %605 = vmatprep.subr.bf16.mxu1 %v620_v42 }
  0x33   :  { %607 = vmatpush3.bf16.msra.mxu1 %v606_v56 }
  0x36   :  { %519 = vmatmul.mubr.msk.f32.vlgmr.msra.gmra.mrb[2].mxu1 %vm107_vm2, %v27_v57 }
  0xf8   :  { %v450_v58 = vpop.f32.mrb[0].mxu0 }
  0xf9   :  { %v485_v59 = vpop.f32.mrb[0].mxu1  ;;  %v451_v61 = vpop.f32.mrb[1].mxu0 }
  0xfa   :  { %v452_v62 = vadd.f32 %v451_v61, %v450_v58  ;;  %v486_v63 = vpop.f32.mrb[1].mxu1 }
  0xfb   :  { %v487_v0 = vadd.f32 %v486_v63, %v485_v59 }
  0xfc   :  { %v178_v1 = vadd.f32 %v452_v62, %v414_v60 }
  0xfe   :  { %v248_v2 = vadd.f32 %v487_v0, %v178_v1 }
 0x100   :  { %v403_v3 = vpop.f32.mrb[2].mxu0 }
 0x101   :  { %v531_v4 = vpop.f32.mrb[3].mxu0 }
 0x109   :  { %v317_v5 = vpop.f32.mrb[2].mxu1 }
 0x10a   :  { %v318_v7 = vadd.f32 %v317_v5, %v248_v2  ;;  %v520_v8 = vpop.f32.mrb[3].mxu1 }
 0x10c   :  { %v615_v9 = vadd.f32 %v416_v6, %v318_v7 }
 0x10e   :  { %v616_v10 = vadd.f32 %v615_v9, %v403_v3 }
 0x110   :  { %v408_v11 = vmax.f32 %v616_v10, 0.0 }
 0x112   :  { %409 = vst [vmem:[%s919_s6] sm:$0xff] %v408_v11 }

// kernel: _lambda_.19
= control target key start
LH: loop header
LB: loop body
LE: loop exit
PB: predicated region body
PF: predicated region fallthrough
CT: control target
= control target key end

     0   :  { %vm20_vm0 = vcmask 64512   ;;  %v315_v2 = vmov 0.0   ;;  %vm316_vm1 = vmmov 0   ;;  %v317_v6 = vmov 0.0|0.0   ;;  %s413_s0 = inlined_call_operand.vmem [shape: f32[2,8], index: 0, kind: input, shape index: {}]   ;;  %s414_s1 = inlined_call_operand.vmem [shape: f32[8,128], index: 1, kind: input, shape index: {}]   ;;  %s415_s2 = inlined_call_operand.vmem [shape: f32[128,128], index: 2, kind: input, shape index: {}]   ;;  %s416_s3 = inlined_call_operand.vmem [shape: f32[1,128], index: 3, kind: input, shape index: {}]   ;;  %s417_s4 = inlined_call_operand.hbm [shape: f32[2,128], index: 4, kind: output, shape index: {}]  }
   0x1   :  { %v19_v0 = vld [vmem:[%s414_s1] sm:$0xff]  ;;  %223 = vmatprep.subr.mxu0 %v315_v2  ;;  %225 = vmatprep.mubr.msk.f32.mxu0 %vm316_vm1, %v315_v2  ;;  %v95_v4 = vld [vmem:[%s415_s2 + $0x8] sm:$0xff]  ;;  %v96_v5 = vld [vmem:[%s415_s2 + $0x10] sm:$0xff] }
   0x2   :  { %v18_v1 = vld [vmem:[%s413_s0] sm:$0x3]  ;;  %224 = vmatpush3.msra.mxu0 %v19_v0  ;;  %263 = vmatprep.subr.bf16.mxu1 %v317_v6  ;;  %v97_v8 = vld [vmem:[%s415_s2 + $0x18] sm:$0xff]  ;;  %v99_v11 = vld [vmem:[%s415_s2 + $0x28] sm:$0xff] }
   0x3   :  { %v94_v3 = vld [vmem:[%s415_s2] sm:$0xff]  ;;  %226 = vmatmul.mubr.msk.f32.vlgmr.msra.gmra.mrb[0].mxu0 %vm20_vm0, %v18_v1  ;;  %260 = vmatprep.mubr.msk.f32.mxu1 %vm316_vm1, %v315_v2  ;;  %v267_v9 = vpack.c.bf16 %v97_v8, %v96_v5 }
   0x4   :  { %v264_v7 = vpack.c.bf16 %v95_v4, %v94_v3  ;;  %v98_v10 = vld [vmem:[%s415_s2 + $0x20] sm:$0xff] }
   0x6   :  { %265 = vmatpush3.bf16.msra.mxu1 %v264_v7 }
   0x7   :  { %266 = vmatprep.subr.bf16.mxu1 %v317_v6 }
   0x8   :  { %9 = vsyncpa [#allocation3], 0  ;;  %v270_v12 = vpack.c.bf16 %v99_v11, %v98_v10  ;;  %v100_v13 = vld [vmem:[%s415_s2 + $0x30] sm:$0xff]  ;;  %v101_v14 = vld [vmem:[%s415_s2 + $0x38] sm:$0xff]  ;;  %s318_s0 = smov [#allocation2]  }
   0x9   :  { %v273_v15 = vpack.c.bf16 %v101_v14, %v100_v13  ;;  %v102_v16 = vld [vmem:[%s415_s2 + $0x40] sm:$0xff]  ;;  %v103_v17 = vld [vmem:[%s415_s2 + $0x48] sm:$0xff]  ;;  %v104_v19 = vld [vmem:[%s415_s2 + $0x50] sm:$0xff]  ;;  %s194_s1 = sshll.u32 %s318_s0, 4  ;;  %s195_s1 = int_to_ptr.vmem [resolvable:$true] %s194_s1 }
   0xa   :  { %268 = vmatpush3.bf16.msra.mxu1 %v267_v9  ;;  %v276_v18 = vpack.c.bf16 %v103_v17, %v102_v16  ;;  %v105_v20 = vld [vmem:[%s415_s2 + $0x58] sm:$0xff]  ;;  %v106_v22 = vld [vmem:[%s415_s2 + $0x60] sm:$0xff]  ;;  %v107_v23 = vld [vmem:[%s415_s2 + $0x68] sm:$0xff]  ;;  %s291_s25 = scalar_lea.vmem %s195_s1, 32  ;;  %p296_p1 = scmp.lt.s32.totalorder %s195_s1, %s195_s1 }
   0xb   :  { %269 = vmatprep.subr.bf16.mxu1 %v317_v6  ;;  %v279_v21 = vpack.c.bf16 %v105_v20, %v104_v19  ;;  %v282_v24 = vpack.c.bf16 %v107_v23, %v106_v22  ;;  %v108_v25 = vld [vmem:[%s415_s2 + $0x70] sm:$0xff]  ;;  %v109_v26 = vld [vmem:[%s415_s2 + $0x78] sm:$0xff]  ;;  %v203_v30 = vld [vmem:[%s416_s3] ss:$0 sm:$0xff]  ;;  %p292_p0 = scmp.ne.s32.totalorder %s195_s1, %s291_s25  ;;  %p297_p2 = scmp.lt.s32.totalorder %s291_s25, %s291_s25 }
   0xc   :  { %v285_v27 = vpack.c.bf16 %v109_v26, %v108_v25 }
   0xd   :  { %p298_p3 = por %p297_p2, %p296_p1 }
   0xe   :  { %271 = vmatpush3.bf16.msra.mxu1 %v270_v12 }
   0xf   :  { %272 = vmatprep.subr.bf16.mxu1 %v317_v6  ;;  %p299_p4 = pnand %p298_p3, %p292_p0 }
  0x12   :  { %274 = vmatpush3.bf16.msra.mxu1 %v273_v15 }
  0x13   :  { %275 = vmatprep.subr.bf16.mxu1 %v317_v6 }
  0x16   :  { %277 = vmatpush3.bf16.msra.mxu1 %v276_v18 }
  0x17   :  { %278 = vmatprep.subr.bf16.mxu1 %v317_v6 }
  0x1a   :  { %280 = vmatpush3.bf16.msra.mxu1 %v279_v21 }
  0x1b   :  { %281 = vmatprep.subr.bf16.mxu1 %v317_v6 }
  0x1e   :  { %283 = vmatpush3.bf16.msra.mxu1 %v282_v24 }
  0x1f   :  { %284 = vmatprep.subr.bf16.mxu1 %v317_v6 }
  0x22   :  { %286 = vmatpush3.bf16.msra.mxu1 %v285_v27 }
  0xd6   :  { %v90_v28 = vpop.f32.mrb[0].mxu0 }
  0xd7   :  { %v227_v29 = vpop.f32.mrb[1].mxu0  ;;  %261 = vmatmul.mubr.f32.vlgmr.msra.gmra.mrb[0].mxu1 %v90_v28 }
 0x1aa   :  { %v183_v31 = vpop.f32.mrb[0].mxu1 }
 0x1ab   :  { %v184_v32 = vadd.f32 %v203_v30, %v183_v31  ;;  %v262_v33 = vpop.f32.mrb[1].mxu1 }
 0x1ad   :  { %187 = vst [vmem:[#allocation2] sm:$0x3] %v184_v32 }
 0x1ae   :  { %302 = shalt.err (!%p299_p4)
}
 0x1af   :  { %s303_s27 = scalar_lea.hbm %s417_s4, 32 }
 0x1b0   :  { %p304_p5 = scmp.ne.s32.totalorder %s417_s4, %s303_s27  ;;  %p307_p6 = scmp.lt.u32.totalorder %s303_s27, %s417_s4 }
 0x1b2   :  { %p309_p7 = pnand %p307_p6, %p304_p5 }
 0x1b4   :  { %312 = shalt.err (!%p309_p7)
}
 0x1b5   :  { %197 = dma.vmem_to_hbm [thread:$0]  %s195_s1, 32, %s417_s4, [#allocation3]  }
 0x1b6   :  { %313 = dma.done.wait [#allocation3], 32  }
 0x1b7   :  { %314 = vsyncadd [#allocation3], 4294967264 }
 0x1b8   :  { %201 = vsyncpa [#allocation3], 1 }

</bundles_post_ra>
